<compile_context>
chip_gen: v6e
topology: v6e:2x2x1
jax: 0.10.0
libtpu: 0.0.40
codegen_flags: <defaults>
</compile_context>

<pallas_src>
import functools
import math

import jax
import jax.numpy as jnp
from jax.experimental import pallas as pl
from jax.experimental.pallas import tpu as pltpu

# ----------------------------- model config ---------------------------------
B, L = 2, 8                      # batch, sequence length
D_MODEL = 32                     # emb_size   (1280 in the original)
D_INNER = 64                     # d_inner    (2048 in the original)
N_HEAD = 4
D_K = D_MODEL                    # per-head key dim   (original: d_k = 1280)
D_V = D_MODEL                    # per-head value dim (original: d_v = 1280)
N_BLOCKS = 3                     # ensemble members (1/2/3 encoder layers)
MAX_LAYERS = 3
HEAD_H1, HEAD_H2 = 256, 64
LOGIT_PAD = 128                  # lane-dense padded logit width
EPS = 1e-6


# ----------------------------- kernel helpers -------------------------------
def _layer_norm(x, g, b):
    """Single-pass LayerNorm (mean and mean-of-squares in one sweep)."""
    mu = jnp.mean(x, axis=-1, keepdims=True)
    ms = jnp.mean(x * x, axis=-1, keepdims=True)
    var = ms - mu * mu
    return (x - mu) * jax.lax.rsqrt(var + EPS) * g + b


# ----------------------------- fused ensemble kernel ------------------------
def _ensemble_block_kernel(
        x_ref,                               # [B*L, D] input tokens (shared)
        lnb_g_ref, lnb_b_ref,                # [1, 1, D] block-input LN
        wqkv_ref,                            # [1, MAXL, D, 2*H*dk + H*dv]
        wfc_ref,                             # [1, MAXL, H*dv, D]
        ln1_g_ref, ln1_b_ref,                # [1, MAXL, 1, D]
        w1_ref, b1_ref,                      # [1, MAXL, D, DI], [1, MAXL, 1, DI]
        w2_ref, b2_ref,                      # [1, MAXL, DI, D], [1, MAXL, 1, D]
        ln2_g_ref, ln2_b_ref,                # [1, MAXL, 1, D]
        hw1_ref, hb1_ref,                    # [1, D, 256], [1, 1, 256]
        hw2_ref, hb2_ref,                    # [1, 256, 64], [1, 1, 64]
        hw3_ref, hb3_ref,                    # [1, 64, 128], [1, 1, 128] (padded)
        o_ref,                               # [1, B, 128] padded logits
        h_ref,                               # scratch VMEM [B*L, D] f32
        *, n_head, d_k, d_v, b_sz, seq_len, max_layers):
    blk = pl.program_id(0)                   # ensemble member; has blk+1 layers
    d_model = x_ref.shape[-1]
    scale = 1.0 / (d_k ** 0.5)
    qk_w = n_head * d_k

    # Block-input LayerNorm (SelfAttn.layer_norm); activation stays in VMEM.
    x = x_ref[...].astype(jnp.float32)                        # [B*L, D]
    h_ref[...] = _layer_norm(x, lnb_g_ref[0], lnb_b_ref[0])

    # Static 3-layer loop; layer l only runs for blocks with >= l+1 layers.
    for l in range(max_layers):
        @pl.when(l <= blk)
        def _(l=l):
            hx = h_ref[...]                                   # [B*L, D]
            # Fused Q/K/V projection: one MXU dot on the batch-folded rows.
            qkv = jnp.dot(hx, wqkv_ref[0, l],
                          preferred_element_type=jnp.float32)  # [B*L, 3*H*dk]
            q3 = qkv[:, :qk_w].reshape(b_sz, seq_len, qk_w)
            k3 = qkv[:, qk_w:2 * qk_w].reshape(b_sz, seq_len, qk_w)
            v3 = qkv[:, 2 * qk_w:].reshape(b_sz, seq_len, n_head * d_v)

            # Attention: static head loop, batched over B inside each einsum
            # so batches never mix.  fc output projection is accumulated
            # head-by-head (avoids a concat/relayout).
            ctx = jnp.zeros((b_sz * seq_len, d_model), jnp.float32)
            for h in range(n_head):
                qh = q3[:, :, h * d_k:(h + 1) * d_k] * scale   # [B, L, dk]
                kh = k3[:, :, h * d_k:(h + 1) * d_k]
                vh = v3[:, :, h * d_v:(h + 1) * d_v]
                s = jnp.einsum('bld,bmd->blm', qh, kh,
                               preferred_element_type=jnp.float32)   # [B, L, L]
                m = jnp.max(s, axis=-1, keepdims=True)
                e = jnp.exp(s - m)
                p = e * pl.reciprocal(jnp.sum(e, axis=-1, keepdims=True),
                                      approx=True)                   # softmax
                oh = jnp.einsum('blm,bmd->bld', p, vh,
                                preferred_element_type=jnp.float32)  # [B, L, dv]
                ctx = ctx + jnp.dot(oh.reshape(b_sz * seq_len, d_v),
                                    wfc_ref[0, l, h * d_v:(h + 1) * d_v, :],
                                    preferred_element_type=jnp.float32)

            # Add & Norm (MultiHeadAttention)
            x1 = _layer_norm(ctx + hx, ln1_g_ref[0, l], ln1_b_ref[0, l])

            # Position-wise feed-forward + Add & Norm
            h1 = jnp.maximum(
                jnp.dot(x1, w1_ref[0, l], preferred_element_type=jnp.float32)
                + b1_ref[0, l], 0.0)
            x2 = (jnp.dot(h1, w2_ref[0, l], preferred_element_type=jnp.float32)
                  + b2_ref[0, l] + x1)
            h_ref[...] = _layer_norm(x2, ln2_g_ref[0, l], ln2_b_ref[0, l])

    # CLS token (row 0 of every sequence) + 3-layer MLP head, fused in-kernel.
    h_all = h_ref[...]
    cls = h_all.reshape(b_sz, seq_len, d_model)[:, 0, :]      # [B, D]
    hh = jnp.maximum(
        jnp.dot(cls, hw1_ref[0], preferred_element_type=jnp.float32)
        + hb1_ref[0], 0.0)
    hh = jnp.maximum(
        jnp.dot(hh, hw2_ref[0], preferred_element_type=jnp.float32)
        + hb2_ref[0], 0.0)
    logit = (jnp.dot(hh, hw3_ref[0], preferred_element_type=jnp.float32)
             + hb3_ref[0])                                    # [B, 128] padded
    o_ref[0] = logit.astype(o_ref.dtype)


# ----------------------------- Pallas wrapper --------------------------------
_STACKED_NAMES = ("lnb_g", "lnb_b",
                  "wqkv", "wfc", "ln1_g", "ln1_b",
                  "w1", "b1", "w2", "b2", "ln2_g", "ln2_b",
                  "hw1", "hb1", "hw2", "hb2", "hw3", "hb3")


def _stacked_spec(arr):
    """Block = one ensemble member's slice of a stacked weight array."""
    nd = arr.ndim
    blk = (1,) + tuple(arr.shape[1:])
    return pl.BlockSpec(blk, lambda b, _n=nd: (b,) + (0,) * (_n - 1))


def ensemble_forward_pallas(x, sp):
    """x: [B, L, D]; sp: stacked params.  Returns per-block logits [3, B]."""
    Bn, Ln, Dn = x.shape
    x2d = x.reshape(Bn * Ln, Dn)                 # fold batch into matmul rows
    weights = [sp[k] for k in _STACKED_NAMES]
    kernel = functools.partial(
        _ensemble_block_kernel, n_head=N_HEAD, d_k=D_K, d_v=D_V,
        b_sz=Bn, seq_len=Ln, max_layers=MAX_LAYERS)
    out = pl.pallas_call(
        kernel,
        out_shape=jax.ShapeDtypeStruct((N_BLOCKS, Bn, LOGIT_PAD), jnp.float32),
        grid=(N_BLOCKS,),
        in_specs=[pl.BlockSpec((Bn * Ln, Dn), lambda b: (0, 0))]
                 + [_stacked_spec(w) for w in weights],
        out_specs=pl.BlockSpec((1, Bn, LOGIT_PAD), lambda b: (b, 0, 0)),
        scratch_shapes=[pltpu.VMEM((Bn * Ln, Dn), jnp.float32)],
        compiler_params=pltpu.CompilerParams(
            dimension_semantics=("parallel",)),
    )(x2d, *weights)
    return out[:, :, 0]                          # [3, B]


# ----------------------------- parameter init --------------------------------
def _xavier(key, fan_in, fan_out):
    bound = math.sqrt(6.0 / (fan_in + fan_out))
    return jax.random.uniform(key, (fan_in, fan_out), jnp.float32, -bound, bound)


def _bias(key, fan_in, dout):
    bound = 1.0 / math.sqrt(fan_in)
    return jax.random.uniform(key, (1, dout), jnp.float32, -bound, bound)


def make_enc_layer_params(key):
    ks = jax.random.split(key, 8)
    return dict(
        wq=_xavier(ks[0], D_MODEL, N_HEAD * D_K),
        wk=_xavier(ks[1], D_MODEL, N_HEAD * D_K),
        wv=_xavier(ks[2], D_MODEL, N_HEAD * D_V),
        wfc=_xavier(ks[3], N_HEAD * D_V, D_MODEL),
        ln1_g=jnp.ones((1, D_MODEL), jnp.float32),
        ln1_b=jnp.zeros((1, D_MODEL), jnp.float32),
        w1=_xavier(ks[4], D_MODEL, D_INNER),
        b1=_bias(ks[5], D_MODEL, D_INNER),
        w2=_xavier(ks[6], D_INNER, D_MODEL),
        b2=_bias(ks[7], D_INNER, D_MODEL),
        ln2_g=jnp.ones((1, D_MODEL), jnp.float32),
        ln2_b=jnp.zeros((1, D_MODEL), jnp.float32),
    )


def make_head_params(key):
    ks = jax.random.split(key, 6)
    return dict(
        w1=_xavier(ks[0], D_MODEL, HEAD_H1), b1=_bias(ks[1], D_MODEL, HEAD_H1),
        w2=_xavier(ks[2], HEAD_H1, HEAD_H2), b2=_bias(ks[3], HEAD_H1, HEAD_H2),
        w3=_xavier(ks[4], HEAD_H2, 1),       b3=_bias(ks[5], HEAD_H2, 1),
    )


def make_params(key):
    kb = jax.random.split(key, 2 * N_BLOCKS)
    blocks, heads = [], []
    for b in range(N_BLOCKS):
        kls = jax.random.split(kb[b], MAX_LAYERS)
        layers = [make_enc_layer_params(kls[l]) for l in range(b + 1)]
        blocks.append(dict(ln_g=jnp.ones((1, D_MODEL), jnp.float32),
                           ln_b=jnp.zeros((1, D_MODEL), jnp.float32),
                           layers=layers))
        heads.append(make_head_params(kb[N_BLOCKS + b]))
    return dict(blocks=blocks, heads=heads)


_LAYER_KEYS = ("wq", "wk", "wv", "wfc", "ln1_g", "ln1_b",
               "w1", "b1", "w2", "b2", "ln2_g", "ln2_b")


def stack_params(params):
    """Stack per-block / per-layer params into [N_BLOCKS, MAX_LAYERS, ...]
    arrays (unused layer slots zero-padded; they are skipped via pl.when).
    Q/K/V weights are pre-fused into a single [D, 3*H*dk] projection."""
    first = params["blocks"][0]["layers"][0]
    zero_layer = {k: jnp.zeros_like(v) for k, v in first.items()}
    sp = {}
    for k in _LAYER_KEYS:
        per_block = []
        for blk in params["blocks"]:
            layers = blk["layers"] + [zero_layer] * (MAX_LAYERS - len(blk["layers"]))
            per_block.append(jnp.stack([lp[k] for lp in layers], axis=0))
        sp[k] = jnp.stack(per_block, axis=0)
    # Fuse Q/K/V projection weights -> one dot per layer inside the kernel.
    sp["wqkv"] = jnp.concatenate([sp.pop("wq"), sp.pop("wk"), sp.pop("wv")],
                                 axis=-1)
    sp["lnb_g"] = jnp.stack([blk["ln_g"] for blk in params["blocks"]], axis=0)
    sp["lnb_b"] = jnp.stack([blk["ln_b"] for blk in params["blocks"]], axis=0)
    sp["hw1"] = jnp.stack([h["w1"] for h in params["heads"]], axis=0)
    sp["hb1"] = jnp.stack([h["b1"] for h in params["heads"]], axis=0)
    sp["hw2"] = jnp.stack([h["w2"] for h in params["heads"]], axis=0)
    sp["hb2"] = jnp.stack([h["b2"] for h in params["heads"]], axis=0)
    # Final logit layer lane-padded to 128 (cols 1..127 are zero) so the store
    # is lane-dense; column 0 carries the real logit.
    sp["hw3"] = jnp.stack([jnp.pad(h["w3"], ((0, 0), (0, LOGIT_PAD - 1)))
                           for h in params["heads"]], axis=0)
    sp["hb3"] = jnp.stack([jnp.pad(h["b3"], ((0, 0), (0, LOGIT_PAD - 1)))
                           for h in params["heads"]], axis=0)
    return sp


# ----------------------------- forward ---------------------------------------
def slf_attn_ensemble_forward(stacked_params, input_data):
    """Eval-mode forward of SlfAttnEnsembelModel (dropout = identity)."""
    esm_emb = input_data["batch_tokens"]                 # [B, L, D]
    logits = ensemble_forward_pallas(esm_emb, stacked_params)   # [3, B]
    pred_output = (logits[0] + logits[1] + logits[2]) / 3.0
    gt = input_data["label"]                             # mode == 'cls'
    return dict(model_outputs=pred_output, labels=gt)
    # TODO(synk): training-path loss_evaluator (build_loss_evaluator) is external
    # to the module and not reproduced; eval path is implemented.


# ----------------------------- main -------------------------------------------
if __name__ == "__main__":
    key = jax.random.PRNGKey(0)
    k_param, k_x, k_lbl = jax.random.split(key, 3)

    params = make_params(k_param)
    stacked = stack_params(params)
    x = jax.random.normal(k_x, (B, L, D_MODEL), jnp.float32)
    label = jax.random.bernoulli(k_lbl, 0.5, (B,)).astype(jnp.float32)
    input_data = {"batch_tokens": x, "label": label}

    out = slf_attn_ensemble_forward(stacked, input_data)
    jax.block_until_ready(out["model_outputs"])
    assert out["model_outputs"].shape == (B,)
    print("KERNEL_OK")
</pallas_src>

<mosaic_0001>
module attributes {stable_mosaic.version = 11 : i64} {
  func.func @_ensemble_block_kernel(%arg0: i32, %arg1: memref<16x32xf32, #tpu.memory_space<vmem>>, %arg2: memref<1x1x32xf32, #tpu.memory_space<vmem>>, %arg3: memref<1x1x32xf32, #tpu.memory_space<vmem>>, %arg4: memref<1x3x32x384xf32, #tpu.memory_space<vmem>>, %arg5: memref<1x3x128x32xf32, #tpu.memory_space<vmem>>, %arg6: memref<1x3x1x32xf32, #tpu.memory_space<vmem>>, %arg7: memref<1x3x1x32xf32, #tpu.memory_space<vmem>>, %arg8: memref<1x3x32x64xf32, #tpu.memory_space<vmem>>, %arg9: memref<1x3x1x64xf32, #tpu.memory_space<vmem>>, %arg10: memref<1x3x64x32xf32, #tpu.memory_space<vmem>>, %arg11: memref<1x3x1x32xf32, #tpu.memory_space<vmem>>, %arg12: memref<1x3x1x32xf32, #tpu.memory_space<vmem>>, %arg13: memref<1x3x1x32xf32, #tpu.memory_space<vmem>>, %arg14: memref<1x32x256xf32, #tpu.memory_space<vmem>>, %arg15: memref<1x1x256xf32, #tpu.memory_space<vmem>>, %arg16: memref<1x256x64xf32, #tpu.memory_space<vmem>>, %arg17: memref<1x1x64xf32, #tpu.memory_space<vmem>>, %arg18: memref<1x64x128xf32, #tpu.memory_space<vmem>>, %arg19: memref<1x1x128xf32, #tpu.memory_space<vmem>>, %arg20: memref<1x2x128xf32, #tpu.memory_space<vmem>>, %arg21: memref<16x32xf32, #tpu.memory_space<vmem>>) attributes {dimension_semantics = [#tpu.dimension_semantics<parallel>], iteration_bounds = array<i64: 3>, scalar_prefetch = 0 : i64, scratch_operands = 1 : i64, tpu.core_type = #tpu.core_type<tc>, window_params = [{pipeline_mode = #tpu.pipeline_mode<synchronous>, transform_indices = @transform_0, window_bounds = array<i64: 16, 32>}, {transform_indices = @transform_1, window_bounds = array<i64: 1, 1, 32>}, {transform_indices = @transform_2, window_bounds = array<i64: 1, 1, 32>}, {transform_indices = @transform_3, window_bounds = array<i64: 1, 3, 32, 384>}, {transform_indices = @transform_4, window_bounds = array<i64: 1, 3, 128, 32>}, {transform_indices = @transform_5, window_bounds = array<i64: 1, 3, 1, 32>}, {transform_indices = @transform_6, window_bounds = array<i64: 1, 3, 1, 32>}, {transform_indices = @transform_7, window_bounds = array<i64: 1, 3, 32, 64>}, {transform_indices = @transform_8, window_bounds = array<i64: 1, 3, 1, 64>}, {transform_indices = @transform_9, window_bounds = array<i64: 1, 3, 64, 32>}, {transform_indices = @transform_10, window_bounds = array<i64: 1, 3, 1, 32>}, {transform_indices = @transform_11, window_bounds = array<i64: 1, 3, 1, 32>}, {transform_indices = @transform_12, window_bounds = array<i64: 1, 3, 1, 32>}, {transform_indices = @transform_13, window_bounds = array<i64: 1, 32, 256>}, {transform_indices = @transform_14, window_bounds = array<i64: 1, 1, 256>}, {transform_indices = @transform_15, window_bounds = array<i64: 1, 256, 64>}, {transform_indices = @transform_16, window_bounds = array<i64: 1, 1, 64>}, {transform_indices = @transform_17, window_bounds = array<i64: 1, 64, 128>}, {transform_indices = @transform_18, window_bounds = array<i64: 1, 1, 128>}, {transform_indices = @transform_19, window_bounds = array<i64: 1, 2, 128>}]} {
    %c0 = arith.constant 0 : index
    %c0_0 = arith.constant 0 : index
    %0 = vector.load %arg1[%c0, %c0_0] : memref<16x32xf32, #tpu.memory_space<vmem>>, vector<16x32xf32>
    %c0_1 = arith.constant 0 : index
    %c0_2 = arith.constant 0 : index
    %c0_3 = arith.constant 0 : index
    %1 = vector.load %arg2[%c0_1, %c0_2, %c0_3] : memref<1x1x32xf32, #tpu.memory_space<vmem>>, vector<1x1x32xf32>
    %2 = vector.shape_cast %1 : vector<1x1x32xf32> to vector<1x32xf32>
    %c0_4 = arith.constant 0 : index
    %c0_5 = arith.constant 0 : index
    %c0_6 = arith.constant 0 : index
    %3 = vector.load %arg3[%c0_4, %c0_5, %c0_6] : memref<1x1x32xf32, #tpu.memory_space<vmem>>, vector<1x1x32xf32>
    %4 = vector.shape_cast %3 : vector<1x1x32xf32> to vector<1x32xf32>
    %cst = arith.constant dense<0.000000e+00> : vector<16xf32>
    %5 = vector.multi_reduction <add>, %0, %cst [1] : vector<16x32xf32> to vector<16xf32>
    %6 = vector.shape_cast %5 : vector<16xf32> to vector<16x1xf32>
    %cst_7 = arith.constant 3.200000e+01 : f32
    %7 = vector.broadcast %cst_7 : f32 to vector<16x1xf32>
    %8 = arith.divf %6, %7 : vector<16x1xf32>
    %9 = arith.mulf %0, %0 : vector<16x32xf32>
    %cst_8 = arith.constant dense<0.000000e+00> : vector<16xf32>
    %10 = vector.multi_reduction <add>, %9, %cst_8 [1] : vector<16x32xf32> to vector<16xf32>
    %11 = vector.shape_cast %10 : vector<16xf32> to vector<16x1xf32>
    %cst_9 = arith.constant 3.200000e+01 : f32
    %12 = vector.broadcast %cst_9 : f32 to vector<16x1xf32>
    %13 = arith.divf %11, %12 : vector<16x1xf32>
    %14 = arith.mulf %8, %8 : vector<16x1xf32>
    %15 = arith.subf %13, %14 : vector<16x1xf32>
    %16 = vector.broadcast %8 : vector<16x1xf32> to vector<16x32xf32>
    %17 = arith.subf %0, %16 : vector<16x32xf32>
    %cst_10 = arith.constant 9.99999997E-7 : f32
    %18 = vector.broadcast %cst_10 : f32 to vector<16x1xf32>
    %19 = arith.addf %15, %18 : vector<16x1xf32>
    %20 = math.rsqrt %19 : vector<16x1xf32>
    %21 = vector.broadcast %20 : vector<16x1xf32> to vector<16x32xf32>
    %22 = arith.mulf %17, %21 : vector<16x32xf32>
    %23 = vector.broadcast %2 : vector<1x32xf32> to vector<16x32xf32>
    %24 = arith.mulf %22, %23 : vector<16x32xf32>
    %25 = vector.broadcast %4 : vector<1x32xf32> to vector<16x32xf32>
    %26 = arith.addf %24, %25 : vector<16x32xf32>
    %c0_11 = arith.constant 0 : index
    %c0_12 = arith.constant 0 : index
    %27 = vector.load %arg21[%c0_11, %c0_12] : memref<16x32xf32, #tpu.memory_space<vmem>>, vector<16x32xf32>
    tpu.vector_store %arg21[%c0_11, %c0_12], %26 {strides = array<i32>} : memref<16x32xf32, #tpu.memory_space<vmem>>, vector<16x32xf32>,
    %c0_i32 = arith.constant 0 : i32
    %28 = arith.cmpi sge, %arg0, %c0_i32 : i32
    %29 = arith.extui %28 : i1 to i32
    %c0_i32_13 = arith.constant 0 : i32
    %30 = arith.cmpi ne, %29, %c0_i32_13 : i32
    scf.if %30 {
      %c0_44 = arith.constant 0 : index
      %c0_45 = arith.constant 0 : index
      %69 = vector.load %arg21[%c0_44, %c0_45] : memref<16x32xf32, #tpu.memory_space<vmem>>, vector<16x32xf32>
      %c0_46 = arith.constant 0 : index
      %c0_47 = arith.constant 0 : index
      %c0_48 = arith.constant 0 : index
      %c0_49 = arith.constant 0 : index
      %70 = vector.load %arg4[%c0_46, %c0_47, %c0_48, %c0_49] : memref<1x3x32x384xf32, #tpu.memory_space<vmem>>, vector<1x1x32x384xf32>
      %71 = vector.shape_cast %70 : vector<1x1x32x384xf32> to vector<32x384xf32>
      %cst_50 = arith.constant dense<0.000000e+00> : vector<16x384xf32>
      %72 = tpu.matmul %69, %71, %cst_50 {dimension_numbers = #tpu.dot_dimension_numbers<[1], [0], [0], [1], [0, 0, 1, 1], [], []>} : vector<16x32xf32>, vector<32x384xf32>, vector<16x384xf32> -> vector<16x384xf32>
      %73 = vector.extract_strided_slice %72 {offsets = [0, 0], sizes = [16, 128], strides = [1, 1]} : vector<16x384xf32> to vector<16x128xf32>
      %74 = vector.shape_cast %73 : vector<16x128xf32> to vector<2x8x128xf32>
      %75 = vector.extract_strided_slice %72 {offsets = [0, 128], sizes = [16, 128], strides = [1, 1]} : vector<16x384xf32> to vector<16x128xf32>
      %76 = vector.shape_cast %75 : vector<16x128xf32> to vector<2x8x128xf32>
      %77 = vector.extract_strided_slice %72 {offsets = [0, 256], sizes = [16, 128], strides = [1, 1]} : vector<16x384xf32> to vector<16x128xf32>
      %78 = vector.shape_cast %77 : vector<16x128xf32> to vector<2x8x128xf32>
      %cst_51 = arith.constant 0.000000e+00 : f32
      %79 = vector.broadcast %cst_51 : f32 to vector<16x32xf32>
      %80 = vector.extract_strided_slice %74 {offsets = [0, 0, 0], sizes = [2, 8, 32], strides = [1, 1, 1]} : vector<2x8x128xf32> to vector<2x8x32xf32>
      %cst_52 = arith.constant 0.176776692 : f32
      %81 = vector.broadcast %cst_52 : f32 to vector<2x8x32xf32>
      %82 = arith.mulf %80, %81 : vector<2x8x32xf32>
      %83 = vector.extract_strided_slice %76 {offsets = [0, 0, 0], sizes = [2, 8, 32], strides = [1, 1, 1]} : vector<2x8x128xf32> to vector<2x8x32xf32>
      %84 = vector.extract_strided_slice %78 {offsets = [0, 0, 0], sizes = [2, 8, 32], strides = [1, 1, 1]} : vector<2x8x128xf32> to vector<2x8x32xf32>
      "tpu.trace_start"() <{level = 10 : i32, message = "bld,bmd->blm"}> : () -> ()
      %cst_53 = arith.constant dense<0.000000e+00> : vector<2x8x8xf32>
      %85 = tpu.matmul %82, %83, %cst_53 {dimension_numbers = #tpu.dot_dimension_numbers<[2], [2], [1], [1], [0, 0, 0, 1, 1, 1], [0], [0]>} : vector<2x8x32xf32>, vector<2x8x32xf32>, vector<2x8x8xf32> -> vector<2x8x8xf32>
      "tpu.trace_stop"() : () -> ()
      %cst_54 = arith.constant dense<0xFF800000> : vector<2x8xf32>
      %86 = vector.multi_reduction <maximumf>, %85, %cst_54 [2] : vector<2x8x8xf32> to vector<2x8xf32>
      %87 = vector.shape_cast %86 : vector<2x8xf32> to vector<2x8x1xf32>
      %88 = vector.broadcast %87 : vector<2x8x1xf32> to vector<2x8x8xf32>
      %89 = arith.subf %85, %88 : vector<2x8x8xf32>
      %90 = math.exp %89 : vector<2x8x8xf32>
      %cst_55 = arith.constant dense<0.000000e+00> : vector<2x8xf32>
      %91 = vector.multi_reduction <add>, %90, %cst_55 [2] : vector<2x8x8xf32> to vector<2x8xf32>
      %92 = vector.shape_cast %91 : vector<2x8xf32> to vector<2x8x1xf32>
      %93 = tpu.reciprocal %92 {approx = true} : vector<2x8x1xf32> -> vector<2x8x1xf32>
      %94 = vector.broadcast %93 : vector<2x8x1xf32> to vector<2x8x8xf32>
      %95 = arith.mulf %90, %94 : vector<2x8x8xf32>
      "tpu.trace_start"() <{level = 10 : i32, message = "blm,bmd->bld"}> : () -> ()
      %cst_56 = arith.constant dense<0.000000e+00> : vector<2x8x32xf32>
      %96 = tpu.matmul %95, %84, %cst_56 {dimension_numbers = #tpu.dot_dimension_numbers<[2], [1], [1], [2], [0, 0, 0, 1, 1, 2], [0], [0]>} : vector<2x8x8xf32>, vector<2x8x32xf32>, vector<2x8x32xf32> -> vector<2x8x32xf32>
      "tpu.trace_stop"() : () -> ()
      %97 = vector.shape_cast %96 : vector<2x8x32xf32> to vector<16x32xf32>
      %c0_57 = arith.constant 0 : index
      %c0_58 = arith.constant 0 : index
      %c0_59 = arith.constant 0 : index
      %c0_60 = arith.constant 0 : index
      %98 = vector.load %arg5[%c0_57, %c0_58, %c0_59, %c0_60] : memref<1x3x128x32xf32, #tpu.memory_space<vmem>>, vector<1x1x32x32xf32>
      %99 = vector.shape_cast %98 : vector<1x1x32x32xf32> to vector<32x32xf32>
      %cst_61 = arith.constant dense<0.000000e+00> : vector<16x32xf32>
      %100 = tpu.matmul %97, %99, %cst_61 {dimension_numbers = #tpu.dot_dimension_numbers<[1], [0], [0], [1], [0, 0, 1, 1], [], []>} : vector<16x32xf32>, vector<32x32xf32>, vector<16x32xf32> -> vector<16x32xf32>
      %101 = arith.addf %79, %100 : vector<16x32xf32>
      %102 = vector.extract_strided_slice %74 {offsets = [0, 0, 32], sizes = [2, 8, 32], strides = [1, 1, 1]} : vector<2x8x128xf32> to vector<2x8x32xf32>
      %cst_62 = arith.constant 0.176776692 : f32
      %103 = vector.broadcast %cst_62 : f32 to vector<2x8x32xf32>
      %104 = arith.mulf %102, %103 : vector<2x8x32xf32>
      %105 = vector.extract_strided_slice %76 {offsets = [0, 0, 32], sizes = [2, 8, 32], strides = [1, 1, 1]} : vector<2x8x128xf32> to vector<2x8x32xf32>
      %106 = vector.extract_strided_slice %78 {offsets = [0, 0, 32], sizes = [2, 8, 32], strides = [1, 1, 1]} : vector<2x8x128xf32> to vector<2x8x32xf32>
      "tpu.trace_start"() <{level = 10 : i32, message = "bld,bmd->blm"}> : () -> ()
      %cst_63 = arith.constant dense<0.000000e+00> : vector<2x8x8xf32>
      %107 = tpu.matmul %104, %105, %cst_63 {dimension_numbers = #tpu.dot_dimension_numbers<[2], [2], [1], [1], [0, 0, 0, 1, 1, 1], [0], [0]>} : vector<2x8x32xf32>, vector<2x8x32xf32>, vector<2x8x8xf32> -> vector<2x8x8xf32>
      "tpu.trace_stop"() : () -> ()
      %cst_64 = arith.constant dense<0xFF800000> : vector<2x8xf32>
      %108 = vector.multi_reduction <maximumf>, %107, %cst_64 [2] : vector<2x8x8xf32> to vector<2x8xf32>
      %109 = vector.shape_cast %108 : vector<2x8xf32> to vector<2x8x1xf32>
      %110 = vector.broadcast %109 : vector<2x8x1xf32> to vector<2x8x8xf32>
      %111 = arith.subf %107, %110 : vector<2x8x8xf32>
      %112 = math.exp %111 : vector<2x8x8xf32>
      %cst_65 = arith.constant dense<0.000000e+00> : vector<2x8xf32>
      %113 = vector.multi_reduction <add>, %112, %cst_65 [2] : vector<2x8x8xf32> to vector<2x8xf32>
      %114 = vector.shape_cast %113 : vector<2x8xf32> to vector<2x8x1xf32>
      %115 = tpu.reciprocal %114 {approx = true} : vector<2x8x1xf32> -> vector<2x8x1xf32>
      %116 = vector.broadcast %115 : vector<2x8x1xf32> to vector<2x8x8xf32>
      %117 = arith.mulf %112, %116 : vector<2x8x8xf32>
      "tpu.trace_start"() <{level = 10 : i32, message = "blm,bmd->bld"}> : () -> ()
      %cst_66 = arith.constant dense<0.000000e+00> : vector<2x8x32xf32>
      %118 = tpu.matmul %117, %106, %cst_66 {dimension_numbers = #tpu.dot_dimension_numbers<[2], [1], [1], [2], [0, 0, 0, 1, 1, 2], [0], [0]>} : vector<2x8x8xf32>, vector<2x8x32xf32>, vector<2x8x32xf32> -> vector<2x8x32xf32>
      "tpu.trace_stop"() : () -> ()
      %119 = vector.shape_cast %118 : vector<2x8x32xf32> to vector<16x32xf32>
      %c0_67 = arith.constant 0 : index
      %c0_68 = arith.constant 0 : index
      %c32 = arith.constant 32 : index
      %c0_69 = arith.constant 0 : index
      %120 = vector.load %arg5[%c0_67, %c0_68, %c32, %c0_69] : memref<1x3x128x32xf32, #tpu.memory_space<vmem>>, vector<1x1x32x32xf32>
      %121 = vector.shape_cast %120 : vector<1x1x32x32xf32> to vector<32x32xf32>
      %cst_70 = arith.constant dense<0.000000e+00> : vector<16x32xf32>
      %122 = tpu.matmul %119, %121, %cst_70 {dimension_numbers = #tpu.dot_dimension_numbers<[1], [0], [0], [1], [0, 0, 1, 1], [], []>} : vector<16x32xf32>, vector<32x32xf32>, vector<16x32xf32> -> vector<16x32xf32>
      %123 = arith.addf %101, %122 : vector<16x32xf32>
      %124 = vector.extract_strided_slice %74 {offsets = [0, 0, 64], sizes = [2, 8, 32], strides = [1, 1, 1]} : vector<2x8x128xf32> to vector<2x8x32xf32>
      %cst_71 = arith.constant 0.176776692 : f32
      %125 = vector.broadcast %cst_71 : f32 to vector<2x8x32xf32>
      %126 = arith.mulf %124, %125 : vector<2x8x32xf32>
      %127 = vector.extract_strided_slice %76 {offsets = [0, 0, 64], sizes = [2, 8, 32], strides = [1, 1, 1]} : vector<2x8x128xf32> to vector<2x8x32xf32>
      %128 = vector.extract_strided_slice %78 {offsets = [0, 0, 64], sizes = [2, 8, 32], strides = [1, 1, 1]} : vector<2x8x128xf32> to vector<2x8x32xf32>
      "tpu.trace_start"() <{level = 10 : i32, message = "bld,bmd->blm"}> : () -> ()
      %cst_72 = arith.constant dense<0.000000e+00> : vector<2x8x8xf32>
      %129 = tpu.matmul %126, %127, %cst_72 {dimension_numbers = #tpu.dot_dimension_numbers<[2], [2], [1], [1], [0, 0, 0, 1, 1, 1], [0], [0]>} : vector<2x8x32xf32>, vector<2x8x32xf32>, vector<2x8x8xf32> -> vector<2x8x8xf32>
      "tpu.trace_stop"() : () -> ()
      %cst_73 = arith.constant dense<0xFF800000> : vector<2x8xf32>
      %130 = vector.multi_reduction <maximumf>, %129, %cst_73 [2] : vector<2x8x8xf32> to vector<2x8xf32>
      %131 = vector.shape_cast %130 : vector<2x8xf32> to vector<2x8x1xf32>
      %132 = vector.broadcast %131 : vector<2x8x1xf32> to vector<2x8x8xf32>
      %133 = arith.subf %129, %132 : vector<2x8x8xf32>
      %134 = math.exp %133 : vector<2x8x8xf32>
      %cst_74 = arith.constant dense<0.000000e+00> : vector<2x8xf32>
      %135 = vector.multi_reduction <add>, %134, %cst_74 [2] : vector<2x8x8xf32> to vector<2x8xf32>
      %136 = vector.shape_cast %135 : vector<2x8xf32> to vector<2x8x1xf32>
      %137 = tpu.reciprocal %136 {approx = true} : vector<2x8x1xf32> -> vector<2x8x1xf32>
      %138 = vector.broadcast %137 : vector<2x8x1xf32> to vector<2x8x8xf32>
      %139 = arith.mulf %134, %138 : vector<2x8x8xf32>
      "tpu.trace_start"() <{level = 10 : i32, message = "blm,bmd->bld"}> : () -> ()
      %cst_75 = arith.constant dense<0.000000e+00> : vector<2x8x32xf32>
      %140 = tpu.matmul %139, %128, %cst_75 {dimension_numbers = #tpu.dot_dimension_numbers<[2], [1], [1], [2], [0, 0, 0, 1, 1, 2], [0], [0]>} : vector<2x8x8xf32>, vector<2x8x32xf32>, vector<2x8x32xf32> -> vector<2x8x32xf32>
      "tpu.trace_stop"() : () -> ()
      %141 = vector.shape_cast %140 : vector<2x8x32xf32> to vector<16x32xf32>
      %c0_76 = arith.constant 0 : index
      %c0_77 = arith.constant 0 : index
      %c64 = arith.constant 64 : index
      %c0_78 = arith.constant 0 : index
      %142 = vector.load %arg5[%c0_76, %c0_77, %c64, %c0_78] : memref<1x3x128x32xf32, #tpu.memory_space<vmem>>, vector<1x1x32x32xf32>
      %143 = vector.shape_cast %142 : vector<1x1x32x32xf32> to vector<32x32xf32>
      %cst_79 = arith.constant dense<0.000000e+00> : vector<16x32xf32>
      %144 = tpu.matmul %141, %143, %cst_79 {dimension_numbers = #tpu.dot_dimension_numbers<[1], [0], [0], [1], [0, 0, 1, 1], [], []>} : vector<16x32xf32>, vector<32x32xf32>, vector<16x32xf32> -> vector<16x32xf32>
      %145 = arith.addf %123, %144 : vector<16x32xf32>
      %146 = vector.extract_strided_slice %74 {offsets = [0, 0, 96], sizes = [2, 8, 32], strides = [1, 1, 1]} : vector<2x8x128xf32> to vector<2x8x32xf32>
      %cst_80 = arith.constant 0.176776692 : f32
      %147 = vector.broadcast %cst_80 : f32 to vector<2x8x32xf32>
      %148 = arith.mulf %146, %147 : vector<2x8x32xf32>
      %149 = vector.extract_strided_slice %76 {offsets = [0, 0, 96], sizes = [2, 8, 32], strides = [1, 1, 1]} : vector<2x8x128xf32> to vector<2x8x32xf32>
      %150 = vector.extract_strided_slice %78 {offsets = [0, 0, 96], sizes = [2, 8, 32], strides = [1, 1, 1]} : vector<2x8x128xf32> to vector<2x8x32xf32>
      "tpu.trace_start"() <{level = 10 : i32, message = "bld,bmd->blm"}> : () -> ()
      %cst_81 = arith.constant dense<0.000000e+00> : vector<2x8x8xf32>
      %151 = tpu.matmul %148, %149, %cst_81 {dimension_numbers = #tpu.dot_dimension_numbers<[2], [2], [1], [1], [0, 0, 0, 1, 1, 1], [0], [0]>} : vector<2x8x32xf32>, vector<2x8x32xf32>, vector<2x8x8xf32> -> vector<2x8x8xf32>
      "tpu.trace_stop"() : () -> ()
      %cst_82 = arith.constant dense<0xFF800000> : vector<2x8xf32>
      %152 = vector.multi_reduction <maximumf>, %151, %cst_82 [2] : vector<2x8x8xf32> to vector<2x8xf32>
      %153 = vector.shape_cast %152 : vector<2x8xf32> to vector<2x8x1xf32>
      %154 = vector.broadcast %153 : vector<2x8x1xf32> to vector<2x8x8xf32>
      %155 = arith.subf %151, %154 : vector<2x8x8xf32>
      %156 = math.exp %155 : vector<2x8x8xf32>
      %cst_83 = arith.constant dense<0.000000e+00> : vector<2x8xf32>
      %157 = vector.multi_reduction <add>, %156, %cst_83 [2] : vector<2x8x8xf32> to vector<2x8xf32>
      %158 = vector.shape_cast %157 : vector<2x8xf32> to vector<2x8x1xf32>
      %159 = tpu.reciprocal %158 {approx = true} : vector<2x8x1xf32> -> vector<2x8x1xf32>
      %160 = vector.broadcast %159 : vector<2x8x1xf32> to vector<2x8x8xf32>
      %161 = arith.mulf %156, %160 : vector<2x8x8xf32>
      "tpu.trace_start"() <{level = 10 : i32, message = "blm,bmd->bld"}> : () -> ()
      %cst_84 = arith.constant dense<0.000000e+00> : vector<2x8x32xf32>
      %162 = tpu.matmul %161, %150, %cst_84 {dimension_numbers = #tpu.dot_dimension_numbers<[2], [1], [1], [2], [0, 0, 0, 1, 1, 2], [0], [0]>} : vector<2x8x8xf32>, vector<2x8x32xf32>, vector<2x8x32xf32> -> vector<2x8x32xf32>
      "tpu.trace_stop"() : () -> ()
      %163 = vector.shape_cast %162 : vector<2x8x32xf32> to vector<16x32xf32>
      %c0_85 = arith.constant 0 : index
      %c0_86 = arith.constant 0 : index
      %c96 = arith.constant 96 : index
      %c0_87 = arith.constant 0 : index
      %164 = vector.load %arg5[%c0_85, %c0_86, %c96, %c0_87] : memref<1x3x128x32xf32, #tpu.memory_space<vmem>>, vector<1x1x32x32xf32>
      %165 = vector.shape_cast %164 : vector<1x1x32x32xf32> to vector<32x32xf32>
      %cst_88 = arith.constant dense<0.000000e+00> : vector<16x32xf32>
      %166 = tpu.matmul %163, %165, %cst_88 {dimension_numbers = #tpu.dot_dimension_numbers<[1], [0], [0], [1], [0, 0, 1, 1], [], []>} : vector<16x32xf32>, vector<32x32xf32>, vector<16x32xf32> -> vector<16x32xf32>
      %167 = arith.addf %145, %166 : vector<16x32xf32>
      %168 = arith.addf %167, %69 : vector<16x32xf32>
      %c0_89 = arith.constant 0 : index
      %c0_90 = arith.constant 0 : index
      %c0_91 = arith.constant 0 : index
      %c0_92 = arith.constant 0 : index
      %169 = vector.load %arg6[%c0_89, %c0_90, %c0_91, %c0_92] : memref<1x3x1x32xf32, #tpu.memory_space<vmem>>, vector<1x1x1x32xf32>
      %170 = vector.shape_cast %169 : vector<1x1x1x32xf32> to vector<1x32xf32>
      %c0_93 = arith.constant 0 : index
      %c0_94 = arith.constant 0 : index
      %c0_95 = arith.constant 0 : index
      %c0_96 = arith.constant 0 : index
      %171 = vector.load %arg7[%c0_93, %c0_94, %c0_95, %c0_96] : memref<1x3x1x32xf32, #tpu.memory_space<vmem>>, vector<1x1x1x32xf32>
      %172 = vector.shape_cast %171 : vector<1x1x1x32xf32> to vector<1x32xf32>
      %cst_97 = arith.constant dense<0.000000e+00> : vector<16xf32>
      %173 = vector.multi_reduction <add>, %168, %cst_97 [1] : vector<16x32xf32> to vector<16xf32>
      %174 = vector.shape_cast %173 : vector<16xf32> to vector<16x1xf32>
      %cst_98 = arith.constant 3.200000e+01 : f32
      %175 = vector.broadcast %cst_98 : f32 to vector<16x1xf32>
      %176 = arith.divf %174, %175 : vector<16x1xf32>
      %177 = arith.mulf %168, %168 : vector<16x32xf32>
      %cst_99 = arith.constant dense<0.000000e+00> : vector<16xf32>
      %178 = vector.multi_reduction <add>, %177, %cst_99 [1] : vector<16x32xf32> to vector<16xf32>
      %179 = vector.shape_cast %178 : vector<16xf32> to vector<16x1xf32>
      %cst_100 = arith.constant 3.200000e+01 : f32
      %180 = vector.broadcast %cst_100 : f32 to vector<16x1xf32>
      %181 = arith.divf %179, %180 : vector<16x1xf32>
      %182 = arith.mulf %176, %176 : vector<16x1xf32>
      %183 = arith.subf %181, %182 : vector<16x1xf32>
      %184 = vector.broadcast %176 : vector<16x1xf32> to vector<16x32xf32>
      %185 = arith.subf %168, %184 : vector<16x32xf32>
      %cst_101 = arith.constant 9.99999997E-7 : f32
      %186 = vector.broadcast %cst_101 : f32 to vector<16x1xf32>
      %187 = arith.addf %183, %186 : vector<16x1xf32>
      %188 = math.rsqrt %187 : vector<16x1xf32>
      %189 = vector.broadcast %188 : vector<16x1xf32> to vector<16x32xf32>
      %190 = arith.mulf %185, %189 : vector<16x32xf32>
      %191 = vector.broadcast %170 : vector<1x32xf32> to vector<16x32xf32>
      %192 = arith.mulf %190, %191 : vector<16x32xf32>
      %193 = vector.broadcast %172 : vector<1x32xf32> to vector<16x32xf32>
      %194 = arith.addf %192, %193 : vector<16x32xf32>
      %c0_102 = arith.constant 0 : index
      %c0_103 = arith.constant 0 : index
      %c0_104 = arith.constant 0 : index
      %c0_105 = arith.constant 0 : index
      %195 = vector.load %arg8[%c0_102, %c0_103, %c0_104, %c0_105] : memref<1x3x32x64xf32, #tpu.memory_space<vmem>>, vector<1x1x32x64xf32>
      %196 = vector.shape_cast %195 : vector<1x1x32x64xf32> to vector<32x64xf32>
      %cst_106 = arith.constant dense<0.000000e+00> : vector<16x64xf32>
      %197 = tpu.matmul %194, %196, %cst_106 {dimension_numbers = #tpu.dot_dimension_numbers<[1], [0], [0], [1], [0, 0, 1, 1], [], []>} : vector<16x32xf32>, vector<32x64xf32>, vector<16x64xf32> -> vector<16x64xf32>
      %c0_107 = arith.constant 0 : index
      %c0_108 = arith.constant 0 : index
      %c0_109 = arith.constant 0 : index
      %c0_110 = arith.constant 0 : index
      %198 = vector.load %arg9[%c0_107, %c0_108, %c0_109, %c0_110] : memref<1x3x1x64xf32, #tpu.memory_space<vmem>>, vector<1x1x1x64xf32>
      %199 = vector.shape_cast %198 : vector<1x1x1x64xf32> to vector<1x64xf32>
      %200 = vector.broadcast %199 : vector<1x64xf32> to vector<16x64xf32>
      %201 = arith.addf %197, %200 : vector<16x64xf32>
      %cst_111 = arith.constant 0.000000e+00 : f32
      %202 = vector.broadcast %cst_111 : f32 to vector<16x64xf32>
      %203 = arith.maximumf %201, %202 : vector<16x64xf32>
      %c0_112 = arith.constant 0 : index
      %c0_113 = arith.constant 0 : index
      %c0_114 = arith.constant 0 : index
      %c0_115 = arith.constant 0 : index
      %204 = vector.load %arg10[%c0_112, %c0_113, %c0_114, %c0_115] : memref<1x3x64x32xf32, #tpu.memory_space<vmem>>, vector<1x1x64x32xf32>
      %205 = vector.shape_cast %204 : vector<1x1x64x32xf32> to vector<64x32xf32>
      %cst_116 = arith.constant dense<0.000000e+00> : vector<16x32xf32>
      %206 = tpu.matmul %203, %205, %cst_116 {dimension_numbers = #tpu.dot_dimension_numbers<[1], [0], [0], [1], [0, 0, 1, 1], [], []>} : vector<16x64xf32>, vector<64x32xf32>, vector<16x32xf32> -> vector<16x32xf32>
      %c0_117 = arith.constant 0 : index
      %c0_118 = arith.constant 0 : index
      %c0_119 = arith.constant 0 : index
      %c0_120 = arith.constant 0 : index
      %207 = vector.load %arg11[%c0_117, %c0_118, %c0_119, %c0_120] : memref<1x3x1x32xf32, #tpu.memory_space<vmem>>, vector<1x1x1x32xf32>
      %208 = vector.shape_cast %207 : vector<1x1x1x32xf32> to vector<1x32xf32>
      %209 = vector.broadcast %208 : vector<1x32xf32> to vector<16x32xf32>
      %210 = arith.addf %206, %209 : vector<16x32xf32>
      %211 = arith.addf %210, %194 : vector<16x32xf32>
      %c0_121 = arith.constant 0 : index
      %c0_122 = arith.constant 0 : index
      %c0_123 = arith.constant 0 : index
      %c0_124 = arith.constant 0 : index
      %212 = vector.load %arg12[%c0_121, %c0_122, %c0_123, %c0_124] : memref<1x3x1x32xf32, #tpu.memory_space<vmem>>, vector<1x1x1x32xf32>
      %213 = vector.shape_cast %212 : vector<1x1x1x32xf32> to vector<1x32xf32>
      %c0_125 = arith.constant 0 : index
      %c0_126 = arith.constant 0 : index
      %c0_127 = arith.constant 0 : index
      %c0_128 = arith.constant 0 : index
      %214 = vector.load %arg13[%c0_125, %c0_126, %c0_127, %c0_128] : memref<1x3x1x32xf32, #tpu.memory_space<vmem>>, vector<1x1x1x32xf32>
      %215 = vector.shape_cast %214 : vector<1x1x1x32xf32> to vector<1x32xf32>
      %cst_129 = arith.constant dense<0.000000e+00> : vector<16xf32>
      %216 = vector.multi_reduction <add>, %211, %cst_129 [1] : vector<16x32xf32> to vector<16xf32>
      %217 = vector.shape_cast %216 : vector<16xf32> to vector<16x1xf32>
      %cst_130 = arith.constant 3.200000e+01 : f32
      %218 = vector.broadcast %cst_130 : f32 to vector<16x1xf32>
      %219 = arith.divf %217, %218 : vector<16x1xf32>
      %220 = arith.mulf %211, %211 : vector<16x32xf32>
      %cst_131 = arith.constant dense<0.000000e+00> : vector<16xf32>
      %221 = vector.multi_reduction <add>, %220, %cst_131 [1] : vector<16x32xf32> to vector<16xf32>
      %222 = vector.shape_cast %221 : vector<16xf32> to vector<16x1xf32>
      %cst_132 = arith.constant 3.200000e+01 : f32
      %223 = vector.broadcast %cst_132 : f32 to vector<16x1xf32>
      %224 = arith.divf %222, %223 : vector<16x1xf32>
      %225 = arith.mulf %219, %219 : vector<16x1xf32>
      %226 = arith.subf %224, %225 : vector<16x1xf32>
      %227 = vector.broadcast %219 : vector<16x1xf32> to vector<16x32xf32>
      %228 = arith.subf %211, %227 : vector<16x32xf32>
      %cst_133 = arith.constant 9.99999997E-7 : f32
      %229 = vector.broadcast %cst_133 : f32 to vector<16x1xf32>
      %230 = arith.addf %226, %229 : vector<16x1xf32>
      %231 = math.rsqrt %230 : vector<16x1xf32>
      %232 = vector.broadcast %231 : vector<16x1xf32> to vector<16x32xf32>
      %233 = arith.mulf %228, %232 : vector<16x32xf32>
      %234 = vector.broadcast %213 : vector<1x32xf32> to vector<16x32xf32>
      %235 = arith.mulf %233, %234 : vector<16x32xf32>
      %236 = vector.broadcast %215 : vector<1x32xf32> to vector<16x32xf32>
      %237 = arith.addf %235, %236 : vector<16x32xf32>
      %c0_134 = arith.constant 0 : index
      %c0_135 = arith.constant 0 : index
      %238 = vector.load %arg21[%c0_134, %c0_135] : memref<16x32xf32, #tpu.memory_space<vmem>>, vector<16x32xf32>
      tpu.vector_store %arg21[%c0_134, %c0_135], %237 {strides = array<i32>} : memref<16x32xf32, #tpu.memory_space<vmem>>, vector<16x32xf32>,
    } else {
    }
    %c1_i32 = arith.constant 1 : i32
    %31 = arith.cmpi sge, %arg0, %c1_i32 : i32
    %32 = arith.extui %31 : i1 to i32
    %c0_i32_14 = arith.constant 0 : i32
    %33 = arith.cmpi ne, %32, %c0_i32_14 : i32
    scf.if %33 {
      %c0_44 = arith.constant 0 : index
      %c0_45 = arith.constant 0 : index
      %69 = vector.load %arg21[%c0_44, %c0_45] : memref<16x32xf32, #tpu.memory_space<vmem>>, vector<16x32xf32>
      %c0_46 = arith.constant 0 : index
      %c1 = arith.constant 1 : index
      %c0_47 = arith.constant 0 : index
      %c0_48 = arith.constant 0 : index
      %70 = vector.load %arg4[%c0_46, %c1, %c0_47, %c0_48] : memref<1x3x32x384xf32, #tpu.memory_space<vmem>>, vector<1x1x32x384xf32>
      %71 = vector.shape_cast %70 : vector<1x1x32x384xf32> to vector<32x384xf32>
      %cst_49 = arith.constant dense<0.000000e+00> : vector<16x384xf32>
      %72 = tpu.matmul %69, %71, %cst_49 {dimension_numbers = #tpu.dot_dimension_numbers<[1], [0], [0], [1], [0, 0, 1, 1], [], []>} : vector<16x32xf32>, vector<32x384xf32>, vector<16x384xf32> -> vector<16x384xf32>
      %73 = vector.extract_strided_slice %72 {offsets = [0, 0], sizes = [16, 128], strides = [1, 1]} : vector<16x384xf32> to vector<16x128xf32>
      %74 = vector.shape_cast %73 : vector<16x128xf32> to vector<2x8x128xf32>
      %75 = vector.extract_strided_slice %72 {offsets = [0, 128], sizes = [16, 128], strides = [1, 1]} : vector<16x384xf32> to vector<16x128xf32>
      %76 = vector.shape_cast %75 : vector<16x128xf32> to vector<2x8x128xf32>
      %77 = vector.extract_strided_slice %72 {offsets = [0, 256], sizes = [16, 128], strides = [1, 1]} : vector<16x384xf32> to vector<16x128xf32>
      %78 = vector.shape_cast %77 : vector<16x128xf32> to vector<2x8x128xf32>
      %cst_50 = arith.constant 0.000000e+00 : f32
      %79 = vector.broadcast %cst_50 : f32 to vector<16x32xf32>
      %80 = vector.extract_strided_slice %74 {offsets = [0, 0, 0], sizes = [2, 8, 32], strides = [1, 1, 1]} : vector<2x8x128xf32> to vector<2x8x32xf32>
      %cst_51 = arith.constant 0.176776692 : f32
      %81 = vector.broadcast %cst_51 : f32 to vector<2x8x32xf32>
      %82 = arith.mulf %80, %81 : vector<2x8x32xf32>
      %83 = vector.extract_strided_slice %76 {offsets = [0, 0, 0], sizes = [2, 8, 32], strides = [1, 1, 1]} : vector<2x8x128xf32> to vector<2x8x32xf32>
      %84 = vector.extract_strided_slice %78 {offsets = [0, 0, 0], sizes = [2, 8, 32], strides = [1, 1, 1]} : vector<2x8x128xf32> to vector<2x8x32xf32>
      "tpu.trace_start"() <{level = 10 : i32, message = "bld,bmd->blm"}> : () -> ()
      %cst_52 = arith.constant dense<0.000000e+00> : vector<2x8x8xf32>
      %85 = tpu.matmul %82, %83, %cst_52 {dimension_numbers = #tpu.dot_dimension_numbers<[2], [2], [1], [1], [0, 0, 0, 1, 1, 1], [0], [0]>} : vector<2x8x32xf32>, vector<2x8x32xf32>, vector<2x8x8xf32> -> vector<2x8x8xf32>
      "tpu.trace_stop"() : () -> ()
      %cst_53 = arith.constant dense<0xFF800000> : vector<2x8xf32>
      %86 = vector.multi_reduction <maximumf>, %85, %cst_53 [2] : vector<2x8x8xf32> to vector<2x8xf32>
      %87 = vector.shape_cast %86 : vector<2x8xf32> to vector<2x8x1xf32>
      %88 = vector.broadcast %87 : vector<2x8x1xf32> to vector<2x8x8xf32>
      %89 = arith.subf %85, %88 : vector<2x8x8xf32>
      %90 = math.exp %89 : vector<2x8x8xf32>
      %cst_54 = arith.constant dense<0.000000e+00> : vector<2x8xf32>
      %91 = vector.multi_reduction <add>, %90, %cst_54 [2] : vector<2x8x8xf32> to vector<2x8xf32>
      %92 = vector.shape_cast %91 : vector<2x8xf32> to vector<2x8x1xf32>
      %93 = tpu.reciprocal %92 {approx = true} : vector<2x8x1xf32> -> vector<2x8x1xf32>
      %94 = vector.broadcast %93 : vector<2x8x1xf32> to vector<2x8x8xf32>
      %95 = arith.mulf %90, %94 : vector<2x8x8xf32>
      "tpu.trace_start"() <{level = 10 : i32, message = "blm,bmd->bld"}> : () -> ()
      %cst_55 = arith.constant dense<0.000000e+00> : vector<2x8x32xf32>
      %96 = tpu.matmul %95, %84, %cst_55 {dimension_numbers = #tpu.dot_dimension_numbers<[2], [1], [1], [2], [0, 0, 0, 1, 1, 2], [0], [0]>} : vector<2x8x8xf32>, vector<2x8x32xf32>, vector<2x8x32xf32> -> vector<2x8x32xf32>
      "tpu.trace_stop"() : () -> ()
      %97 = vector.shape_cast %96 : vector<2x8x32xf32> to vector<16x32xf32>
      %c0_56 = arith.constant 0 : index
      %c1_57 = arith.constant 1 : index
      %c0_58 = arith.constant 0 : index
      %c0_59 = arith.constant 0 : index
      %98 = vector.load %arg5[%c0_56, %c1_57, %c0_58, %c0_59] : memref<1x3x128x32xf32, #tpu.memory_space<vmem>>, vector<1x1x32x32xf32>
      %99 = vector.shape_cast %98 : vector<1x1x32x32xf32> to vector<32x32xf32>
      %cst_60 = arith.constant dense<0.000000e+00> : vector<16x32xf32>
      %100 = tpu.matmul %97, %99, %cst_60 {dimension_numbers = #tpu.dot_dimension_numbers<[1], [0], [0], [1], [0, 0, 1, 1], [], []>} : vector<16x32xf32>, vector<32x32xf32>, vector<16x32xf32> -> vector<16x32xf32>
      %101 = arith.addf %79, %100 : vector<16x32xf32>
      %102 = vector.extract_strided_slice %74 {offsets = [0, 0, 32], sizes = [2, 8, 32], strides = [1, 1, 1]} : vector<2x8x128xf32> to vector<2x8x32xf32>
      %cst_61 = arith.constant 0.176776692 : f32
      %103 = vector.broadcast %cst_61 : f32 to vector<2x8x32xf32>
      %104 = arith.mulf %102, %103 : vector<2x8x32xf32>
      %105 = vector.extract_strided_slice %76 {offsets = [0, 0, 32], sizes = [2, 8, 32], strides = [1, 1, 1]} : vector<2x8x128xf32> to vector<2x8x32xf32>
      %106 = vector.extract_strided_slice %78 {offsets = [0, 0, 32], sizes = [2, 8, 32], strides = [1, 1, 1]} : vector<2x8x128xf32> to vector<2x8x32xf32>
      "tpu.trace_start"() <{level = 10 : i32, message = "bld,bmd->blm"}> : () -> ()
      %cst_62 = arith.constant dense<0.000000e+00> : vector<2x8x8xf32>
      %107 = tpu.matmul %104, %105, %cst_62 {dimension_numbers = #tpu.dot_dimension_numbers<[2], [2], [1], [1], [0, 0, 0, 1, 1, 1], [0], [0]>} : vector<2x8x32xf32>, vector<2x8x32xf32>, vector<2x8x8xf32> -> vector<2x8x8xf32>
      "tpu.trace_stop"() : () -> ()
      %cst_63 = arith.constant dense<0xFF800000> : vector<2x8xf32>
      %108 = vector.multi_reduction <maximumf>, %107, %cst_63 [2] : vector<2x8x8xf32> to vector<2x8xf32>
      %109 = vector.shape_cast %108 : vector<2x8xf32> to vector<2x8x1xf32>
      %110 = vector.broadcast %109 : vector<2x8x1xf32> to vector<2x8x8xf32>
      %111 = arith.subf %107, %110 : vector<2x8x8xf32>
      %112 = math.exp %111 : vector<2x8x8xf32>
      %cst_64 = arith.constant dense<0.000000e+00> : vector<2x8xf32>
      %113 = vector.multi_reduction <add>, %112, %cst_64 [2] : vector<2x8x8xf32> to vector<2x8xf32>
      %114 = vector.shape_cast %113 : vector<2x8xf32> to vector<2x8x1xf32>
      %115 = tpu.reciprocal %114 {approx = true} : vector<2x8x1xf32> -> vector<2x8x1xf32>
      %116 = vector.broadcast %115 : vector<2x8x1xf32> to vector<2x8x8xf32>
      %117 = arith.mulf %112, %116 : vector<2x8x8xf32>
      "tpu.trace_start"() <{level = 10 : i32, message = "blm,bmd->bld"}> : () -> ()
      %cst_65 = arith.constant dense<0.000000e+00> : vector<2x8x32xf32>
      %118 = tpu.matmul %117, %106, %cst_65 {dimension_numbers = #tpu.dot_dimension_numbers<[2], [1], [1], [2], [0, 0, 0, 1, 1, 2], [0], [0]>} : vector<2x8x8xf32>, vector<2x8x32xf32>, vector<2x8x32xf32> -> vector<2x8x32xf32>
      "tpu.trace_stop"() : () -> ()
      %119 = vector.shape_cast %118 : vector<2x8x32xf32> to vector<16x32xf32>
      %c0_66 = arith.constant 0 : index
      %c1_67 = arith.constant 1 : index
      %c32 = arith.constant 32 : index
      %c0_68 = arith.constant 0 : index
      %120 = vector.load %arg5[%c0_66, %c1_67, %c32, %c0_68] : memref<1x3x128x32xf32, #tpu.memory_space<vmem>>, vector<1x1x32x32xf32>
      %121 = vector.shape_cast %120 : vector<1x1x32x32xf32> to vector<32x32xf32>
      %cst_69 = arith.constant dense<0.000000e+00> : vector<16x32xf32>
      %122 = tpu.matmul %119, %121, %cst_69 {dimension_numbers = #tpu.dot_dimension_numbers<[1], [0], [0], [1], [0, 0, 1, 1], [], []>} : vector<16x32xf32>, vector<32x32xf32>, vector<16x32xf32> -> vector<16x32xf32>
      %123 = arith.addf %101, %122 : vector<16x32xf32>
      %124 = vector.extract_strided_slice %74 {offsets = [0, 0, 64], sizes = [2, 8, 32], strides = [1, 1, 1]} : vector<2x8x128xf32> to vector<2x8x32xf32>
      %cst_70 = arith.constant 0.176776692 : f32
      %125 = vector.broadcast %cst_70 : f32 to vector<2x8x32xf32>
      %126 = arith.mulf %124, %125 : vector<2x8x32xf32>
      %127 = vector.extract_strided_slice %76 {offsets = [0, 0, 64], sizes = [2, 8, 32], strides = [1, 1, 1]} : vector<2x8x128xf32> to vector<2x8x32xf32>
      %128 = vector.extract_strided_slice %78 {offsets = [0, 0, 64], sizes = [2, 8, 32], strides = [1, 1, 1]} : vector<2x8x128xf32> to vector<2x8x32xf32>
      "tpu.trace_start"() <{level = 10 : i32, message = "bld,bmd->blm"}> : () -> ()
      %cst_71 = arith.constant dense<0.000000e+00> : vector<2x8x8xf32>
      %129 = tpu.matmul %126, %127, %cst_71 {dimension_numbers = #tpu.dot_dimension_numbers<[2], [2], [1], [1], [0, 0, 0, 1, 1, 1], [0], [0]>} : vector<2x8x32xf32>, vector<2x8x32xf32>, vector<2x8x8xf32> -> vector<2x8x8xf32>
      "tpu.trace_stop"() : () -> ()
      %cst_72 = arith.constant dense<0xFF800000> : vector<2x8xf32>
      %130 = vector.multi_reduction <maximumf>, %129, %cst_72 [2] : vector<2x8x8xf32> to vector<2x8xf32>
      %131 = vector.shape_cast %130 : vector<2x8xf32> to vector<2x8x1xf32>
      %132 = vector.broadcast %131 : vector<2x8x1xf32> to vector<2x8x8xf32>
      %133 = arith.subf %129, %132 : vector<2x8x8xf32>
      %134 = math.exp %133 : vector<2x8x8xf32>
      %cst_73 = arith.constant dense<0.000000e+00> : vector<2x8xf32>
      %135 = vector.multi_reduction <add>, %134, %cst_73 [2] : vector<2x8x8xf32> to vector<2x8xf32>
      %136 = vector.shape_cast %135 : vector<2x8xf32> to vector<2x8x1xf32>
      %137 = tpu.reciprocal %136 {approx = true} : vector<2x8x1xf32> -> vector<2x8x1xf32>
      %138 = vector.broadcast %137 : vector<2x8x1xf32> to vector<2x8x8xf32>
      %139 = arith.mulf %134, %138 : vector<2x8x8xf32>
      "tpu.trace_start"() <{level = 10 : i32, message = "blm,bmd->bld"}> : () -> ()
      %cst_74 = arith.constant dense<0.000000e+00> : vector<2x8x32xf32>
      %140 = tpu.matmul %139, %128, %cst_74 {dimension_numbers = #tpu.dot_dimension_numbers<[2], [1], [1], [2], [0, 0, 0, 1, 1, 2], [0], [0]>} : vector<2x8x8xf32>, vector<2x8x32xf32>, vector<2x8x32xf32> -> vector<2x8x32xf32>
      "tpu.trace_stop"() : () -> ()
      %141 = vector.shape_cast %140 : vector<2x8x32xf32> to vector<16x32xf32>
      %c0_75 = arith.constant 0 : index
      %c1_76 = arith.constant 1 : index
      %c64 = arith.constant 64 : index
      %c0_77 = arith.constant 0 : index
      %142 = vector.load %arg5[%c0_75, %c1_76, %c64, %c0_77] : memref<1x3x128x32xf32, #tpu.memory_space<vmem>>, vector<1x1x32x32xf32>
      %143 = vector.shape_cast %142 : vector<1x1x32x32xf32> to vector<32x32xf32>
      %cst_78 = arith.constant dense<0.000000e+00> : vector<16x32xf32>
      %144 = tpu.matmul %141, %143, %cst_78 {dimension_numbers = #tpu.dot_dimension_numbers<[1], [0], [0], [1], [0, 0, 1, 1], [], []>} : vector<16x32xf32>, vector<32x32xf32>, vector<16x32xf32> -> vector<16x32xf32>
      %145 = arith.addf %123, %144 : vector<16x32xf32>
      %146 = vector.extract_strided_slice %74 {offsets = [0, 0, 96], sizes = [2, 8, 32], strides = [1, 1, 1]} : vector<2x8x128xf32> to vector<2x8x32xf32>
      %cst_79 = arith.constant 0.176776692 : f32
      %147 = vector.broadcast %cst_79 : f32 to vector<2x8x32xf32>
      %148 = arith.mulf %146, %147 : vector<2x8x32xf32>
      %149 = vector.extract_strided_slice %76 {offsets = [0, 0, 96], sizes = [2, 8, 32], strides = [1, 1, 1]} : vector<2x8x128xf32> to vector<2x8x32xf32>
      %150 = vector.extract_strided_slice %78 {offsets = [0, 0, 96], sizes = [2, 8, 32], strides = [1, 1, 1]} : vector<2x8x128xf32> to vector<2x8x32xf32>
      "tpu.trace_start"() <{level = 10 : i32, message = "bld,bmd->blm"}> : () -> ()
      %cst_80 = arith.constant dense<0.000000e+00> : vector<2x8x8xf32>
      %151 = tpu.matmul %148, %149, %cst_80 {dimension_numbers = #tpu.dot_dimension_numbers<[2], [2], [1], [1], [0, 0, 0, 1, 1, 1], [0], [0]>} : vector<2x8x32xf32>, vector<2x8x32xf32>, vector<2x8x8xf32> -> vector<2x8x8xf32>
      "tpu.trace_stop"() : () -> ()
      %cst_81 = arith.constant dense<0xFF800000> : vector<2x8xf32>
      %152 = vector.multi_reduction <maximumf>, %151, %cst_81 [2] : vector<2x8x8xf32> to vector<2x8xf32>
      %153 = vector.shape_cast %152 : vector<2x8xf32> to vector<2x8x1xf32>
      %154 = vector.broadcast %153 : vector<2x8x1xf32> to vector<2x8x8xf32>
      %155 = arith.subf %151, %154 : vector<2x8x8xf32>
      %156 = math.exp %155 : vector<2x8x8xf32>
      %cst_82 = arith.constant dense<0.000000e+00> : vector<2x8xf32>
      %157 = vector.multi_reduction <add>, %156, %cst_82 [2] : vector<2x8x8xf32> to vector<2x8xf32>
      %158 = vector.shape_cast %157 : vector<2x8xf32> to vector<2x8x1xf32>
      %159 = tpu.reciprocal %158 {approx = true} : vector<2x8x1xf32> -> vector<2x8x1xf32>
      %160 = vector.broadcast %159 : vector<2x8x1xf32> to vector<2x8x8xf32>
      %161 = arith.mulf %156, %160 : vector<2x8x8xf32>
      "tpu.trace_start"() <{level = 10 : i32, message = "blm,bmd->bld"}> : () -> ()
      %cst_83 = arith.constant dense<0.000000e+00> : vector<2x8x32xf32>
      %162 = tpu.matmul %161, %150, %cst_83 {dimension_numbers = #tpu.dot_dimension_numbers<[2], [1], [1], [2], [0, 0, 0, 1, 1, 2], [0], [0]>} : vector<2x8x8xf32>, vector<2x8x32xf32>, vector<2x8x32xf32> -> vector<2x8x32xf32>
      "tpu.trace_stop"() : () -> ()
      %163 = vector.shape_cast %162 : vector<2x8x32xf32> to vector<16x32xf32>
      %c0_84 = arith.constant 0 : index
      %c1_85 = arith.constant 1 : index
      %c96 = arith.constant 96 : index
      %c0_86 = arith.constant 0 : index
      %164 = vector.load %arg5[%c0_84, %c1_85, %c96, %c0_86] : memref<1x3x128x32xf32, #tpu.memory_space<vmem>>, vector<1x1x32x32xf32>
      %165 = vector.shape_cast %164 : vector<1x1x32x32xf32> to vector<32x32xf32>
      %cst_87 = arith.constant dense<0.000000e+00> : vector<16x32xf32>
      %166 = tpu.matmul %163, %165, %cst_87 {dimension_numbers = #tpu.dot_dimension_numbers<[1], [0], [0], [1], [0, 0, 1, 1], [], []>} : vector<16x32xf32>, vector<32x32xf32>, vector<16x32xf32> -> vector<16x32xf32>
      %167 = arith.addf %145, %166 : vector<16x32xf32>
      %168 = arith.addf %167, %69 : vector<16x32xf32>
      %c0_88 = arith.constant 0 : index
      %c1_89 = arith.constant 1 : index
      %c0_90 = arith.constant 0 : index
      %c0_91 = arith.constant 0 : index
      %169 = vector.load %arg6[%c0_88, %c1_89, %c0_90, %c0_91] : memref<1x3x1x32xf32, #tpu.memory_space<vmem>>, vector<1x1x1x32xf32>
      %170 = vector.shape_cast %169 : vector<1x1x1x32xf32> to vector<1x32xf32>
      %c0_92 = arith.constant 0 : index
      %c1_93 = arith.constant 1 : index
      %c0_94 = arith.constant 0 : index
      %c0_95 = arith.constant 0 : index
      %171 = vector.load %arg7[%c0_92, %c1_93, %c0_94, %c0_95] : memref<1x3x1x32xf32, #tpu.memory_space<vmem>>, vector<1x1x1x32xf32>
      %172 = vector.shape_cast %171 : vector<1x1x1x32xf32> to vector<1x32xf32>
      %cst_96 = arith.constant dense<0.000000e+00> : vector<16xf32>
      %173 = vector.multi_reduction <add>, %168, %cst_96 [1] : vector<16x32xf32> to vector<16xf32>
      %174 = vector.shape_cast %173 : vector<16xf32> to vector<16x1xf32>
      %cst_97 = arith.constant 3.200000e+01 : f32
      %175 = vector.broadcast %cst_97 : f32 to vector<16x1xf32>
      %176 = arith.divf %174, %175 : vector<16x1xf32>
      %177 = arith.mulf %168, %168 : vector<16x32xf32>
      %cst_98 = arith.constant dense<0.000000e+00> : vector<16xf32>
      %178 = vector.multi_reduction <add>, %177, %cst_98 [1] : vector<16x32xf32> to vector<16xf32>
      %179 = vector.shape_cast %178 : vector<16xf32> to vector<16x1xf32>
      %cst_99 = arith.constant 3.200000e+01 : f32
      %180 = vector.broadcast %cst_99 : f32 to vector<16x1xf32>
      %181 = arith.divf %179, %180 : vector<16x1xf32>
      %182 = arith.mulf %176, %176 : vector<16x1xf32>
      %183 = arith.subf %181, %182 : vector<16x1xf32>
      %184 = vector.broadcast %176 : vector<16x1xf32> to vector<16x32xf32>
      %185 = arith.subf %168, %184 : vector<16x32xf32>
      %cst_100 = arith.constant 9.99999997E-7 : f32
      %186 = vector.broadcast %cst_100 : f32 to vector<16x1xf32>
      %187 = arith.addf %183, %186 : vector<16x1xf32>
      %188 = math.rsqrt %187 : vector<16x1xf32>
      %189 = vector.broadcast %188 : vector<16x1xf32> to vector<16x32xf32>
      %190 = arith.mulf %185, %189 : vector<16x32xf32>
      %191 = vector.broadcast %170 : vector<1x32xf32> to vector<16x32xf32>
      %192 = arith.mulf %190, %191 : vector<16x32xf32>
      %193 = vector.broadcast %172 : vector<1x32xf32> to vector<16x32xf32>
      %194 = arith.addf %192, %193 : vector<16x32xf32>
      %c0_101 = arith.constant 0 : index
      %c1_102 = arith.constant 1 : index
      %c0_103 = arith.constant 0 : index
      %c0_104 = arith.constant 0 : index
      %195 = vector.load %arg8[%c0_101, %c1_102, %c0_103, %c0_104] : memref<1x3x32x64xf32, #tpu.memory_space<vmem>>, vector<1x1x32x64xf32>
      %196 = vector.shape_cast %195 : vector<1x1x32x64xf32> to vector<32x64xf32>
      %cst_105 = arith.constant dense<0.000000e+00> : vector<16x64xf32>
      %197 = tpu.matmul %194, %196, %cst_105 {dimension_numbers = #tpu.dot_dimension_numbers<[1], [0], [0], [1], [0, 0, 1, 1], [], []>} : vector<16x32xf32>, vector<32x64xf32>, vector<16x64xf32> -> vector<16x64xf32>
      %c0_106 = arith.constant 0 : index
      %c1_107 = arith.constant 1 : index
      %c0_108 = arith.constant 0 : index
      %c0_109 = arith.constant 0 : index
      %198 = vector.load %arg9[%c0_106, %c1_107, %c0_108, %c0_109] : memref<1x3x1x64xf32, #tpu.memory_space<vmem>>, vector<1x1x1x64xf32>
      %199 = vector.shape_cast %198 : vector<1x1x1x64xf32> to vector<1x64xf32>
      %200 = vector.broadcast %199 : vector<1x64xf32> to vector<16x64xf32>
      %201 = arith.addf %197, %200 : vector<16x64xf32>
      %cst_110 = arith.constant 0.000000e+00 : f32
      %202 = vector.broadcast %cst_110 : f32 to vector<16x64xf32>
      %203 = arith.maximumf %201, %202 : vector<16x64xf32>
      %c0_111 = arith.constant 0 : index
      %c1_112 = arith.constant 1 : index
      %c0_113 = arith.constant 0 : index
      %c0_114 = arith.constant 0 : index
      %204 = vector.load %arg10[%c0_111, %c1_112, %c0_113, %c0_114] : memref<1x3x64x32xf32, #tpu.memory_space<vmem>>, vector<1x1x64x32xf32>
      %205 = vector.shape_cast %204 : vector<1x1x64x32xf32> to vector<64x32xf32>
      %cst_115 = arith.constant dense<0.000000e+00> : vector<16x32xf32>
      %206 = tpu.matmul %203, %205, %cst_115 {dimension_numbers = #tpu.dot_dimension_numbers<[1], [0], [0], [1], [0, 0, 1, 1], [], []>} : vector<16x64xf32>, vector<64x32xf32>, vector<16x32xf32> -> vector<16x32xf32>
      %c0_116 = arith.constant 0 : index
      %c1_117 = arith.constant 1 : index
      %c0_118 = arith.constant 0 : index
      %c0_119 = arith.constant 0 : index
      %207 = vector.load %arg11[%c0_116, %c1_117, %c0_118, %c0_119] : memref<1x3x1x32xf32, #tpu.memory_space<vmem>>, vector<1x1x1x32xf32>
      %208 = vector.shape_cast %207 : vector<1x1x1x32xf32> to vector<1x32xf32>
      %209 = vector.broadcast %208 : vector<1x32xf32> to vector<16x32xf32>
      %210 = arith.addf %206, %209 : vector<16x32xf32>
      %211 = arith.addf %210, %194 : vector<16x32xf32>
      %c0_120 = arith.constant 0 : index
      %c1_121 = arith.constant 1 : index
      %c0_122 = arith.constant 0 : index
      %c0_123 = arith.constant 0 : index
      %212 = vector.load %arg12[%c0_120, %c1_121, %c0_122, %c0_123] : memref<1x3x1x32xf32, #tpu.memory_space<vmem>>, vector<1x1x1x32xf32>
      %213 = vector.shape_cast %212 : vector<1x1x1x32xf32> to vector<1x32xf32>
      %c0_124 = arith.constant 0 : index
      %c1_125 = arith.constant 1 : index
      %c0_126 = arith.constant 0 : index
      %c0_127 = arith.constant 0 : index
      %214 = vector.load %arg13[%c0_124, %c1_125, %c0_126, %c0_127] : memref<1x3x1x32xf32, #tpu.memory_space<vmem>>, vector<1x1x1x32xf32>
      %215 = vector.shape_cast %214 : vector<1x1x1x32xf32> to vector<1x32xf32>
      %cst_128 = arith.constant dense<0.000000e+00> : vector<16xf32>
      %216 = vector.multi_reduction <add>, %211, %cst_128 [1] : vector<16x32xf32> to vector<16xf32>
      %217 = vector.shape_cast %216 : vector<16xf32> to vector<16x1xf32>
      %cst_129 = arith.constant 3.200000e+01 : f32
      %218 = vector.broadcast %cst_129 : f32 to vector<16x1xf32>
      %219 = arith.divf %217, %218 : vector<16x1xf32>
      %220 = arith.mulf %211, %211 : vector<16x32xf32>
      %cst_130 = arith.constant dense<0.000000e+00> : vector<16xf32>
      %221 = vector.multi_reduction <add>, %220, %cst_130 [1] : vector<16x32xf32> to vector<16xf32>
      %222 = vector.shape_cast %221 : vector<16xf32> to vector<16x1xf32>
      %cst_131 = arith.constant 3.200000e+01 : f32
      %223 = vector.broadcast %cst_131 : f32 to vector<16x1xf32>
      %224 = arith.divf %222, %223 : vector<16x1xf32>
      %225 = arith.mulf %219, %219 : vector<16x1xf32>
      %226 = arith.subf %224, %225 : vector<16x1xf32>
      %227 = vector.broadcast %219 : vector<16x1xf32> to vector<16x32xf32>
      %228 = arith.subf %211, %227 : vector<16x32xf32>
      %cst_132 = arith.constant 9.99999997E-7 : f32
      %229 = vector.broadcast %cst_132 : f32 to vector<16x1xf32>
      %230 = arith.addf %226, %229 : vector<16x1xf32>
      %231 = math.rsqrt %230 : vector<16x1xf32>
      %232 = vector.broadcast %231 : vector<16x1xf32> to vector<16x32xf32>
      %233 = arith.mulf %228, %232 : vector<16x32xf32>
      %234 = vector.broadcast %213 : vector<1x32xf32> to vector<16x32xf32>
      %235 = arith.mulf %233, %234 : vector<16x32xf32>
      %236 = vector.broadcast %215 : vector<1x32xf32> to vector<16x32xf32>
      %237 = arith.addf %235, %236 : vector<16x32xf32>
      %c0_133 = arith.constant 0 : index
      %c0_134 = arith.constant 0 : index
      %238 = vector.load %arg21[%c0_133, %c0_134] : memref<16x32xf32, #tpu.memory_space<vmem>>, vector<16x32xf32>
      tpu.vector_store %arg21[%c0_133, %c0_134], %237 {strides = array<i32>} : memref<16x32xf32, #tpu.memory_space<vmem>>, vector<16x32xf32>,
    } else {
    }
    %c2_i32 = arith.constant 2 : i32
    %34 = arith.cmpi sge, %arg0, %c2_i32 : i32
    %35 = arith.extui %34 : i1 to i32
    %c0_i32_15 = arith.constant 0 : i32
    %36 = arith.cmpi ne, %35, %c0_i32_15 : i32
    scf.if %36 {
      %c0_44 = arith.constant 0 : index
      %c0_45 = arith.constant 0 : index
      %69 = vector.load %arg21[%c0_44, %c0_45] : memref<16x32xf32, #tpu.memory_space<vmem>>, vector<16x32xf32>
      %c0_46 = arith.constant 0 : index
      %c2 = arith.constant 2 : index
      %c0_47 = arith.constant 0 : index
      %c0_48 = arith.constant 0 : index
      %70 = vector.load %arg4[%c0_46, %c2, %c0_47, %c0_48] : memref<1x3x32x384xf32, #tpu.memory_space<vmem>>, vector<1x1x32x384xf32>
      %71 = vector.shape_cast %70 : vector<1x1x32x384xf32> to vector<32x384xf32>
      %cst_49 = arith.constant dense<0.000000e+00> : vector<16x384xf32>
      %72 = tpu.matmul %69, %71, %cst_49 {dimension_numbers = #tpu.dot_dimension_numbers<[1], [0], [0], [1], [0, 0, 1, 1], [], []>} : vector<16x32xf32>, vector<32x384xf32>, vector<16x384xf32> -> vector<16x384xf32>
      %73 = vector.extract_strided_slice %72 {offsets = [0, 0], sizes = [16, 128], strides = [1, 1]} : vector<16x384xf32> to vector<16x128xf32>
      %74 = vector.shape_cast %73 : vector<16x128xf32> to vector<2x8x128xf32>
      %75 = vector.extract_strided_slice %72 {offsets = [0, 128], sizes = [16, 128], strides = [1, 1]} : vector<16x384xf32> to vector<16x128xf32>
      %76 = vector.shape_cast %75 : vector<16x128xf32> to vector<2x8x128xf32>
      %77 = vector.extract_strided_slice %72 {offsets = [0, 256], sizes = [16, 128], strides = [1, 1]} : vector<16x384xf32> to vector<16x128xf32>
      %78 = vector.shape_cast %77 : vector<16x128xf32> to vector<2x8x128xf32>
      %cst_50 = arith.constant 0.000000e+00 : f32
      %79 = vector.broadcast %cst_50 : f32 to vector<16x32xf32>
      %80 = vector.extract_strided_slice %74 {offsets = [0, 0, 0], sizes = [2, 8, 32], strides = [1, 1, 1]} : vector<2x8x128xf32> to vector<2x8x32xf32>
      %cst_51 = arith.constant 0.176776692 : f32
      %81 = vector.broadcast %cst_51 : f32 to vector<2x8x32xf32>
      %82 = arith.mulf %80, %81 : vector<2x8x32xf32>
      %83 = vector.extract_strided_slice %76 {offsets = [0, 0, 0], sizes = [2, 8, 32], strides = [1, 1, 1]} : vector<2x8x128xf32> to vector<2x8x32xf32>
      %84 = vector.extract_strided_slice %78 {offsets = [0, 0, 0], sizes = [2, 8, 32], strides = [1, 1, 1]} : vector<2x8x128xf32> to vector<2x8x32xf32>
      "tpu.trace_start"() <{level = 10 : i32, message = "bld,bmd->blm"}> : () -> ()
      %cst_52 = arith.constant dense<0.000000e+00> : vector<2x8x8xf32>
      %85 = tpu.matmul %82, %83, %cst_52 {dimension_numbers = #tpu.dot_dimension_numbers<[2], [2], [1], [1], [0, 0, 0, 1, 1, 1], [0], [0]>} : vector<2x8x32xf32>, vector<2x8x32xf32>, vector<2x8x8xf32> -> vector<2x8x8xf32>
      "tpu.trace_stop"() : () -> ()
      %cst_53 = arith.constant dense<0xFF800000> : vector<2x8xf32>
      %86 = vector.multi_reduction <maximumf>, %85, %cst_53 [2] : vector<2x8x8xf32> to vector<2x8xf32>
      %87 = vector.shape_cast %86 : vector<2x8xf32> to vector<2x8x1xf32>
      %88 = vector.broadcast %87 : vector<2x8x1xf32> to vector<2x8x8xf32>
      %89 = arith.subf %85, %88 : vector<2x8x8xf32>
      %90 = math.exp %89 : vector<2x8x8xf32>
      %cst_54 = arith.constant dense<0.000000e+00> : vector<2x8xf32>
      %91 = vector.multi_reduction <add>, %90, %cst_54 [2] : vector<2x8x8xf32> to vector<2x8xf32>
      %92 = vector.shape_cast %91 : vector<2x8xf32> to vector<2x8x1xf32>
      %93 = tpu.reciprocal %92 {approx = true} : vector<2x8x1xf32> -> vector<2x8x1xf32>
      %94 = vector.broadcast %93 : vector<2x8x1xf32> to vector<2x8x8xf32>
      %95 = arith.mulf %90, %94 : vector<2x8x8xf32>
      "tpu.trace_start"() <{level = 10 : i32, message = "blm,bmd->bld"}> : () -> ()
      %cst_55 = arith.constant dense<0.000000e+00> : vector<2x8x32xf32>
      %96 = tpu.matmul %95, %84, %cst_55 {dimension_numbers = #tpu.dot_dimension_numbers<[2], [1], [1], [2], [0, 0, 0, 1, 1, 2], [0], [0]>} : vector<2x8x8xf32>, vector<2x8x32xf32>, vector<2x8x32xf32> -> vector<2x8x32xf32>
      "tpu.trace_stop"() : () -> ()
      %97 = vector.shape_cast %96 : vector<2x8x32xf32> to vector<16x32xf32>
      %c0_56 = arith.constant 0 : index
      %c2_57 = arith.constant 2 : index
      %c0_58 = arith.constant 0 : index
      %c0_59 = arith.constant 0 : index
      %98 = vector.load %arg5[%c0_56, %c2_57, %c0_58, %c0_59] : memref<1x3x128x32xf32, #tpu.memory_space<vmem>>, vector<1x1x32x32xf32>
      %99 = vector.shape_cast %98 : vector<1x1x32x32xf32> to vector<32x32xf32>
      %cst_60 = arith.constant dense<0.000000e+00> : vector<16x32xf32>
      %100 = tpu.matmul %97, %99, %cst_60 {dimension_numbers = #tpu.dot_dimension_numbers<[1], [0], [0], [1], [0, 0, 1, 1], [], []>} : vector<16x32xf32>, vector<32x32xf32>, vector<16x32xf32> -> vector<16x32xf32>
      %101 = arith.addf %79, %100 : vector<16x32xf32>
      %102 = vector.extract_strided_slice %74 {offsets = [0, 0, 32], sizes = [2, 8, 32], strides = [1, 1, 1]} : vector<2x8x128xf32> to vector<2x8x32xf32>
      %cst_61 = arith.constant 0.176776692 : f32
      %103 = vector.broadcast %cst_61 : f32 to vector<2x8x32xf32>
      %104 = arith.mulf %102, %103 : vector<2x8x32xf32>
      %105 = vector.extract_strided_slice %76 {offsets = [0, 0, 32], sizes = [2, 8, 32], strides = [1, 1, 1]} : vector<2x8x128xf32> to vector<2x8x32xf32>
      %106 = vector.extract_strided_slice %78 {offsets = [0, 0, 32], sizes = [2, 8, 32], strides = [1, 1, 1]} : vector<2x8x128xf32> to vector<2x8x32xf32>
      "tpu.trace_start"() <{level = 10 : i32, message = "bld,bmd->blm"}> : () -> ()
      %cst_62 = arith.constant dense<0.000000e+00> : vector<2x8x8xf32>
      %107 = tpu.matmul %104, %105, %cst_62 {dimension_numbers = #tpu.dot_dimension_numbers<[2], [2], [1], [1], [0, 0, 0, 1, 1, 1], [0], [0]>} : vector<2x8x32xf32>, vector<2x8x32xf32>, vector<2x8x8xf32> -> vector<2x8x8xf32>
      "tpu.trace_stop"() : () -> ()
      %cst_63 = arith.constant dense<0xFF800000> : vector<2x8xf32>
      %108 = vector.multi_reduction <maximumf>, %107, %cst_63 [2] : vector<2x8x8xf32> to vector<2x8xf32>
      %109 = vector.shape_cast %108 : vector<2x8xf32> to vector<2x8x1xf32>
      %110 = vector.broadcast %109 : vector<2x8x1xf32> to vector<2x8x8xf32>
      %111 = arith.subf %107, %110 : vector<2x8x8xf32>
      %112 = math.exp %111 : vector<2x8x8xf32>
      %cst_64 = arith.constant dense<0.000000e+00> : vector<2x8xf32>
      %113 = vector.multi_reduction <add>, %112, %cst_64 [2] : vector<2x8x8xf32> to vector<2x8xf32>
      %114 = vector.shape_cast %113 : vector<2x8xf32> to vector<2x8x1xf32>
      %115 = tpu.reciprocal %114 {approx = true} : vector<2x8x1xf32> -> vector<2x8x1xf32>
      %116 = vector.broadcast %115 : vector<2x8x1xf32> to vector<2x8x8xf32>
      %117 = arith.mulf %112, %116 : vector<2x8x8xf32>
      "tpu.trace_start"() <{level = 10 : i32, message = "blm,bmd->bld"}> : () -> ()
      %cst_65 = arith.constant dense<0.000000e+00> : vector<2x8x32xf32>
      %118 = tpu.matmul %117, %106, %cst_65 {dimension_numbers = #tpu.dot_dimension_numbers<[2], [1], [1], [2], [0, 0, 0, 1, 1, 2], [0], [0]>} : vector<2x8x8xf32>, vector<2x8x32xf32>, vector<2x8x32xf32> -> vector<2x8x32xf32>
      "tpu.trace_stop"() : () -> ()
      %119 = vector.shape_cast %118 : vector<2x8x32xf32> to vector<16x32xf32>
      %c0_66 = arith.constant 0 : index
      %c2_67 = arith.constant 2 : index
      %c32 = arith.constant 32 : index
      %c0_68 = arith.constant 0 : index
      %120 = vector.load %arg5[%c0_66, %c2_67, %c32, %c0_68] : memref<1x3x128x32xf32, #tpu.memory_space<vmem>>, vector<1x1x32x32xf32>
      %121 = vector.shape_cast %120 : vector<1x1x32x32xf32> to vector<32x32xf32>
      %cst_69 = arith.constant dense<0.000000e+00> : vector<16x32xf32>
      %122 = tpu.matmul %119, %121, %cst_69 {dimension_numbers = #tpu.dot_dimension_numbers<[1], [0], [0], [1], [0, 0, 1, 1], [], []>} : vector<16x32xf32>, vector<32x32xf32>, vector<16x32xf32> -> vector<16x32xf32>
      %123 = arith.addf %101, %122 : vector<16x32xf32>
      %124 = vector.extract_strided_slice %74 {offsets = [0, 0, 64], sizes = [2, 8, 32], strides = [1, 1, 1]} : vector<2x8x128xf32> to vector<2x8x32xf32>
      %cst_70 = arith.constant 0.176776692 : f32
      %125 = vector.broadcast %cst_70 : f32 to vector<2x8x32xf32>
      %126 = arith.mulf %124, %125 : vector<2x8x32xf32>
      %127 = vector.extract_strided_slice %76 {offsets = [0, 0, 64], sizes = [2, 8, 32], strides = [1, 1, 1]} : vector<2x8x128xf32> to vector<2x8x32xf32>
      %128 = vector.extract_strided_slice %78 {offsets = [0, 0, 64], sizes = [2, 8, 32], strides = [1, 1, 1]} : vector<2x8x128xf32> to vector<2x8x32xf32>
      "tpu.trace_start"() <{level = 10 : i32, message = "bld,bmd->blm"}> : () -> ()
      %cst_71 = arith.constant dense<0.000000e+00> : vector<2x8x8xf32>
      %129 = tpu.matmul %126, %127, %cst_71 {dimension_numbers = #tpu.dot_dimension_numbers<[2], [2], [1], [1], [0, 0, 0, 1, 1, 1], [0], [0]>} : vector<2x8x32xf32>, vector<2x8x32xf32>, vector<2x8x8xf32> -> vector<2x8x8xf32>
      "tpu.trace_stop"() : () -> ()
      %cst_72 = arith.constant dense<0xFF800000> : vector<2x8xf32>
      %130 = vector.multi_reduction <maximumf>, %129, %cst_72 [2] : vector<2x8x8xf32> to vector<2x8xf32>
      %131 = vector.shape_cast %130 : vector<2x8xf32> to vector<2x8x1xf32>
      %132 = vector.broadcast %131 : vector<2x8x1xf32> to vector<2x8x8xf32>
      %133 = arith.subf %129, %132 : vector<2x8x8xf32>
      %134 = math.exp %133 : vector<2x8x8xf32>
      %cst_73 = arith.constant dense<0.000000e+00> : vector<2x8xf32>
      %135 = vector.multi_reduction <add>, %134, %cst_73 [2] : vector<2x8x8xf32> to vector<2x8xf32>
      %136 = vector.shape_cast %135 : vector<2x8xf32> to vector<2x8x1xf32>
      %137 = tpu.reciprocal %136 {approx = true} : vector<2x8x1xf32> -> vector<2x8x1xf32>
      %138 = vector.broadcast %137 : vector<2x8x1xf32> to vector<2x8x8xf32>
      %139 = arith.mulf %134, %138 : vector<2x8x8xf32>
      "tpu.trace_start"() <{level = 10 : i32, message = "blm,bmd->bld"}> : () -> ()
      %cst_74 = arith.constant dense<0.000000e+00> : vector<2x8x32xf32>
      %140 = tpu.matmul %139, %128, %cst_74 {dimension_numbers = #tpu.dot_dimension_numbers<[2], [1], [1], [2], [0, 0, 0, 1, 1, 2], [0], [0]>} : vector<2x8x8xf32>, vector<2x8x32xf32>, vector<2x8x32xf32> -> vector<2x8x32xf32>
      "tpu.trace_stop"() : () -> ()
      %141 = vector.shape_cast %140 : vector<2x8x32xf32> to vector<16x32xf32>
      %c0_75 = arith.constant 0 : index
      %c2_76 = arith.constant 2 : index
      %c64 = arith.constant 64 : index
      %c0_77 = arith.constant 0 : index
      %142 = vector.load %arg5[%c0_75, %c2_76, %c64, %c0_77] : memref<1x3x128x32xf32, #tpu.memory_space<vmem>>, vector<1x1x32x32xf32>
      %143 = vector.shape_cast %142 : vector<1x1x32x32xf32> to vector<32x32xf32>
      %cst_78 = arith.constant dense<0.000000e+00> : vector<16x32xf32>
      %144 = tpu.matmul %141, %143, %cst_78 {dimension_numbers = #tpu.dot_dimension_numbers<[1], [0], [0], [1], [0, 0, 1, 1], [], []>} : vector<16x32xf32>, vector<32x32xf32>, vector<16x32xf32> -> vector<16x32xf32>
      %145 = arith.addf %123, %144 : vector<16x32xf32>
      %146 = vector.extract_strided_slice %74 {offsets = [0, 0, 96], sizes = [2, 8, 32], strides = [1, 1, 1]} : vector<2x8x128xf32> to vector<2x8x32xf32>
      %cst_79 = arith.constant 0.176776692 : f32
      %147 = vector.broadcast %cst_79 : f32 to vector<2x8x32xf32>
      %148 = arith.mulf %146, %147 : vector<2x8x32xf32>
      %149 = vector.extract_strided_slice %76 {offsets = [0, 0, 96], sizes = [2, 8, 32], strides = [1, 1, 1]} : vector<2x8x128xf32> to vector<2x8x32xf32>
      %150 = vector.extract_strided_slice %78 {offsets = [0, 0, 96], sizes = [2, 8, 32], strides = [1, 1, 1]} : vector<2x8x128xf32> to vector<2x8x32xf32>
      "tpu.trace_start"() <{level = 10 : i32, message = "bld,bmd->blm"}> : () -> ()
      %cst_80 = arith.constant dense<0.000000e+00> : vector<2x8x8xf32>
      %151 = tpu.matmul %148, %149, %cst_80 {dimension_numbers = #tpu.dot_dimension_numbers<[2], [2], [1], [1], [0, 0, 0, 1, 1, 1], [0], [0]>} : vector<2x8x32xf32>, vector<2x8x32xf32>, vector<2x8x8xf32> -> vector<2x8x8xf32>
      "tpu.trace_stop"() : () -> ()
      %cst_81 = arith.constant dense<0xFF800000> : vector<2x8xf32>
      %152 = vector.multi_reduction <maximumf>, %151, %cst_81 [2] : vector<2x8x8xf32> to vector<2x8xf32>
      %153 = vector.shape_cast %152 : vector<2x8xf32> to vector<2x8x1xf32>
      %154 = vector.broadcast %153 : vector<2x8x1xf32> to vector<2x8x8xf32>
      %155 = arith.subf %151, %154 : vector<2x8x8xf32>
      %156 = math.exp %155 : vector<2x8x8xf32>
      %cst_82 = arith.constant dense<0.000000e+00> : vector<2x8xf32>
      %157 = vector.multi_reduction <add>, %156, %cst_82 [2] : vector<2x8x8xf32> to vector<2x8xf32>
      %158 = vector.shape_cast %157 : vector<2x8xf32> to vector<2x8x1xf32>
      %159 = tpu.reciprocal %158 {approx = true} : vector<2x8x1xf32> -> vector<2x8x1xf32>
      %160 = vector.broadcast %159 : vector<2x8x1xf32> to vector<2x8x8xf32>
      %161 = arith.mulf %156, %160 : vector<2x8x8xf32>
      "tpu.trace_start"() <{level = 10 : i32, message = "blm,bmd->bld"}> : () -> ()
      %cst_83 = arith.constant dense<0.000000e+00> : vector<2x8x32xf32>
      %162 = tpu.matmul %161, %150, %cst_83 {dimension_numbers = #tpu.dot_dimension_numbers<[2], [1], [1], [2], [0, 0, 0, 1, 1, 2], [0], [0]>} : vector<2x8x8xf32>, vector<2x8x32xf32>, vector<2x8x32xf32> -> vector<2x8x32xf32>
      "tpu.trace_stop"() : () -> ()
      %163 = vector.shape_cast %162 : vector<2x8x32xf32> to vector<16x32xf32>
      %c0_84 = arith.constant 0 : index
      %c2_85 = arith.constant 2 : index
      %c96 = arith.constant 96 : index
      %c0_86 = arith.constant 0 : index
      %164 = vector.load %arg5[%c0_84, %c2_85, %c96, %c0_86] : memref<1x3x128x32xf32, #tpu.memory_space<vmem>>, vector<1x1x32x32xf32>
      %165 = vector.shape_cast %164 : vector<1x1x32x32xf32> to vector<32x32xf32>
      %cst_87 = arith.constant dense<0.000000e+00> : vector<16x32xf32>
      %166 = tpu.matmul %163, %165, %cst_87 {dimension_numbers = #tpu.dot_dimension_numbers<[1], [0], [0], [1], [0, 0, 1, 1], [], []>} : vector<16x32xf32>, vector<32x32xf32>, vector<16x32xf32> -> vector<16x32xf32>
      %167 = arith.addf %145, %166 : vector<16x32xf32>
      %168 = arith.addf %167, %69 : vector<16x32xf32>
      %c0_88 = arith.constant 0 : index
      %c2_89 = arith.constant 2 : index
      %c0_90 = arith.constant 0 : index
      %c0_91 = arith.constant 0 : index
      %169 = vector.load %arg6[%c0_88, %c2_89, %c0_90, %c0_91] : memref<1x3x1x32xf32, #tpu.memory_space<vmem>>, vector<1x1x1x32xf32>
      %170 = vector.shape_cast %169 : vector<1x1x1x32xf32> to vector<1x32xf32>
      %c0_92 = arith.constant 0 : index
      %c2_93 = arith.constant 2 : index
      %c0_94 = arith.constant 0 : index
      %c0_95 = arith.constant 0 : index
      %171 = vector.load %arg7[%c0_92, %c2_93, %c0_94, %c0_95] : memref<1x3x1x32xf32, #tpu.memory_space<vmem>>, vector<1x1x1x32xf32>
      %172 = vector.shape_cast %171 : vector<1x1x1x32xf32> to vector<1x32xf32>
      %cst_96 = arith.constant dense<0.000000e+00> : vector<16xf32>
      %173 = vector.multi_reduction <add>, %168, %cst_96 [1] : vector<16x32xf32> to vector<16xf32>
      %174 = vector.shape_cast %173 : vector<16xf32> to vector<16x1xf32>
      %cst_97 = arith.constant 3.200000e+01 : f32
      %175 = vector.broadcast %cst_97 : f32 to vector<16x1xf32>
      %176 = arith.divf %174, %175 : vector<16x1xf32>
      %177 = arith.mulf %168, %168 : vector<16x32xf32>
      %cst_98 = arith.constant dense<0.000000e+00> : vector<16xf32>
      %178 = vector.multi_reduction <add>, %177, %cst_98 [1] : vector<16x32xf32> to vector<16xf32>
      %179 = vector.shape_cast %178 : vector<16xf32> to vector<16x1xf32>
      %cst_99 = arith.constant 3.200000e+01 : f32
      %180 = vector.broadcast %cst_99 : f32 to vector<16x1xf32>
      %181 = arith.divf %179, %180 : vector<16x1xf32>
      %182 = arith.mulf %176, %176 : vector<16x1xf32>
      %183 = arith.subf %181, %182 : vector<16x1xf32>
      %184 = vector.broadcast %176 : vector<16x1xf32> to vector<16x32xf32>
      %185 = arith.subf %168, %184 : vector<16x32xf32>
      %cst_100 = arith.constant 9.99999997E-7 : f32
      %186 = vector.broadcast %cst_100 : f32 to vector<16x1xf32>
      %187 = arith.addf %183, %186 : vector<16x1xf32>
      %188 = math.rsqrt %187 : vector<16x1xf32>
      %189 = vector.broadcast %188 : vector<16x1xf32> to vector<16x32xf32>
      %190 = arith.mulf %185, %189 : vector<16x32xf32>
      %191 = vector.broadcast %170 : vector<1x32xf32> to vector<16x32xf32>
      %192 = arith.mulf %190, %191 : vector<16x32xf32>
      %193 = vector.broadcast %172 : vector<1x32xf32> to vector<16x32xf32>
      %194 = arith.addf %192, %193 : vector<16x32xf32>
      %c0_101 = arith.constant 0 : index
      %c2_102 = arith.constant 2 : index
      %c0_103 = arith.constant 0 : index
      %c0_104 = arith.constant 0 : index
      %195 = vector.load %arg8[%c0_101, %c2_102, %c0_103, %c0_104] : memref<1x3x32x64xf32, #tpu.memory_space<vmem>>, vector<1x1x32x64xf32>
      %196 = vector.shape_cast %195 : vector<1x1x32x64xf32> to vector<32x64xf32>
      %cst_105 = arith.constant dense<0.000000e+00> : vector<16x64xf32>
      %197 = tpu.matmul %194, %196, %cst_105 {dimension_numbers = #tpu.dot_dimension_numbers<[1], [0], [0], [1], [0, 0, 1, 1], [], []>} : vector<16x32xf32>, vector<32x64xf32>, vector<16x64xf32> -> vector<16x64xf32>
      %c0_106 = arith.constant 0 : index
      %c2_107 = arith.constant 2 : index
      %c0_108 = arith.constant 0 : index
      %c0_109 = arith.constant 0 : index
      %198 = vector.load %arg9[%c0_106, %c2_107, %c0_108, %c0_109] : memref<1x3x1x64xf32, #tpu.memory_space<vmem>>, vector<1x1x1x64xf32>
      %199 = vector.shape_cast %198 : vector<1x1x1x64xf32> to vector<1x64xf32>
      %200 = vector.broadcast %199 : vector<1x64xf32> to vector<16x64xf32>
      %201 = arith.addf %197, %200 : vector<16x64xf32>
      %cst_110 = arith.constant 0.000000e+00 : f32
      %202 = vector.broadcast %cst_110 : f32 to vector<16x64xf32>
      %203 = arith.maximumf %201, %202 : vector<16x64xf32>
      %c0_111 = arith.constant 0 : index
      %c2_112 = arith.constant 2 : index
      %c0_113 = arith.constant 0 : index
      %c0_114 = arith.constant 0 : index
      %204 = vector.load %arg10[%c0_111, %c2_112, %c0_113, %c0_114] : memref<1x3x64x32xf32, #tpu.memory_space<vmem>>, vector<1x1x64x32xf32>
      %205 = vector.shape_cast %204 : vector<1x1x64x32xf32> to vector<64x32xf32>
      %cst_115 = arith.constant dense<0.000000e+00> : vector<16x32xf32>
      %206 = tpu.matmul %203, %205, %cst_115 {dimension_numbers = #tpu.dot_dimension_numbers<[1], [0], [0], [1], [0, 0, 1, 1], [], []>} : vector<16x64xf32>, vector<64x32xf32>, vector<16x32xf32> -> vector<16x32xf32>
      %c0_116 = arith.constant 0 : index
      %c2_117 = arith.constant 2 : index
      %c0_118 = arith.constant 0 : index
      %c0_119 = arith.constant 0 : index
      %207 = vector.load %arg11[%c0_116, %c2_117, %c0_118, %c0_119] : memref<1x3x1x32xf32, #tpu.memory_space<vmem>>, vector<1x1x1x32xf32>
      %208 = vector.shape_cast %207 : vector<1x1x1x32xf32> to vector<1x32xf32>
      %209 = vector.broadcast %208 : vector<1x32xf32> to vector<16x32xf32>
      %210 = arith.addf %206, %209 : vector<16x32xf32>
      %211 = arith.addf %210, %194 : vector<16x32xf32>
      %c0_120 = arith.constant 0 : index
      %c2_121 = arith.constant 2 : index
      %c0_122 = arith.constant 0 : index
      %c0_123 = arith.constant 0 : index
      %212 = vector.load %arg12[%c0_120, %c2_121, %c0_122, %c0_123] : memref<1x3x1x32xf32, #tpu.memory_space<vmem>>, vector<1x1x1x32xf32>
      %213 = vector.shape_cast %212 : vector<1x1x1x32xf32> to vector<1x32xf32>
      %c0_124 = arith.constant 0 : index
      %c2_125 = arith.constant 2 : index
      %c0_126 = arith.constant 0 : index
      %c0_127 = arith.constant 0 : index
      %214 = vector.load %arg13[%c0_124, %c2_125, %c0_126, %c0_127] : memref<1x3x1x32xf32, #tpu.memory_space<vmem>>, vector<1x1x1x32xf32>
      %215 = vector.shape_cast %214 : vector<1x1x1x32xf32> to vector<1x32xf32>
      %cst_128 = arith.constant dense<0.000000e+00> : vector<16xf32>
      %216 = vector.multi_reduction <add>, %211, %cst_128 [1] : vector<16x32xf32> to vector<16xf32>
      %217 = vector.shape_cast %216 : vector<16xf32> to vector<16x1xf32>
      %cst_129 = arith.constant 3.200000e+01 : f32
      %218 = vector.broadcast %cst_129 : f32 to vector<16x1xf32>
      %219 = arith.divf %217, %218 : vector<16x1xf32>
      %220 = arith.mulf %211, %211 : vector<16x32xf32>
      %cst_130 = arith.constant dense<0.000000e+00> : vector<16xf32>
      %221 = vector.multi_reduction <add>, %220, %cst_130 [1] : vector<16x32xf32> to vector<16xf32>
      %222 = vector.shape_cast %221 : vector<16xf32> to vector<16x1xf32>
      %cst_131 = arith.constant 3.200000e+01 : f32
      %223 = vector.broadcast %cst_131 : f32 to vector<16x1xf32>
      %224 = arith.divf %222, %223 : vector<16x1xf32>
      %225 = arith.mulf %219, %219 : vector<16x1xf32>
      %226 = arith.subf %224, %225 : vector<16x1xf32>
      %227 = vector.broadcast %219 : vector<16x1xf32> to vector<16x32xf32>
      %228 = arith.subf %211, %227 : vector<16x32xf32>
      %cst_132 = arith.constant 9.99999997E-7 : f32
      %229 = vector.broadcast %cst_132 : f32 to vector<16x1xf32>
      %230 = arith.addf %226, %229 : vector<16x1xf32>
      %231 = math.rsqrt %230 : vector<16x1xf32>
      %232 = vector.broadcast %231 : vector<16x1xf32> to vector<16x32xf32>
      %233 = arith.mulf %228, %232 : vector<16x32xf32>
      %234 = vector.broadcast %213 : vector<1x32xf32> to vector<16x32xf32>
      %235 = arith.mulf %233, %234 : vector<16x32xf32>
      %236 = vector.broadcast %215 : vector<1x32xf32> to vector<16x32xf32>
      %237 = arith.addf %235, %236 : vector<16x32xf32>
      %c0_133 = arith.constant 0 : index
      %c0_134 = arith.constant 0 : index
      %238 = vector.load %arg21[%c0_133, %c0_134] : memref<16x32xf32, #tpu.memory_space<vmem>>, vector<16x32xf32>
      tpu.vector_store %arg21[%c0_133, %c0_134], %237 {strides = array<i32>} : memref<16x32xf32, #tpu.memory_space<vmem>>, vector<16x32xf32>,
    } else {
    }
    %c0_16 = arith.constant 0 : index
    %c0_17 = arith.constant 0 : index
    %37 = vector.load %arg21[%c0_16, %c0_17] : memref<16x32xf32, #tpu.memory_space<vmem>>, vector<16x32xf32>
    %38 = vector.shape_cast %37 : vector<16x32xf32> to vector<2x8x32xf32>
    %39 = vector.extract_strided_slice %38 {offsets = [0, 0, 0], sizes = [2, 1, 32], strides = [1, 1, 1]} : vector<2x8x32xf32> to vector<2x1x32xf32>
    %40 = vector.shape_cast %39 : vector<2x1x32xf32> to vector<2x32xf32>
    %c0_18 = arith.constant 0 : index
    %c0_19 = arith.constant 0 : index
    %c0_20 = arith.constant 0 : index
    %41 = vector.load %arg14[%c0_18, %c0_19, %c0_20] : memref<1x32x256xf32, #tpu.memory_space<vmem>>, vector<1x32x256xf32>
    %42 = vector.shape_cast %41 : vector<1x32x256xf32> to vector<32x256xf32>
    %cst_21 = arith.constant dense<0.000000e+00> : vector<2x256xf32>
    %43 = tpu.matmul %40, %42, %cst_21 {dimension_numbers = #tpu.dot_dimension_numbers<[1], [0], [0], [1], [0, 0, 1, 1], [], []>} : vector<2x32xf32>, vector<32x256xf32>, vector<2x256xf32> -> vector<2x256xf32>
    %c0_22 = arith.constant 0 : index
    %c0_23 = arith.constant 0 : index
    %c0_24 = arith.constant 0 : index
    %44 = vector.load %arg15[%c0_22, %c0_23, %c0_24] : memref<1x1x256xf32, #tpu.memory_space<vmem>>, vector<1x1x256xf32>
    %45 = vector.shape_cast %44 : vector<1x1x256xf32> to vector<1x256xf32>
    %46 = vector.broadcast %45 : vector<1x256xf32> to vector<2x256xf32>
    %47 = arith.addf %43, %46 : vector<2x256xf32>
    %cst_25 = arith.constant 0.000000e+00 : f32
    %48 = vector.broadcast %cst_25 : f32 to vector<2x256xf32>
    %49 = arith.maximumf %47, %48 : vector<2x256xf32>
    %c0_26 = arith.constant 0 : index
    %c0_27 = arith.constant 0 : index
    %c0_28 = arith.constant 0 : index
    %50 = vector.load %arg16[%c0_26, %c0_27, %c0_28] : memref<1x256x64xf32, #tpu.memory_space<vmem>>, vector<1x256x64xf32>
    %51 = vector.shape_cast %50 : vector<1x256x64xf32> to vector<256x64xf32>
    %cst_29 = arith.constant dense<0.000000e+00> : vector<2x64xf32>
    %52 = tpu.matmul %49, %51, %cst_29 {dimension_numbers = #tpu.dot_dimension_numbers<[1], [0], [0], [1], [0, 0, 1, 1], [], []>} : vector<2x256xf32>, vector<256x64xf32>, vector<2x64xf32> -> vector<2x64xf32>
    %c0_30 = arith.constant 0 : index
    %c0_31 = arith.constant 0 : index
    %c0_32 = arith.constant 0 : index
    %53 = vector.load %arg17[%c0_30, %c0_31, %c0_32] : memref<1x1x64xf32, #tpu.memory_space<vmem>>, vector<1x1x64xf32>
    %54 = vector.shape_cast %53 : vector<1x1x64xf32> to vector<1x64xf32>
    %55 = vector.broadcast %54 : vector<1x64xf32> to vector<2x64xf32>
    %56 = arith.addf %52, %55 : vector<2x64xf32>
    %cst_33 = arith.constant 0.000000e+00 : f32
    %57 = vector.broadcast %cst_33 : f32 to vector<2x64xf32>
    %58 = arith.maximumf %56, %57 : vector<2x64xf32>
    %c0_34 = arith.constant 0 : index
    %c0_35 = arith.constant 0 : index
    %c0_36 = arith.constant 0 : index
    %59 = vector.load %arg18[%c0_34, %c0_35, %c0_36] : memref<1x64x128xf32, #tpu.memory_space<vmem>>, vector<1x64x128xf32>
    %60 = vector.shape_cast %59 : vector<1x64x128xf32> to vector<64x128xf32>
    %cst_37 = arith.constant dense<0.000000e+00> : vector<2x128xf32>
    %61 = tpu.matmul %58, %60, %cst_37 {dimension_numbers = #tpu.dot_dimension_numbers<[1], [0], [0], [1], [0, 0, 1, 1], [], []>} : vector<2x64xf32>, vector<64x128xf32>, vector<2x128xf32> -> vector<2x128xf32>
    %c0_38 = arith.constant 0 : index
    %c0_39 = arith.constant 0 : index
    %c0_40 = arith.constant 0 : index
    %62 = vector.load %arg19[%c0_38, %c0_39, %c0_40] : memref<1x1x128xf32, #tpu.memory_space<vmem>>, vector<1x1x128xf32>
    %63 = vector.shape_cast %62 : vector<1x1x128xf32> to vector<1x128xf32>
    %64 = vector.broadcast %63 : vector<1x128xf32> to vector<2x128xf32>
    %65 = arith.addf %61, %64 : vector<2x128xf32>
    %c0_41 = arith.constant 0 : index
    %c0_42 = arith.constant 0 : index
    %c0_43 = arith.constant 0 : index
    %66 = vector.load %arg20[%c0_41, %c0_42, %c0_43] : memref<1x2x128xf32, #tpu.memory_space<vmem>>, vector<1x2x128xf32>
    %67 = vector.shape_cast %66 : vector<1x2x128xf32> to vector<2x128xf32>
    %68 = vector.shape_cast %65 : vector<2x128xf32> to vector<1x2x128xf32>
    tpu.vector_store %arg20[%c0_41, %c0_42, %c0_43], %68 {strides = array<i32>} : memref<1x2x128xf32, #tpu.memory_space<vmem>>, vector<1x2x128xf32>,
    return
  }
  func.func @transform_0(%arg0: i32) -> (i32, i32) {
    %c0_i32 = arith.constant 0 : i32
    %c0_i32_0 = arith.constant 0 : i32
    %c0_i32_1 = arith.constant 0 : i32
    return %c0_i32, %c0_i32_0 : i32, i32
  }
  func.func @transform_1(%arg0: i32) -> (i32, i32, i32) {
    %c0_i32 = arith.constant 0 : i32
    %c0_i32_0 = arith.constant 0 : i32
    %c0_i32_1 = arith.constant 0 : i32
    return %arg0, %c0_i32, %c0_i32_0 : i32, i32, i32
  }
  func.func @transform_2(%arg0: i32) -> (i32, i32, i32) {
    %c0_i32 = arith.constant 0 : i32
    %c0_i32_0 = arith.constant 0 : i32
    %c0_i32_1 = arith.constant 0 : i32
    return %arg0, %c0_i32, %c0_i32_0 : i32, i32, i32
  }
  func.func @transform_3(%arg0: i32) -> (i32, i32, i32, i32) {
    %c0_i32 = arith.constant 0 : i32
    %c0_i32_0 = arith.constant 0 : i32
    %c0_i32_1 = arith.constant 0 : i32
    %c0_i32_2 = arith.constant 0 : i32
    return %arg0, %c0_i32, %c0_i32_0, %c0_i32_1 : i32, i32, i32, i32
  }
  func.func @transform_4(%arg0: i32) -> (i32, i32, i32, i32) {
    %c0_i32 = arith.constant 0 : i32
    %c0_i32_0 = arith.constant 0 : i32
    %c0_i32_1 = arith.constant 0 : i32
    %c0_i32_2 = arith.constant 0 : i32
    return %arg0, %c0_i32, %c0_i32_0, %c0_i32_1 : i32, i32, i32, i32
  }
  func.func @transform_5(%arg0: i32) -> (i32, i32, i32, i32) {
    %c0_i32 = arith.constant 0 : i32
    %c0_i32_0 = arith.constant 0 : i32
    %c0_i32_1 = arith.constant 0 : i32
    %c0_i32_2 = arith.constant 0 : i32
    return %arg0, %c0_i32, %c0_i32_0, %c0_i32_1 : i32, i32, i32, i32
  }
  func.func @transform_6(%arg0: i32) -> (i32, i32, i32, i32) {
    %c0_i32 = arith.constant 0 : i32
    %c0_i32_0 = arith.constant 0 : i32
    %c0_i32_1 = arith.constant 0 : i32
    %c0_i32_2 = arith.constant 0 : i32
    return %arg0, %c0_i32, %c0_i32_0, %c0_i32_1 : i32, i32, i32, i32
  }
  func.func @transform_7(%arg0: i32) -> (i32, i32, i32, i32) {
    %c0_i32 = arith.constant 0 : i32
    %c0_i32_0 = arith.constant 0 : i32
    %c0_i32_1 = arith.constant 0 : i32
    %c0_i32_2 = arith.constant 0 : i32
    return %arg0, %c0_i32, %c0_i32_0, %c0_i32_1 : i32, i32, i32, i32
  }
  func.func @transform_8(%arg0: i32) -> (i32, i32, i32, i32) {
    %c0_i32 = arith.constant 0 : i32
    %c0_i32_0 = arith.constant 0 : i32
    %c0_i32_1 = arith.constant 0 : i32
    %c0_i32_2 = arith.constant 0 : i32
    return %arg0, %c0_i32, %c0_i32_0, %c0_i32_1 : i32, i32, i32, i32
  }
  func.func @transform_9(%arg0: i32) -> (i32, i32, i32, i32) {
    %c0_i32 = arith.constant 0 : i32
    %c0_i32_0 = arith.constant 0 : i32
    %c0_i32_1 = arith.constant 0 : i32
    %c0_i32_2 = arith.constant 0 : i32
    return %arg0, %c0_i32, %c0_i32_0, %c0_i32_1 : i32, i32, i32, i32
  }
  func.func @transform_10(%arg0: i32) -> (i32, i32, i32, i32) {
    %c0_i32 = arith.constant 0 : i32
    %c0_i32_0 = arith.constant 0 : i32
    %c0_i32_1 = arith.constant 0 : i32
    %c0_i32_2 = arith.constant 0 : i32
    return %arg0, %c0_i32, %c0_i32_0, %c0_i32_1 : i32, i32, i32, i32
  }
  func.func @transform_11(%arg0: i32) -> (i32, i32, i32, i32) {
    %c0_i32 = arith.constant 0 : i32
    %c0_i32_0 = arith.constant 0 : i32
    %c0_i32_1 = arith.constant 0 : i32
    %c0_i32_2 = arith.constant 0 : i32
    return %arg0, %c0_i32, %c0_i32_0, %c0_i32_1 : i32, i32, i32, i32
  }
  func.func @transform_12(%arg0: i32) -> (i32, i32, i32, i32) {
    %c0_i32 = arith.constant 0 : i32
    %c0_i32_0 = arith.constant 0 : i32
    %c0_i32_1 = arith.constant 0 : i32
    %c0_i32_2 = arith.constant 0 : i32
    return %arg0, %c0_i32, %c0_i32_0, %c0_i32_1 : i32, i32, i32, i32
  }
  func.func @transform_13(%arg0: i32) -> (i32, i32, i32) {
    %c0_i32 = arith.constant 0 : i32
    %c0_i32_0 = arith.constant 0 : i32
    %c0_i32_1 = arith.constant 0 : i32
    return %arg0, %c0_i32, %c0_i32_0 : i32, i32, i32
  }
  func.func @transform_14(%arg0: i32) -> (i32, i32, i32) {
    %c0_i32 = arith.constant 0 : i32
    %c0_i32_0 = arith.constant 0 : i32
    %c0_i32_1 = arith.constant 0 : i32
    return %arg0, %c0_i32, %c0_i32_0 : i32, i32, i32
  }
  func.func @transform_15(%arg0: i32) -> (i32, i32, i32) {
    %c0_i32 = arith.constant 0 : i32
    %c0_i32_0 = arith.constant 0 : i32
    %c0_i32_1 = arith.constant 0 : i32
    return %arg0, %c0_i32, %c0_i32_0 : i32, i32, i32
  }
  func.func @transform_16(%arg0: i32) -> (i32, i32, i32) {
    %c0_i32 = arith.constant 0 : i32
    %c0_i32_0 = arith.constant 0 : i32
    %c0_i32_1 = arith.constant 0 : i32
    return %arg0, %c0_i32, %c0_i32_0 : i32, i32, i32
  }
  func.func @transform_17(%arg0: i32) -> (i32, i32, i32) {
    %c0_i32 = arith.constant 0 : i32
    %c0_i32_0 = arith.constant 0 : i32
    %c0_i32_1 = arith.constant 0 : i32
    return %arg0, %c0_i32, %c0_i32_0 : i32, i32, i32
  }
  func.func @transform_18(%arg0: i32) -> (i32, i32, i32) {
    %c0_i32 = arith.constant 0 : i32
    %c0_i32_0 = arith.constant 0 : i32
    %c0_i32_1 = arith.constant 0 : i32
    return %arg0, %c0_i32, %c0_i32_0 : i32, i32, i32
  }
  func.func @transform_19(%arg0: i32) -> (i32, i32, i32) {
    %c0_i32 = arith.constant 0 : i32
    %c0_i32_0 = arith.constant 0 : i32
    %c0_i32_1 = arith.constant 0 : i32
    return %arg0, %c0_i32, %c0_i32_0 : i32, i32, i32
  }
}

</mosaic_0001>

<bundles_post_ra>
// kernel: tpu_custom_call.1
= control target key start
LH: loop header
LB: loop body
LE: loop exit
PB: predicated region body
PF: predicated region fallthrough
CT: control target
= control target key end

     0   :  { %s10354_s0 = inlined_call_operand.vmem [shape: f32[16,32], index: 0, kind: input, shape index: {}]   ;;  %s10355_s1 = inlined_call_operand.vmem [shape: f32[3,1,32], index: 1, kind: input, shape index: {}]   ;;  %s10356_s2 = inlined_call_operand.vmem [shape: f32[3,1,32], index: 2, kind: input, shape index: {}]   ;;  %s10357_s3 = inlined_call_operand.vmem [shape: f32[3,3,32,384], index: 3, kind: input, shape index: {}]   ;;  %s10358_s4 = inlined_call_operand.vmem [shape: f32[3,3,128,32], index: 4, kind: input, shape index: {}]   ;;  %s10359_s5 = inlined_call_operand.vmem [shape: f32[3,3,1,32], index: 5, kind: input, shape index: {}]   ;;  %s10360_s6 = inlined_call_operand.vmem [shape: f32[3,3,1,32], index: 6, kind: input, shape index: {}]   ;;  %s10361_s7 = inlined_call_operand.vmem [shape: f32[3,3,32,64], index: 7, kind: input, shape index: {}]   ;;  %s10362_s8 = inlined_call_operand.vmem [shape: f32[3,3,1,64], index: 8, kind: input, shape index: {}]   ;;  %s10363_s9 = inlined_call_operand.vmem [shape: f32[3,3,64,32], index: 9, kind: input, shape index: {}]   ;;  %s10364_s10 = inlined_call_operand.vmem [shape: f32[3,3,1,32], index: 10, kind: input, shape index: {}]   ;;  %s10365_s11 = inlined_call_operand.vmem [shape: f32[3,3,1,32], index: 11, kind: input, shape index: {}]   ;;  %s10366_s12 = inlined_call_operand.vmem [shape: f32[3,3,1,32], index: 12, kind: input, shape index: {}]   ;;  %s10367_s13 = inlined_call_operand.vmem [shape: f32[3,32,256], index: 13, kind: input, shape index: {}]   ;;  %s10368_s14 = inlined_call_operand.vmem [shape: f32[3,1,256], index: 14, kind: input, shape index: {}]   ;;  %s10369_s15 = inlined_call_operand.vmem [shape: f32[3,256,64], index: 15, kind: input, shape index: {}]   ;;  %s10370_s16 = inlined_call_operand.vmem [shape: f32[3,1,64], index: 16, kind: input, shape index: {}]   ;;  %s10371_s17 = inlined_call_operand.vmem [shape: f32[3,64,128], index: 17, kind: input, shape index: {}]   ;;  %s10372_s18 = inlined_call_operand.vmem [shape: f32[3,1,128], index: 18, kind: input, shape index: {}]   ;;  %s10373_s19 = inlined_call_operand.hbm [shape: f32[3,2,128], index: 19, kind: output, shape index: {}]  }
   0x1   :  { %10387 = sst [smem:[#allocation17_spill]] %s10354_s0 }
   0x2   :  { %10388 = sst [smem:[#allocation18_spill]] %s10355_s1 }
   0x3   :  { %10389 = sst [smem:[#allocation19_spill]] %s10356_s2 }
   0x4   :  { %10390 = sst [smem:[#allocation20_spill]] %s10357_s3 }
   0x5   :  { %10391 = sst [smem:[#allocation21_spill]] %s10358_s4 }
   0x6   :  { %10392 = sst [smem:[#allocation22_spill]] %s10359_s5 }
   0x7   :  { %10393 = sst [smem:[#allocation23_spill]] %s10360_s6 }
   0x8   :  { %10394 = sst [smem:[#allocation24_spill]] %s10361_s7 }
   0x9   :  { %10395 = sst [smem:[#allocation25_spill]] %s10362_s8 }
   0xa   :  { %10396 = sst [smem:[#allocation26_spill]] %s10363_s9 }
   0xb   :  { %10397 = sst [smem:[#allocation27_spill]] %s10364_s10 }
   0xc   :  { %10398 = sst [smem:[#allocation28_spill]] %s10365_s11 }
   0xd   :  { %10399 = sst [smem:[#allocation29_spill]] %s10366_s12 }
   0xe   :  { %10400 = sst [smem:[#allocation30_spill]] %s10367_s13 }
   0xf   :  { %10401 = sst [smem:[#allocation31_spill]] %s10368_s14 }
  0x10   :  { %10402 = sst [smem:[#allocation32_spill]] %s10370_s16 }
  0x11   :  { %10403 = sst [smem:[#allocation33_spill]] %s10371_s17 }
  0x12   :  { %10404 = sst [smem:[#allocation34_spill]] %s10372_s18 }
  0x13   :  { %10405 = sst [smem:[#allocation35_spill]] %s10373_s19 }
  0x14   :  { %24 = vsyncpa [#allocation4], 0 }
  0x15   :  { %26 = vsyncpa [#allocation4 + $0x1], 0  ;;  %s9340_s0 = smov 0   ;;  %s9342_s30 = smov 0  }
  0x16   :  { %s9344_s20 = smov 0   ;;  %s9346_s21 = smov 0  }
  0x17 LB: > { %10406 = sst [smem:[#allocation6_spill]] %s9208_s0  ;;  %s9361_s1 = sadd.s32 4294967295, %s9220_s21   ;;  %s9220_s21 = sphi %s9346_s21, %s10455_s21   ;;  %s9216_s20 = sphi %s9344_s20, %s10460_s20   ;;  %s9212_s30 = sphi %s9342_s30, %s10459_s30   ;;  %s9208_s0 = sphi %s9340_s0, %s10458_s0  }
  0x18   : > { %10407 = sst [smem:[#allocation7_spill]] %s9216_s20  ;;  %s7921_s22 = sadd.s32 4294967294, %s9220_s21  }
  0x19   : > { %10408 = sst [smem:[#allocation8_spill]] %s9220_s21  ;;  %s9365_s2 = sadd.s32 1, %s9220_s21  }
  0x1a   : > { %10409 = sst [smem:[#allocation9_spill]] %s9361_s1  ;;  %s528_s23 = sadd.s32 1, %s9216_s20 }
  0x1b   : > { %10410 = sst [smem:[#allocation10_spill]] %s9365_s2  ;;  %s525_s24 = ssub.s32 %s9220_s21, %s9365_s2 }
  0x1c   : > { %p538_p0 = scmp.ne.s32.totalorder %s9216_s20, %s9212_s30  ;;  %p526_p1 = scmp.eq.s32.totalorder %s525_s24, 0 }
  0x1d   : > { %p539_p2 = scmp.eq.s32.totalorder %s9361_s1, 2  ;;  %p544_p3 = scmp.ne.s32.totalorder %s9212_s30, %s9208_s0 }
  0x1e   : > { %p545_p4 = scmp.eq.s32.totalorder %s7921_s22, 2  ;;  %p7924_p7 = scmp.ge.s32.totalorder %s9220_s21, 1 }
  0x1f   : > { %s9376_s25 = scalar_select %p526_p1, %s9216_s20, %s528_s23  }
  0x20   : > { %p9378_p5 = por %p539_p2, %p538_p0  ;;  %p9382_p6 = por %p545_p4, %p544_p3 }
  0x21   : > { %10411 = sst [smem:[#allocation11_spill]] %s9376_s25  ;;  %p695_p8 = scmp.lt.s32.totalorder %s9220_s21, 4 }
  0x22   : > { %s10412_s3 = scalar_select %p9378_p5, 1, 0 }
  0x23   : > { %s10414_s26 = scalar_select %p9382_p6, 1, 0 }
  0x24   : > { %10413 = sst [smem:[#allocation12_spill]] %s10412_s3  ;;  %p696_p9 = pnand %p7924_p7, %p695_p8 }
  0x25   : > { %10415 = sst [smem:[#allocation13_spill]] %s10414_s26 }
  0x26   : > { %699 = sbr.rel (%p696_p9) target bundleno = 11037 (0x2b1d), region = 96 }
  0x2b   : > { %s10416_s29 = sld [smem:[#allocation17_spill]]  ;;  %vm900_vm0 = vcmask 261120   ;;  %p821_p10 = scmp.lt.s32.totalorder %s9361_s1, 2 }
  0x2c   : > { %s10417_s13 = sld [smem:[#allocation30_spill]] }
  0x2d   : > { %s9412_s24 = scalar_select %p821_p10, %s9361_s1, 2 }
  0x2e   : > { %s10419_s26 = sld [smem:[#allocation20_spill]] }
  0x2f   : > { %s8975_s27 = smul.u32 288, %s9412_s24  ;;  %s8180_s28 = sshll.u32 %s9412_s24, 6 }
  0x30   : > { %s8976_s22 = smul.u32 384, %s9412_s24  ;;  %s10420_s4 = sld [smem:[#allocation21_spill]] }
  0x31   : > { %v9391_v0 = vld [vmem:[%s10416_s29] sm:$0xff]  ;;  %v9396_v1 = vld [vmem:[%s10416_s29 + $0x8] sm:$0xff]  ;;  %s8977_s21 = smul.u32 3, %s9412_s24  ;;  %s10421_s5 = sld [smem:[#allocation22_spill]] }
  0x32   : > { %v901_v2 = vsel %vm900_vm0, %v9391_v0, 0.0  ;;  %v910_v3 = vmul.f32 %v9391_v0, %v9391_v0  ;;  %v911_v4 = vmul.f32 %v9396_v1, %v9396_v1  ;;  %v904_v6 = vsel %vm900_vm0, %v9396_v1, 0.0  ;;  %s9420_s25 = scalar_lea.vmem %s10417_s13, %s8180_s28  ;;  %s8978_s18 = smul.u32 96, %s9412_s24 }
  0x33   : > { %902 = vadd.xlane.f32.xlu0 %v901_v2  ;;  %10418 = sst [smem:[#allocation14_spill]] %s9420_s25  ;;  %s8979_s16 = smul.u32 192, %s9412_s24 }
  0x34   : > { %v912_v5 = vsel %vm900_vm0, %v910_v3, 0.0  ;;  %v915_v7 = vsel %vm900_vm0, %v911_v4, 0.0  ;;  %s9425_s0 = scalar_lea.vmem %s10419_s26, %s8975_s27  ;;  %s10422_s6 = sld [smem:[#allocation23_spill]] }
  0x35   : > { %913 = vadd.xlane.f32.xlu1 %v912_v5  ;;  %s10423_s7 = sld [smem:[#allocation24_spill]] }
  0x36   : > { %s9431_s1 = scalar_lea.vmem %s10420_s4, %s8976_s22  ;;  %s10424_s8 = sld [smem:[#allocation25_spill]] }
  0x37   : > { %905 = vadd.xlane.f32.xlu0 %v904_v6  ;;  %s9437_s29 = scalar_lea.vmem %s10421_s5, %s8977_s21  ;;  %s10425_s10 = sld [smem:[#allocation27_spill]] }
  0x38   : > { %s10426_s11 = sld [smem:[#allocation28_spill]]  ;;  %s818_s4 = sand.u32 1, %s9212_s30  }
  0x39   : > { %916 = vadd.xlane.f32.xlu1 %v915_v7  ;;  %s10428_s12 = sld [smem:[#allocation29_spill]] }
  0x3a   : > { %s9442_s20 = scalar_lea.vmem %s10422_s6, %s8977_s21  ;;  %s10430_s9 = sld [smem:[#allocation26_spill]] }
  0x3b   : > { %s9447_s19 = scalar_lea.vmem %s10423_s7, %s8978_s18  ;;  %s10431_s14 = sld [smem:[#allocation31_spill]] }
  0x3c   : > { %s9452_s22 = scalar_lea.vmem %s10424_s8, %s8977_s21  ;;  %s7932_s8 = sshll.u32 %s9412_s24, 1 }
  0x3d   : > { %s9458_s5 = scalar_lea.vmem %s10425_s10, %s8977_s21  ;;  %s8181_s10 = sshll.u32 %s9412_s24, 8 }
  0x3e   : > { %s9463_s6 = scalar_lea.vmem %s10426_s11, %s8977_s21  ;;  %s9485_s11 = scalar_lea.vmem %s10369_s15, %s8181_s10 }
  0x3f   : > { %10427 = sst [smem:[#allocation15_spill]] %s9463_s6  ;;  %s9468_s18 = scalar_lea.vmem %s10428_s12, %s8977_s21 }
  0x40   : > { %10429 = sst [smem:[#allocation16_spill]] %s9468_s18  ;;  %s9473_s27 = scalar_lea.vmem %s10430_s9, %s8979_s16 }
  0x41   : > { %s9479_s17 = scalar_lea.vmem %s10431_s14, %s7932_s8  ;;  %s10432_s26 = sld [smem:[#allocation32_spill]] }
  0x42   : > { %s10433_s16 = sld [smem:[#allocation33_spill]]  ;;  %s9503_s14 = sshll.u32 %s818_s4, 1 }
  0x43   : > { %s10434_s25 = sld [smem:[#allocation34_spill]]  ;;  %s820_s21 = scalar_lea.vmem [#allocation3], %s9503_s14 }
  0x44   : > { %s10435_s10 = sld [smem:[#allocation18_spill]] }
  0x45   : > { %s10436_s23 = sld [smem:[#allocation19_spill]] }
  0x47   : > { %s887_s12 = scalar_lea.vmem %s10432_s26, %s9412_s24  ;;  %s10437_s26 = sld [smem:[#allocation9_spill]] }
  0x48   : > { %s9494_s3 = scalar_lea.vmem %s10433_s16, %s8180_s28 }
  0x49   : > { %s895_s8 = scalar_lea.vmem %s10434_s25, %s9412_s24 }
  0x4a   : > { %s823_s28 = scalar_lea.vmem %s10435_s10, %s9412_s24 }
  0x4b   : > { %s826_s2 = scalar_lea.vmem %s10436_s23, %s9412_s24  ;;  %v7937_v24 = vld [vmem:[%s823_s28] ss:$0 sm:$0xff] }
  0x4c   : > { %v7938_v26 = vld [vmem:[%s826_s2] ss:$0 sm:$0xff] }
  0x4d   : > { %p7939_p11 = scmp.lt.s32.totalorder %s10437_s26, 0 }
  0x4e   : > { %s9224_s7 = smov (!%p7939_p11), 96   ;;  %s9225_s16 = smov (!%p7939_p11), 64  }
  0x4f   : > { %s9226_s25 = smov (!%p7939_p11), 32   ;;  %s10438_s6 = sld [smem:[#allocation15_spill]] (!%p7939_p11) }
  0x50   : > { %s10439_s9 = sld [smem:[#allocation16_spill]] (!%p7939_p11) }
  0xbc   : > { %v903_v8 = vpop.xlane.xlu0 %902 }
  0xbd   : > { %v908_v9 = vmul.f32 0.03125, %v903_v8 }
  0xbe   : > { %v914_v10 = vpop.xlane.xlu1 %913 }
  0xbf   : > { %v920_v11 = vmul.f32 %v908_v9, %v908_v9  ;;  %v918_v12 = vmul.f32 0.03125, %v914_v10  ;;  %v924_v22 = vsub.f32 %v9391_v0, %v908_v9 }
  0xc0   : > { %v906_v13 = vpop.xlane.xlu0 %905 }
  0xc1   : > { %v922_v14 = vsub.f32 %v918_v12, %v920_v11  ;;  %v909_v15 = vmul.f32 0.03125, %v906_v13 }
  0xc2   : > { %v917_v16 = vpop.xlane.xlu1 %916 }
  0xc3   : > { %v926_v17 = vadd.f32 1e-06, %v922_v14  ;;  %v921_v18 = vmul.f32 %v909_v15, %v909_v15  ;;  %v919_v19 = vmul.f32 0.03125, %v917_v16  ;;  %v925_v28 = vsub.f32 %v9396_v1, %v909_v15 }
  0xc5   : > { %9036 = vrsqrt.f32 %v926_v17  ;;  %v923_v20 = vsub.f32 %v919_v19, %v921_v18 }
  0xc7   : > { %v927_v21 = vadd.f32 1e-06, %v923_v20 }
  0xc9   : > { %9038 = vrsqrt.f32 %v927_v21 }
  0xd2   : > { %v9037_v23 = vpop.eup %9036 }
  0xd3   : > { %v930_v25 = vmul.f32 %v9037_v23, %v924_v22 }
  0xd5   : > { %v938_v27 = vmul.f32 %v7937_v24, %v930_v25 }
  0xd6   : > { %v9039_v29 = vpop.eup %9038 }
  0xd7   : > { %v946_v30 = vadd.f32 %v7938_v26, %v938_v27  ;;  %v931_v31 = vmul.f32 %v9039_v29, %v925_v28 }
  0xd9   : > { %948 = vst.msk [vmem:[#allocation2] sm:$0xff] %vm900_vm0, %v946_v30  ;;  %v939_v32 = vmul.f32 %v7937_v24, %v931_v31  ;;  %953 = sbr.rel (%p7939_p11) target bundleno = 3613 (0xe1d), region = 100 }
  0xdb   : > { %v947_v33 = vadd.f32 %v7938_v26, %v939_v32 }
  0xdd   : > { %949 = vst.msk [vmem:[#allocation2 + $0x8] sm:$0xff] %vm900_vm0, %v947_v33 }
  0xde   : > { %v966_v34 = vld [vmem:[%s9425_s0 + $0x50] sm:$0xff]  ;;  %v965_v35 = vld [vmem:[%s9425_s0 + $0x48] sm:$0xff]  ;;  %v963_v36 = vld [vmem:[%s9425_s0 + $0x38] sm:$0xff]  ;;  %v9222_v38 = vmov 0.0   ;;  %vm9223_vm1 = vmmov 0   ;;  %vm1280_vm2 = vcmask 64512  }
  0xdf   : > { %998 = vmatprep.subr.mxu0 %v966_v34  ;;  %v962_v37 = vld [vmem:[%s9425_s0 + $0x30] sm:$0xff]  ;;  %1038 = vmatprep.mubr.f32.mxu0 %v9222_v38  ;;  %v960_v39 = vld [vmem:[%s9425_s0 + $0x20] sm:$0xff]  ;;  %v959_v40 = vld [vmem:[%s9425_s0 + $0x18] sm:$0xff]  ;;  %vm2944_vm3 = vcmask 523264  }
  0xe0   : > { %999 = vmatpush1.msra.mxu0 %v965_v35  ;;  %8472 = vmatprep.subr.mxu1 %v9222_v38  ;;  %v957_v41 = vld [vmem:[%s9425_s0 + $0x8] sm:$0xff]  ;;  %v956_v42 = vld [vmem:[%s9425_s0] sm:$0xff]  ;;  %v967_v44 = vld [vmem:[%s9425_s0 + $0x58] sm:$0xff] }
  0xe1   : > { %1000 = vmatprep.subr.mxu0 %v963_v36  ;;  %v9529_v43 = vld [vmem:[#allocation2] sm:$0xff]  ;;  %v961_v47 = vld [vmem:[%s9425_s0 + $0x28] sm:$0xff]  ;;  %v958_v48 = vld [vmem:[%s9425_s0 + $0x10] sm:$0xff]  ;;  %8474 = vmatprep.mubr.msk.f32.mxu1 %vm9223_vm1, %v9222_v38 }
  0xe2   : > { %1001 = vmatpush1.msra.mxu0 %v962_v37  ;;  %v964_v45 = vld [vmem:[%s9425_s0 + $0x40] sm:$0xff] }
  0xe3   : > { %1002 = vmatprep.subr.mxu0 %v960_v39 }
  0xe4   : > { %1003 = vmatpush1.msra.mxu0 %v959_v40  ;;  %v9536_v46 = vld [vmem:[#allocation2 + $0x8] sm:$0xff] }
  0xe5   : > { %1004 = vmatprep.subr.mxu0 %v957_v41  ;;  %v1452_v41 = vld [vmem:[%s9431_s1 + $0x18] sm:$0xff] }
  0xe6   : > { %1005 = vmatpush1.msra.mxu0 %v956_v42 }
  0xe7   : > { %7940 = vmatmul.mubr.msk.f32.vlgmr.msra.gmra.mxu0 %vm900_vm0, %v9529_v43  ;;  %8461 = vmatprep.subr.mxu0 %v967_v44 }
  0xe8   : > { %1044 = vmatprep.mubr.f32.mxu0 %v9222_v38  ;;  %8462 = vmatpush3.msra.mxu0 %v967_v44 }
  0xe9   : > { %8463 = vmatprep.subr.mxu0 %v964_v45 }
  0xea   : > { %8464 = vmatpush3.msra.mxu0 %v964_v45  ;;  %v1788_v45 = vld [vmem:[%s9431_s1 + $0x38] sm:$0xff] }
  0xeb   : > { %7941 = vmatmul.mubr.msk.f32.gmra.mxu0 %vm900_vm0, %v9536_v46  ;;  %8465 = vmatprep.subr.mxu0 %v961_v47 }
  0xec   : > { %8469 = vmatprep.mubr.msk.f32.mxu0 %vm900_vm0, %v9529_v43  ;;  %8466 = vmatpush3.msra.mxu0 %v961_v47 }
  0xed   : > { %8467 = vmatprep.subr.mxu0 %v958_v48 }
  0xee   : > { %8468 = vmatpush3.msra.mxu0 %v958_v48 }
  0xef   : > { %8470 = vmatmul.mubr.msk.f32.vlgmr.msra.gmra.mxu0 %vm900_vm0, %v9536_v46  ;;  %8477 = vmatprep.subr.mxu0 %v9222_v38 }
  0xf0   : > { %8479 = vmatprep.mubr.msk.f32.mxu0 %vm9223_vm1, %v9222_v38 }
 0x1a7   : > { %v1040_v49 = vpop.f32.mrf.mxu0 }
 0x1a8   : > { %v9555_v51 = vmul.f32 0.17677669, %v1040_v49 }
 0x1a9   : > { %v9551_v50 = vpop.f32.mrf.mxu0 }
 0x1aa   : > { %8473 = vmatpush3.xpose.msk.msra.mxu1 %vm900_vm0, %v9551_v50 }
 0x1ab   : > { %v1046_v52 = vpop.f32.mrf.mxu0  ;;  %8482 = vmatprep.subr.mxu1 %v9222_v38 }
 0x1ac   : > { %v9566_v54 = vmul.f32 0.17677669, %v1046_v52  ;;  %v1787_v52 = vld [vmem:[%s9431_s1 + $0x30] sm:$0xff] }
 0x1ad   : > { %v9558_v53 = vpop.f32.mrf.mxu0  ;;  %8475 = vmatmul.mubr.msk.f32.vlgmr.msra.gmra.mxu1 %vm900_vm0, %v9555_v51 }
 0x1ae   : > { %1533 = vrot.lane.b32.xlu1 %v9558_v53, %s9224_s7  ;;  %8478 = vmatpush3.xpose.msk.msra.mxu0 %vm900_vm0, %v9558_v53 }
 0x1af   : > { %8487 = vmatprep.subr.mxu0 %v9222_v38  ;;  %8484 = vmatprep.mubr.msk.f32.mxu1 %vm9223_vm1, %v9222_v38  ;;  %v9577_v55 = vpop.f32.mrf.mxu0 }
 0x1b1   : > { %8480 = vmatmul.mubr.msk.f32.vlgmr.msra.gmra.mxu0 %vm900_vm0, %v9566_v54  ;;  %v9580_v56 = vpop.f32.mrf.mxu0 }
 0x1b2   : > { %1453 = vrot.lane.b32.xlu1 %v9555_v51, %s9224_s7  ;;  %8489 = vmatprep.mubr.msk.f32.mxu0 %vm9223_vm1, %v9222_v38 }
 0x1b3   : > { %8488 = vmatpush3.msra.mxu0 %v9577_v55  ;;  %8483 = vmatpush3.msra.mxu1 %v9580_v56 }
 0x1b4   : > { %8497 = vmatprep.subr.mxu0 %v9222_v38  ;;  %8492 = vmatprep.subr.mxu1 %v9222_v38 }
 0x220   : > { %v1534_v9 = vpop.permute.xlu1 %1533 }
 0x224   : > { %v1454_v10 = vpop.permute.xlu1 %1453 }
 0x26d   : > { %v1200_v57 = vpop.f32.mrf.mxu1 }
 0x26e   : > { %v1281_v58 = vsel %vm1280_vm2, %v1200_v57, -inf }
 0x26f   : > { %1282 = vmax.xlane.f32.xlu0 %v1281_v58  ;;  %v8476_v59 = vpop.f32.mrf.mxu1 }
 0x270   : > { %v1450_v59 = vld [vmem:[%s9431_s1 + $0x8] sm:$0xff] }
 0x271   : > { %v1276_v60 = vpop.f32.mrf.mxu0 }
 0x272   : > { %v1284_v61 = vsel %vm1280_vm2, %v1276_v60, -inf }
 0x273   : > { %1285 = vmax.xlane.f32.xlu0 %v1284_v61  ;;  %v8481_v62 = vpop.f32.mrf.mxu0 }
 0x289   : > { %1455 = vrot.lane.b32.xlu0 %v9551_v50, %s9224_s7 }
 0x2f8   : > { %v1283_v63 = vpop.xlane.xlu0 %1282 }
 0x2f9   : > { %v1287_v0 = vsub.f32 %v1200_v57, %v1283_v63  ;;  %v1786_v63 = vld [vmem:[%s9431_s1 + $0x28] sm:$0xff] }
 0x2fb   : > { %v1289_v1 = vmul.f32 1.442695, %v1287_v0  ;;  %v1785_v0 = vld [vmem:[%s9431_s1 + $0x20] sm:$0xff] }
 0x2fc   : > { %v1286_v2 = vpop.xlane.xlu0 %1285 }
 0x2fd   : > { %9040 = vpow2.f32 %v1289_v1  ;;  %v1288_v3 = vsub.f32 %v1276_v60, %v1286_v2  ;;  %v1449_v60 = vld [vmem:[%s9431_s1] sm:$0xff] }
 0x2ff   : > { %v1291_v4 = vmul.f32 1.442695, %v1288_v3 }
 0x300   : > { %v1456_v15 = vpop.permute.xlu0 %1455 }
 0x301   : > { %9042 = vpow2.f32 %v1291_v4 }
 0x30a   : > { %v9041_v5 = vpop.eup %9040 }
 0x30b   : > { %v1293_v6 = vsel %vm1280_vm2, %v9041_v5, 0.0 }
 0x30c   : > { %1294 = vadd.xlane.f32.xlu1 %v1293_v6 }
 0x30e   : > { %v9043_v7 = vpop.eup %9042 }
 0x30f   : > { %v1296_v8 = vsel %vm1280_vm2, %v9043_v7, 0.0 }
 0x310   : > { %1297 = vadd.xlane.f32.xlu1 %v1296_v8 }
 0x321   : > { %1531 = vrot.lane.b32.xlu1 %v9566_v54, %s9224_s7 }
 0x395   : > { %v1295_v11 = vpop.xlane.xlu1 %1294 }
 0x396   : > { %9044 = vrcp.f32 %v1295_v11 }
 0x399   : > { %v1298_v12 = vpop.xlane.xlu1 %1297 }
 0x39a   : > { %9046 = vrcp.f32 %v1298_v12 }
 0x39d   : > { %v1532_v18 = vpop.permute.xlu1 %1531 }
 0x3a3   : > { %v9045_v13 = vpop.eup %9044 }
 0x3a4   : > { %v1301_v14 = vmul.f32 %v9045_v13, %v9041_v5 }
 0x3a6   : > { %8485 = vmatmul.mubr.msk.f32.vlgmr.msra.gmra.mxu1 %vm1280_vm2, %v1301_v14 }
 0x3a7   : > { %v9047_v16 = vpop.eup %9046  ;;  %8493 = vmatpush3.xpose.msk.msra.mxu1 %vm900_vm0, %v1456_v15  ;;  %8494 = vmatprep.mubr.msk.f32.mxu1 %vm9223_vm1, %v9222_v38 }
 0x3a8   : > { %v1302_v17 = vmul.f32 %v9047_v16, %v9043_v7  ;;  %8502 = vmatprep.subr.mxu1 %v9222_v38 }
 0x3aa   : > { %8490 = vmatmul.mubr.msk.f32.vlgmr.msra.gmra.mxu0 %vm1280_vm2, %v1302_v17  ;;  %8495 = vmatmul.mubr.msk.f32.vlgmr.msra.gmra.mxu1 %vm900_vm0, %v1454_v10 }
 0x3ab   : > { %8498 = vmatpush3.xpose.msk.msra.mxu0 %vm900_vm0, %v1534_v9  ;;  %8499 = vmatprep.mubr.msk.f32.mxu0 %vm9223_vm1, %v9222_v38 }
 0x3ac   : > { %8507 = vmatprep.subr.mxu0 %v9222_v38  ;;  %8504 = vmatprep.mubr.msk.f32.mxu1 %vm9223_vm1, %v9222_v38 }
 0x3ae   : > { %8500 = vmatmul.mubr.msk.f32.vlgmr.msra.gmra.mxu0 %vm900_vm0, %v1532_v18 }
 0x3af   : > { %8509 = vmatprep.mubr.msk.f32.mxu0 %vm9223_vm1, %v9222_v38 }
 0x466   : > { %v1372_v19 = vpop.f32.mrf.mxu1 }
 0x468   : > { %v8486_v20 = vpop.f32.mrf.mxu1 }
 0x46a   : > { %v9609_v21 = vpop.f32.mrf.mxu0  ;;  %v1527_v22 = vpop.f32.mrf.mxu1 }
 0x46b   : > { %v1609_v23 = vsel %vm1280_vm2, %v1527_v22, -inf }
 0x46c   : > { %1610 = vmax.xlane.f32.xlu0 %v1609_v23  ;;  %v8491_v24 = vpop.f32.mrf.mxu0  ;;  %v8496_v25 = vpop.f32.mrf.mxu1 }
 0x46e   : > { %v1605_v26 = vpop.f32.mrf.mxu0 }
 0x46f   : > { %v1612_v27 = vsel %vm1280_vm2, %v1605_v26, -inf }
 0x470   : > { %1613 = vmax.xlane.f32.xlu1 %v1612_v27  ;;  %v8501_v28 = vpop.f32.mrf.mxu0 }
 0x481   : > { %1709 = vrot.lane.b32.xlu1 %v9577_v55, %s9224_s7 }
 0x485   : > { %2031 = vrot.lane.b32.xlu1 %v9558_v53, %s9225_s16 }
 0x489   : > { %2029 = vrot.lane.b32.xlu1 %v9566_v54, %s9225_s16 }
 0x48d   : > { %1951 = vrot.lane.b32.xlu1 %v9555_v51, %s9225_s16 }
 0x491   : > { %2370 = vrot.lane.b32.xlu1 %v9551_v50, %s9226_s25 }
 0x4f5   : > { %v1611_v29 = vpop.xlane.xlu0 %1610 }
 0x4f6   : > { %v1615_v30 = vsub.f32 %v1527_v22, %v1611_v29 }
 0x4f8   : > { %v1617_v31 = vmul.f32 1.442695, %v1615_v30 }
 0x4f9   : > { %v1614_v32 = vpop.xlane.xlu1 %1613 }
 0x4fa   : > { %9048 = vpow2.f32 %v1617_v31  ;;  %v1616_v33 = vsub.f32 %v1605_v26, %v1614_v32 }
 0x4fc   : > { %v1619_v34 = vmul.f32 1.442695, %v1616_v33 }
 0x4fd   : > { %v1710_v35 = vpop.permute.xlu1 %1709 }
 0x4fe   : > { %9050 = vpow2.f32 %v1619_v34  ;;  %8508 = vmatpush3.msra.mxu0 %v1710_v35 }
 0x4ff   : > { %8523 = vmatprep.subr.mxu0 %v1452_v41 }
 0x501   : > { %v2032_v61 = vpop.permute.xlu1 %2031 }
 0x505   : > { %v2030_v62 = vpop.permute.xlu1 %2029 }
 0x507   : > { %v9049_v36 = vpop.eup %9048 }
 0x508   : > { %v1621_v37 = vsel %vm1280_vm2, %v9049_v36, 0.0 }
 0x509   : > { %1622 = vadd.xlane.f32.xlu0 %v1621_v37  ;;  %v1952_v6 = vpop.permute.xlu1 %1951 }
 0x50b   : > { %v9051_v39 = vpop.eup %9050 }
 0x50c   : > { %v1624_v40 = vsel %vm1280_vm2, %v9051_v39, 0.0 }
 0x50d   : > { %1625 = vadd.xlane.f32.xlu0 %v1624_v40 }
 0x523   : > { %1632 = vrot.lane.b32.xlu0 %v9580_v56, %s9224_s7 }
 0x527   : > { %1953 = vrot.lane.b32.xlu0 %v9551_v50, %s9225_s16  ;;  %v1451_v50 = vld [vmem:[%s9431_s1 + $0x10] sm:$0xff] }
 0x592   : > { %v1623_v42 = vpop.xlane.xlu0 %1622 }
 0x593   : > { %9052 = vrcp.f32 %v1623_v42 }
 0x596   : > { %v1626_v44 = vpop.xlane.xlu0 %1625 }
 0x597   : > { %9054 = vrcp.f32 %v1626_v44 }
 0x59a   : > { %v1633_v47 = vpop.permute.xlu0 %1632 }
 0x59b   : > { %8503 = vmatpush3.msra.mxu1 %v1633_v47  ;;  %v2284_v47 = vld [vmem:[%s9431_s1 + $0x58] sm:$0xff] }
 0x59c   : > { %8512 = vmatprep.subr.mxu1 %v1788_v45 }
 0x59e   : > { %v1954_v4 = vpop.permute.xlu0 %1953 }
 0x5a0   : > { %v9053_v48 = vpop.eup %9052 }
 0x5a1   : > { %v1629_v49 = vmul.f32 %v9053_v48, %v9049_v36  ;;  %v2283_v48 = vld [vmem:[%s9431_s1 + $0x50] sm:$0xff] }
 0x5a3   : > { %8505 = vmatmul.mubr.msk.f32.vlgmr.msra.gmra.mxu1 %vm1280_vm2, %v1629_v49  ;;  %v2282_v49 = vld [vmem:[%s9431_s1 + $0x48] sm:$0xff] }
 0x5a4   : > { %v9055_v57 = vpop.eup %9054  ;;  %8513 = vmatpush3.msra.mxu1 %v1788_v45 }
 0x5a5   : > { %v1630_v58 = vmul.f32 %v9055_v57, %v9051_v39  ;;  %8514 = vmatprep.subr.mxu1 %v1787_v52 }
 0x5a6   : > { %8515 = vmatpush3.msra.mxu1 %v1787_v52  ;;  %v2281_v52 = vld [vmem:[%s9431_s1 + $0x40] sm:$0xff] }
 0x5a7   : > { %8510 = vmatmul.mubr.msk.f32.vlgmr.msra.gmra.mxu0 %vm1280_vm2, %v1630_v58  ;;  %8516 = vmatprep.subr.mxu1 %v1786_v63 }
 0x5a8   : > { %8524 = vmatpush3.msra.mxu0 %v1452_v41  ;;  %8531 = vmatprep.mubr.msk.f32.mxu0 %vm900_vm0, %v1372_v19 }
 0x5a9   : > { %8525 = vmatprep.subr.mxu0 %v1451_v50  ;;  %8517 = vmatpush3.msra.mxu1 %v1786_v63 }
 0x5aa   : > { %8526 = vmatpush3.msra.mxu0 %v1451_v50  ;;  %8518 = vmatprep.subr.mxu1 %v1785_v0 }
 0x5ab   : > { %8527 = vmatprep.subr.mxu0 %v1450_v59  ;;  %8519 = vmatpush3.msra.mxu1 %v1785_v0 }
 0x5ac   : > { %8528 = vmatpush3.msra.mxu0 %v1450_v59  ;;  %8534 = vmatprep.subr.mxu1 %v9222_v38 }
 0x5ad   : > { %8529 = vmatprep.subr.mxu0 %v1449_v60 }
 0x5ae   : > { %8530 = vmatpush3.msra.mxu0 %v1449_v60 }
 0x5af   : > { %8532 = vmatmul.mubr.msk.f32.vlgmr.msra.gmra.mxu0 %vm900_vm0, %v9609_v21  ;;  %8539 = vmatprep.subr.mxu0 %v9222_v38  ;;  %v2371_v21 = vpop.permute.xlu1 %2370 }
 0x5b0   : > { %8540 = vmatpush3.xpose.msk.msra.mxu0 %vm900_vm0, %v2032_v61  ;;  %8541 = vmatprep.mubr.msk.f32.mxu0 %vm9223_vm1, %v9222_v38 }
 0x5b1   : > { %8549 = vmatprep.subr.mxu0 %v9222_v38 }
 0x5b3   : > { %8542 = vmatmul.mubr.msk.f32.vlgmr.msra.gmra.mxu0 %vm900_vm0, %v2030_v62 }
 0x5b4   : > { %8551 = vmatprep.mubr.msk.f32.mxu0 %vm9223_vm1, %v9222_v38 }
 0x663   : > { %v1704_v1 = vpop.f32.mrf.mxu1 }
 0x664   : > { %8520 = vmatprep.mubr.msk.f32.mxu1 %vm900_vm0, %v1704_v1 }
 0x665   : > { %v8506_v2 = vpop.f32.mrf.mxu1 }
 0x667   : > { %v1781_v3 = vpop.f32.mrf.mxu0 }
 0x668   : > { %8521 = vmatmul.mubr.msk.f32.vlgmr.msra.gmra.mxu1 %vm900_vm0, %v1781_v3 }
 0x669   : > { %8535 = vmatpush3.xpose.msk.msra.mxu1 %vm900_vm0, %v1954_v4  ;;  %v8511_v5 = vpop.f32.mrf.mxu0  ;;  %8536 = vmatprep.mubr.msk.f32.mxu1 %vm9223_vm1, %v9222_v38 }
 0x66a   : > { %8544 = vmatprep.subr.mxu1 %v9222_v38 }
 0x66c   : > { %8537 = vmatmul.mubr.msk.f32.vlgmr.msra.gmra.mxu1 %vm900_vm0, %v1952_v6  ;;  %v2701_v6 = vld [vmem:[%s9431_s1 + $0x78] sm:$0xff] }
 0x66d   : > { %8546 = vmatprep.mubr.msk.f32.mxu1 %vm9223_vm1, %v9222_v38 }
 0x66f   : > { %v9660_v7 = vpop.f32.mrf.mxu0 }
 0x671   : > { %v9662_v8 = vpop.f32.mrf.mxu0 }
 0x673   : > { %v2103_v9 = vpop.f32.mrf.mxu0 }
 0x674   : > { %v2110_v10 = vsel %vm1280_vm2, %v2103_v9, -inf }
 0x675   : > { %2111 = vmax.xlane.f32.xlu0 %v2110_v10  ;;  %v8543_v11 = vpop.f32.mrf.mxu0 }
 0x676   : > { %v2700_v11 = vld [vmem:[%s9431_s1 + $0x70] sm:$0xff] }
 0x68b   : > { %2205 = vrot.lane.b32.xlu0 %v9577_v55, %s9225_s16 }
 0x68f   : > { %2368 = vrot.lane.b32.xlu0 %v9555_v51, %s9226_s25 }
 0x693   : > { %2446 = vrot.lane.b32.xlu0 %v9566_v54, %s9226_s25 }
 0x6fe   : > { %v2112_v12 = vpop.xlane.xlu0 %2111 }
 0x6ff   : > { %v2114_v13 = vsub.f32 %v2103_v9, %v2112_v12 }
 0x701   : > { %v2117_v14 = vmul.f32 1.442695, %v2114_v13 }
 0x702   : > { %v2206_v15 = vpop.permute.xlu0 %2205 }
 0x703   : > { %9056 = vpow2.f32 %v2117_v14  ;;  %8550 = vmatpush3.msra.mxu0 %v2206_v15  ;;  %v2698_v14 = vld [vmem:[%s9431_s1 + $0x60] sm:$0xff] }
 0x704   : > { %8565 = vmatprep.subr.mxu0 %v9222_v38 }
 0x706   : > { %v2369_v25 = vpop.permute.xlu0 %2368 }
 0x70a   : > { %v2447_v26 = vpop.permute.xlu0 %2446 }
 0x710   : > { %v9057_v16 = vpop.eup %9056 }
 0x711   : > { %v2122_v17 = vsel %vm1280_vm2, %v9057_v16, 0.0 }
 0x712   : > { %2123 = vadd.xlane.f32.xlu1 %v2122_v17 }
 0x723   : > { %2448 = vrot.lane.b32.xlu1 %v9558_v53, %s9226_s25 }
 0x728   : > { %v9675_v18 = vpop.f32.mrf.mxu1 }
 0x729   : > { %v1948_v15 = vadd.f32 %v9660_v7, %v9675_v18 }
 0x72a   : > { %v9677_v51 = vpop.f32.mrf.mxu1 }
 0x72c   : > { %v2025_v54 = vpop.f32.mrf.mxu1 }
 0x72d   : > { %v2107_v20 = vsel %vm1280_vm2, %v2025_v54, -inf }
 0x72e   : > { %v8538_v19 = vpop.f32.mrf.mxu1 }
 0x747   : > { %2108 = vmax.xlane.f32.xlu1 %v2107_v20 }
 0x79b   : > { %v2124_v22 = vpop.xlane.xlu1 %2123 }
 0x79c   : > { %9058 = vrcp.f32 %v2124_v22 }
 0x79f   : > { %v2449_v53 = vpop.permute.xlu1 %2448 }
 0x7a9   : > { %v9059_v23 = vpop.eup %9058 }
 0x7aa   : > { %v2128_v24 = vmul.f32 %v9059_v23, %v9057_v16  ;;  %v1943_v23 = vadd.f32 %v9662_v8, %v9677_v51 }
 0x7ac   : > { %8552 = vmatmul.mubr.msk.f32.vlgmr.msra.gmra.mxu0 %vm1280_vm2, %v2128_v24 }
 0x7ad   : > { %8566 = vmatpush3.xpose.msk.msra.mxu0 %vm900_vm0, %v2371_v21  ;;  %8567 = vmatprep.mubr.msk.f32.mxu0 %vm9223_vm1, %v9222_v38 }
 0x7ae   : > { %8570 = vmatprep.subr.mxu0 %v9222_v38 }
 0x7b0   : > { %8568 = vmatmul.mubr.msk.f32.vlgmr.msra.gmra.mxu0 %vm900_vm0, %v2369_v25 }
 0x7b1   : > { %8571 = vmatpush3.xpose.msk.msra.mxu0 %vm900_vm0, %v2449_v53  ;;  %8572 = vmatprep.mubr.msk.f32.mxu0 %vm9223_vm1, %v9222_v38 }
 0x7b2   : > { %8580 = vmatprep.subr.mxu0 %v9222_v38 }
 0x7b4   : > { %8573 = vmatmul.mubr.msk.f32.vlgmr.msra.gmra.mxu0 %vm900_vm0, %v2447_v26 }
 0x7b5   : > { %8582 = vmatprep.mubr.msk.f32.mxu0 %vm9223_vm1, %v9222_v38 }
 0x7d0   : > { %v2109_v27 = vpop.xlane.xlu1 %2108 }
 0x7d1   : > { %v2113_v28 = vsub.f32 %v2025_v54, %v2109_v27 }
 0x7d3   : > { %v2115_v29 = vmul.f32 1.442695, %v2113_v28 }
 0x7d5   : > { %9060 = vpow2.f32 %v2115_v29 }
 0x7e2   : > { %v9061_v30 = vpop.eup %9060 }
 0x7e3   : > { %v2119_v31 = vsel %vm1280_vm2, %v9061_v30, 0.0 }
 0x7e4   : > { %2120 = vadd.xlane.f32.xlu0 %v2119_v31  ;;  %v2838_v31 = vld [vmem:[%s9447_s19 + $0x18] sm:$0xff] }
 0x7fa   : > { %2129 = vrot.lane.b32.xlu0 %v9580_v56, %s9225_s16 }
 0x7fe   : > { %2622 = vrot.lane.b32.xlu0 %v9577_v55, %s9226_s25 }
 0x86c   : > { %v2277_v32 = vpop.f32.mrf.mxu0 }
 0x86d   : > { %v2121_v33 = vpop.xlane.xlu0 %2120 }
 0x86e   : > { %9062 = vrcp.f32 %v2121_v33  ;;  %v8553_v34 = vpop.f32.mrf.mxu0  ;;  %v2835_v33 = vld [vmem:[%s9447_s19] sm:$0xff] }
 0x86f   : > { %v2936_v34 = vld [vmem:[%s9473_s27 + $0x38] sm:$0xff] }
 0x870   : > { %v2442_v35 = vpop.f32.mrf.mxu0 }
 0x871   : > { %v2130_v36 = vpop.permute.xlu0 %2129  ;;  %v2524_v37 = vsel %vm1280_vm2, %v2442_v35, -inf }
 0x872   : > { %8545 = vmatpush3.msra.mxu1 %v2130_v36  ;;  %2525 = vmax.xlane.f32.xlu1 %v2524_v37  ;;  %v8569_v39 = vpop.f32.mrf.mxu0  ;;  %v2934_v36 = vld [vmem:[%s9473_s27 + $0x28] sm:$0xff]  ;;  %v2933_v37 = vld [vmem:[%s9473_s27 + $0x20] sm:$0xff] }
 0x873   : > { %8554 = vmatprep.subr.mxu1 %v2284_v47 }
 0x874   : > { %v2520_v40 = vpop.f32.mrf.mxu0 }
 0x875   : > { %v2623_v41 = vpop.permute.xlu0 %2622  ;;  %v2527_v42 = vsel %vm1280_vm2, %v2520_v40, -inf }
 0x876   : > { %8581 = vmatpush3.msra.mxu0 %v2623_v41  ;;  %2528 = vmax.xlane.f32.xlu1 %v2527_v42  ;;  %v8574_v55 = vpop.f32.mrf.mxu0 }
 0x877   : > { %8596 = vmatprep.subr.mxu0 %v2838_v31 }
 0x87b   : > { %v9063_v44 = vpop.eup %9062 }
 0x87c   : > { %v2127_v45 = vmul.f32 %v9063_v44, %v9061_v30 }
 0x87e   : > { %8547 = vmatmul.mubr.msk.f32.vlgmr.msra.gmra.mxu1 %vm1280_vm2, %v2127_v45 }
 0x87f   : > { %8555 = vmatpush3.msra.mxu1 %v2284_v47 }
 0x880   : > { %8556 = vmatprep.subr.mxu1 %v2283_v48 }
 0x881   : > { %8557 = vmatpush3.msra.mxu1 %v2283_v48 }
 0x882   : > { %8558 = vmatprep.subr.mxu1 %v2282_v49 }
 0x883   : > { %8559 = vmatpush3.msra.mxu1 %v2282_v49 }
 0x884   : > { %8560 = vmatprep.subr.mxu1 %v2281_v52 }
 0x885   : > { %8561 = vmatpush3.msra.mxu1 %v2281_v52 }
 0x886   : > { %8575 = vmatprep.subr.mxu1 %v9222_v38 }
 0x8fb   : > { %v2526_v57 = vpop.xlane.xlu1 %2525 }
 0x8fc   : > { %v2530_v58 = vsub.f32 %v2442_v35, %v2526_v57  ;;  %v2935_v35 = vld [vmem:[%s9473_s27 + $0x30] sm:$0xff] }
 0x8fe   : > { %v2532_v50 = vmul.f32 1.442695, %v2530_v58 }
 0x8ff   : > { %v2529_v59 = vpop.xlane.xlu1 %2528 }
 0x900   : > { %9064 = vpow2.f32 %v2532_v50  ;;  %v2531_v60 = vsub.f32 %v2520_v40, %v2529_v59 }
 0x902   : > { %v2534_v61 = vmul.f32 1.442695, %v2531_v60 }
 0x904   : > { %9066 = vpow2.f32 %v2534_v61  ;;  %v7976_v61 = vld [vmem:[%s9437_s29] ss:$0 sm:$0xff] }
 0x90d   : > { %v9065_v62 = vpop.eup %9064 }
 0x90e   : > { %v2536_v63 = vsel %vm1280_vm2, %v9065_v62, 0.0 }
 0x90f   : > { %2537 = vadd.xlane.f32.xlu1 %v2536_v63  ;;  %v7977_v63 = vld [vmem:[%s9442_s20] ss:$0 sm:$0xff] }
 0x911   : > { %v9067_v0 = vpop.eup %9066 }
 0x912   : > { %v2539_v1 = vsel %vm1280_vm2, %v9067_v0, 0.0 }
 0x913   : > { %2540 = vadd.xlane.f32.xlu1 %v2539_v1 }
 0x924   : > { %2546 = vrot.lane.b32.xlu1 %v9580_v56, %s9226_s25 }
 0x93e   : > { %v2201_v2 = vpop.f32.mrf.mxu1 }
 0x93f   : > { %8562 = vmatprep.mubr.msk.f32.mxu1 %vm900_vm0, %v2201_v2 }
 0x940   : > { %v8548_v3 = vpop.f32.mrf.mxu1  ;;  %8563 = vmatmul.mubr.msk.f32.vlgmr.msra.gmra.mxu1 %vm900_vm0, %v2277_v32  ;;  %v2836_v32 = vld [vmem:[%s9447_s19 + $0x8] sm:$0xff] }
 0x941   : > { %8577 = vmatprep.mubr.msk.f32.mxu1 %vm9223_vm1, %v9222_v38  ;;  %v2699_v38 = vld [vmem:[%s9431_s1 + $0x68] sm:$0xff] }
 0x998   : > { %v2538_v4 = vpop.xlane.xlu1 %2537 }
 0x999   : > { %9068 = vrcp.f32 %v2538_v4 }
 0x99c   : > { %v2541_v5 = vpop.xlane.xlu1 %2540 }
 0x99d   : > { %9070 = vrcp.f32 %v2541_v5 }
 0x9a0   : > { %v2547_v9 = vpop.permute.xlu1 %2546 }
 0x9a1   : > { %8576 = vmatpush3.msra.mxu1 %v2547_v9  ;;  %v2932_v9 = vld [vmem:[%s9473_s27 + $0x18] sm:$0xff] }
 0x9a2   : > { %8585 = vmatprep.subr.mxu1 %v2701_v6 }
 0x9a6   : > { %v9069_v56 = vpop.eup %9068 }
 0x9a7   : > { %v2544_v10 = vmul.f32 %v9069_v56, %v9065_v62  ;;  %v2931_v56 = vld [vmem:[%s9473_s27 + $0x10] sm:$0xff] }
 0x9a9   : > { %8578 = vmatmul.mubr.msk.f32.vlgmr.msra.gmra.mxu1 %vm1280_vm2, %v2544_v10  ;;  %v2930_v10 = vld [vmem:[%s9473_s27 + $0x8] sm:$0xff] }
 0x9aa   : > { %v9071_v12 = vpop.eup %9070  ;;  %8586 = vmatpush3.msra.mxu1 %v2701_v6 }
 0x9ab   : > { %v2545_v13 = vmul.f32 %v9071_v12, %v9067_v0  ;;  %8587 = vmatprep.subr.mxu1 %v2700_v11  ;;  %v7978_v12 = vld [vmem:[%s9452_s22] ss:$0 sm:$0xff] }
 0x9ac   : > { %8588 = vmatpush3.msra.mxu1 %v2700_v11  ;;  %v2929_v11 = vld [vmem:[%s9473_s27] sm:$0xff] }
 0x9ad   : > { %8583 = vmatmul.mubr.msk.f32.vlgmr.msra.gmra.mxu0 %vm1280_vm2, %v2545_v13  ;;  %8589 = vmatprep.subr.mxu1 %v2699_v38 }
 0x9ae   : > { %8590 = vmatpush3.msra.mxu1 %v2699_v38  ;;  %8597 = vmatpush3.msra.mxu0 %v2838_v31 }
 0x9af   : > { %8591 = vmatprep.subr.mxu1 %v2698_v14 }
 0x9b0   : > { %8592 = vmatpush3.msra.mxu1 %v2698_v14 }
 0x9b1   : > { %8607 = vmatprep.subr.mxu1 %v2936_v34 }
 0xa00   : > { %v8564_v16 = vpop.f32.mrf.mxu1 }
 0xa01   : > { %v2367_v17 = vadd.f32 %v8564_v16, %v1948_v15 }
 0xa02   : > { %v2357_v54 = vpop.f32.mrf.mxu1 }
 0xa03   : > { %v2366_v25 = vadd.f32 %v2357_v54, %v1943_v23  ;;  %v7981_v54 = vld [vmem:[%s9458_s5] ss:$0 sm:$0xff] }
 0xa69   : > { %v2618_v19 = vpop.f32.mrf.mxu1 }
 0xa6a   : > { %8593 = vmatprep.mubr.msk.f32.mxu1 %vm900_vm0, %v2618_v19 }
 0xa6b   : > { %v8579_v20 = vpop.f32.mrf.mxu1 }
 0xa6d   : > { %v2694_v21 = vpop.f32.mrf.mxu0 }
 0xa6e   : > { %8594 = vmatmul.mubr.msk.f32.vlgmr.msra.gmra.mxu1 %vm900_vm0, %v2694_v21 }
 0xa6f   : > { %v8584_v22 = vpop.f32.mrf.mxu0  ;;  %8608 = vmatpush3.msra.mxu1 %v2936_v34 }
 0xa70   : > { %8609 = vmatprep.subr.mxu1 %v2935_v35 }
 0xa71   : > { %8610 = vmatpush3.msra.mxu1 %v2935_v35 }
 0xa72   : > { %8611 = vmatprep.subr.mxu1 %v2934_v36 }
 0xa73   : > { %8612 = vmatpush3.msra.mxu1 %v2934_v36 }
 0xa74   : > { %8613 = vmatprep.subr.mxu1 %v2933_v37 }
 0xa75   : > { %8614 = vmatpush3.msra.mxu1 %v2933_v37 }
 0xa76   : > { %8615 = vmatprep.subr.mxu1 %v2932_v9 }
 0xa77   : > { %8616 = vmatpush3.msra.mxu1 %v2932_v9 }
 0xa78   : > { %8617 = vmatprep.subr.mxu1 %v2931_v56 }
 0xa79   : > { %8618 = vmatpush3.msra.mxu1 %v2931_v56 }
 0xa7a   : > { %8619 = vmatprep.subr.mxu1 %v2930_v10 }
 0xa7b   : > { %8620 = vmatpush3.msra.mxu1 %v2930_v10 }
 0xa7c   : > { %8621 = vmatprep.subr.mxu1 %v2929_v11 }
 0xa7d   : > { %8622 = vmatpush3.msra.mxu1 %v2929_v11 }
 0xb2e   : > { %v8595_v24 = vpop.f32.mrf.mxu1 }
 0xb2f   : > { %v2784_v53 = vadd.f32 %v8595_v24, %v2367_v17 }
 0xb30   : > { %v2774_v7 = vpop.f32.mrf.mxu1 }
 0xb31   : > { %v2786_v18 = vadd.f32 %v2784_v53, %v9536_v46  ;;  %v2783_v26 = vadd.f32 %v2774_v7, %v2366_v25 }
 0xb33   : > { %v2785_v27 = vadd.f32 %v2783_v26, %v9529_v43  ;;  %v2792_v28 = vsel %vm900_vm0, %v2786_v18, 0.0  ;;  %v2798_v51 = vmul.f32 %v2786_v18, %v2786_v18  ;;  %v2837_v43 = vld [vmem:[%s9447_s19 + $0x10] sm:$0xff] }
 0xb34   : > { %2793 = vadd.xlane.f32.xlu1 %v2792_v28  ;;  %8598 = vmatprep.subr.mxu0 %v2837_v43 }
 0xb35   : > { %v2789_v29 = vsel %vm900_vm0, %v2785_v27, 0.0  ;;  %v2797_v30 = vmul.f32 %v2785_v27, %v2785_v27  ;;  %v2802_v46 = vsel %vm900_vm0, %v2798_v51, 0.0  ;;  %8599 = vmatpush3.msra.mxu0 %v2837_v43 }
 0xb36   : > { %2790 = vadd.xlane.f32.xlu0 %v2789_v29  ;;  %8600 = vmatprep.subr.mxu0 %v2836_v32 }
 0xb37   : > { %v2799_v8 = vsel %vm900_vm0, %v2797_v30, 0.0  ;;  %8601 = vmatpush3.msra.mxu0 %v2836_v32 }
 0xb38   : > { %8602 = vmatprep.subr.mxu0 %v2835_v33 }
 0xb39   : > { %8603 = vmatpush3.msra.mxu0 %v2835_v33 }
 0xb3a   : > { %2800 = vadd.xlane.f32.xlu0 %v2799_v8 }
 0xb3e   : > { %2803 = vadd.xlane.f32.xlu0 %v2802_v46 }
 0xbbd   : > { %v2794_v41 = vpop.xlane.xlu1 %2793 }
 0xbbe   : > { %v2796_v55 = vmul.f32 0.03125, %v2794_v41  ;;  %v7984_v41 = vld [vmem:[%s10438_s6] ss:$0 sm:$0xff] }
 0xbbf   : > { %v2791_v39 = vpop.xlane.xlu0 %2790 }
 0xbc0   : > { %v2795_v40 = vmul.f32 0.03125, %v2791_v39  ;;  %v2808_v49 = vmul.f32 %v2796_v55, %v2796_v55  ;;  %v2812_v0 = vsub.f32 %v2786_v18, %v2796_v55  ;;  %v7985_v55 = vld [vmem:[%s10439_s9] ss:$0 sm:$0xff] }
 0xbc2   : > { %v2807_v44 = vmul.f32 %v2795_v40, %v2795_v40  ;;  %v2811_v59 = vsub.f32 %v2785_v27, %v2795_v40 }
 0xbc3   : > { %v2801_v42 = vpop.xlane.xlu0 %2800 }
 0xbc4   : > { %v2805_v45 = vmul.f32 0.03125, %v2801_v42 }
 0xbc6   : > { %v2809_v47 = vsub.f32 %v2805_v45, %v2807_v44 }
 0xbc7   : > { %v2804_v48 = vpop.xlane.xlu0 %2803 }
 0xbc8   : > { %v2813_v52 = vadd.f32 1e-06, %v2809_v47  ;;  %v2806_v57 = vmul.f32 0.03125, %v2804_v48 }
 0xbca   : > { %9072 = vrsqrt.f32 %v2813_v52  ;;  %v2810_v58 = vsub.f32 %v2806_v57, %v2808_v49 }
 0xbcc   : > { %v2814_v50 = vadd.f32 1e-06, %v2810_v58 }
 0xbce   : > { %9074 = vrsqrt.f32 %v2814_v50 }
 0xbd7   : > { %v9073_v60 = vpop.eup %9072 }
 0xbd8   : > { %v2817_v62 = vmul.f32 %v9073_v60, %v2811_v59 }
 0xbda   : > { %v2825_v1 = vmul.f32 %v7976_v61, %v2817_v62 }
 0xbdb   : > { %v9075_v2 = vpop.eup %9074 }
 0xbdc   : > { %v2818_v3 = vmul.f32 %v9075_v2, %v2812_v0  ;;  %v2833_v4 = vadd.f32 %v7977_v63, %v2825_v1 }
 0xbde   : > { %v2826_v5 = vmul.f32 %v7976_v61, %v2818_v3  ;;  %8604 = vmatprep.mubr.msk.f32.mxu0 %vm900_vm0, %v2833_v4 }
 0xbe0   : > { %v2834_v6 = vadd.f32 %v7977_v63, %v2826_v5 }
 0xbe2   : > { %8605 = vmatmul.mubr.msk.f32.vlgmr.msra.gmra.mxu0 %vm900_vm0, %v2834_v6 }
 0xca2   : > { %v8606_v13 = vpop.f32.mrf.mxu0 }
 0xca3   : > { %v2924_v38 = vadd.f32 %v8606_v13, %v7978_v12 }
 0xca4   : > { %v2918_v14 = vpop.f32.mrf.mxu0 }
 0xca5   : > { %v2919_v15 = vadd.f32 %v7978_v12, %v2918_v14  ;;  %v2928_v17 = vmax.f32 %v2924_v38, 0.0 }
 0xca7   : > { %v2927_v16 = vmax.f32 %v2919_v15, 0.0 }
 0xca9   : > { %8623 = vmatprep.mubr.msk.f32.mxu1 %vm2944_vm3, %v2927_v16 }
 0xcaa   : > { %8624 = vmatmul.mubr.msk.f32.vlgmr.msra.gmra.mxu1 %vm2944_vm3, %v2928_v17 }
 0xd6a   : > { %v8625_v19 = vpop.f32.mrf.mxu1 }
 0xd6b   : > { %v3023_v20 = vadd.f32 %v8625_v19, %v7981_v54 }
 0xd6c   : > { %v3017_v21 = vpop.f32.mrf.mxu1 }
 0xd6d   : > { %v3027_v22 = vadd.f32 %v3023_v20, %v2834_v6  ;;  %v3018_v23 = vadd.f32 %v7981_v54, %v3017_v21 }
 0xd6f   : > { %v3026_v24 = vadd.f32 %v3018_v23, %v2833_v4  ;;  %v3033_v25 = vsel %vm900_vm0, %v3027_v22, 0.0  ;;  %v3039_v53 = vmul.f32 %v3027_v22, %v3027_v22 }
 0xd70   : > { %3034 = vadd.xlane.f32.xlu0 %v3033_v25 }
 0xd71   : > { %v3043_v7 = vsel %vm900_vm0, %v3039_v53, 0.0  ;;  %v3030_v18 = vsel %vm900_vm0, %v3026_v24, 0.0  ;;  %v3038_v26 = vmul.f32 %v3026_v24, %v3026_v24 }
 0xd72   : > { %3044 = vadd.xlane.f32.xlu1 %v3043_v7 }
 0xd73   : > { %v3040_v27 = vsel %vm900_vm0, %v3038_v26, 0.0 }
 0xd74   : > { %3031 = vadd.xlane.f32.xlu0 %v3030_v18 }
 0xd78   : > { %3041 = vadd.xlane.f32.xlu0 %v3040_v27 }
 0xdf9   : > { %v3035_v28 = vpop.xlane.xlu0 %3034 }
 0xdfa   : > { %v3037_v29 = vmul.f32 0.03125, %v3035_v28 }
 0xdfb   : > { %v3045_v30 = vpop.xlane.xlu1 %3044 }
 0xdfc   : > { %v3049_v8 = vmul.f32 %v3037_v29, %v3037_v29  ;;  %v3047_v51 = vmul.f32 0.03125, %v3045_v30  ;;  %v3053_v39 = vsub.f32 %v3027_v22, %v3037_v29 }
 0xdfd   : > { %v3032_v46 = vpop.xlane.xlu0 %3031 }
 0xdfe   : > { %v3051_v31 = vsub.f32 %v3047_v51, %v3049_v8  ;;  %v3036_v43 = vmul.f32 0.03125, %v3032_v46 }
 0xe00   : > { %v3055_v32 = vadd.f32 1e-06, %v3051_v31  ;;  %v3048_v34 = vmul.f32 %v3036_v43, %v3036_v43  ;;  %v3052_v47 = vsub.f32 %v3026_v24, %v3036_v43 }
 0xe01   : > { %v3042_v33 = vpop.xlane.xlu0 %3041 }
 0xe02   : > { %9076 = vrsqrt.f32 %v3055_v32  ;;  %v3046_v35 = vmul.f32 0.03125, %v3042_v33 }
 0xe04   : > { %v3050_v36 = vsub.f32 %v3046_v35, %v3048_v34 }
 0xe06   : > { %v3054_v37 = vadd.f32 1e-06, %v3050_v36 }
 0xe08   : > { %9078 = vrsqrt.f32 %v3054_v37 }
 0xe0f   : > { %v9077_v40 = vpop.eup %9076 }
 0xe10   : > { %v3059_v42 = vmul.f32 %v9077_v40, %v3053_v39 }
 0xe12   : > { %v3067_v44 = vmul.f32 %v7984_v41, %v3059_v42 }
 0xe14   : > { %v3075_v45 = vadd.f32 %v7985_v55, %v3067_v44 }
 0xe15   : > { %v9079_v48 = vpop.eup %9078 }
 0xe16   : > { %3077 = vst.msk [vmem:[#allocation2 + $0x8] sm:$0xff] %vm900_vm0, %v3075_v45  ;;  %v3058_v49 = vmul.f32 %v9079_v48, %v3052_v47 }
 0xe18   : > { %v3066_v52 = vmul.f32 %v7984_v41, %v3058_v49 }
 0xe1a   : > { %v3074_v57 = vadd.f32 %v7985_v55, %v3066_v52 }
 0xe1c   : > { %3076 = vst.msk [vmem:[#allocation2] sm:$0xff] %vm900_vm0, %v3074_v57 }
 0xe1d PF: > { %s10440_s10 = sld [smem:[#allocation9_spill]] }
 0xe23   : > { %p7986_p12 = scmp.lt.s32.totalorder %s10440_s10, 1 }
 0xe24   : > { %s9229_s28 = smov (!%p7986_p12), 96   ;;  %s9230_s18 = smov (!%p7986_p12), 64  }
 0xe25   : > { %3081 = sbr.rel (%p7986_p12) target bundleno = 7017 (0x1b69), region = 104  ;;  %s9231_s13 = smov (!%p7986_p12), 32  }
 0xe26   : > { %s10441_s23 = sld [smem:[#allocation15_spill]] (!%p7986_p12) }
 0xe27   : > { %s10442_s2 = sld [smem:[#allocation16_spill]] (!%p7986_p12) }
 0xe2a   : > { %v7997_v58 = vld [vmem:[%s9425_s0 + $0xb0] sm:$0xff]  ;;  %v7996_v50 = vld [vmem:[%s9425_s0 + $0xa8] sm:$0xff]  ;;  %v7994_v59 = vld [vmem:[%s9425_s0 + $0x98] sm:$0xff]  ;;  %v9227_v61 = vmov 0.0   ;;  %vm9228_vm4 = vmmov 0   ;;  %vm3409_vm5 = vcmask 64512  }
 0xe2b   : > { %3127 = vmatprep.subr.mxu0 %v7997_v58  ;;  %v7993_v60 = vld [vmem:[%s9425_s0 + $0x90] sm:$0xff]  ;;  %3167 = vmatprep.mubr.f32.mxu0 %v9227_v61  ;;  %v7991_v62 = vld [vmem:[%s9425_s0 + $0x80] sm:$0xff]  ;;  %v7990_v63 = vld [vmem:[%s9425_s0 + $0x78] sm:$0xff]  ;;  %vm5080_vm6 = vcmask 523264  }
 0xe2c   : > { %3128 = vmatpush1.msra.mxu0 %v7996_v50  ;;  %8637 = vmatprep.subr.mxu1 %v9227_v61  ;;  %v7988_v0 = vld [vmem:[%s9425_s0 + $0x68] sm:$0xff]  ;;  %v7987_v1 = vld [vmem:[%s9425_s0 + $0x60] sm:$0xff]  ;;  %v7998_v3 = vld [vmem:[%s9425_s0 + $0xb8] sm:$0xff] }
 0xe2d   : > { %3129 = vmatprep.subr.mxu0 %v7994_v59  ;;  %v9769_v2 = vld [vmem:[#allocation2] sm:$0xff]  ;;  %v9776_v5 = vld [vmem:[#allocation2 + $0x8] sm:$0xff]  ;;  %v7989_v9 = vld [vmem:[%s9425_s0 + $0x70] sm:$0xff]  ;;  %8639 = vmatprep.mubr.msk.f32.mxu1 %vm9228_vm4, %v9227_v61 }
 0xe2e   : > { %3130 = vmatpush1.msra.mxu0 %v7993_v60  ;;  %v7995_v4 = vld [vmem:[%s9425_s0 + $0xa0] sm:$0xff]  ;;  %v7992_v6 = vld [vmem:[%s9425_s0 + $0x88] sm:$0xff] }
 0xe2f   : > { %3131 = vmatprep.subr.mxu0 %v7991_v62 }
 0xe30   : > { %3132 = vmatpush1.msra.mxu0 %v7990_v63 }
 0xe31   : > { %3133 = vmatprep.subr.mxu0 %v7988_v0  ;;  %v8012_v0 = vld [vmem:[%s9431_s1 + $0x98] sm:$0xff] }
 0xe32   : > { %3134 = vmatpush1.msra.mxu0 %v7987_v1 }
 0xe33   : > { %7999 = vmatmul.mubr.msk.f32.vlgmr.msra.gmra.mxu0 %vm900_vm0, %v9769_v2  ;;  %8626 = vmatprep.subr.mxu0 %v7998_v3 }
 0xe34   : > { %3173 = vmatprep.mubr.f32.mxu0 %v9227_v61  ;;  %8627 = vmatpush3.msra.mxu0 %v7998_v3 }
 0xe35   : > { %8628 = vmatprep.subr.mxu0 %v7995_v4 }
 0xe36   : > { %8629 = vmatpush3.msra.mxu0 %v7995_v4  ;;  %v8022_v4 = vld [vmem:[%s9431_s1 + $0xb8] sm:$0xff] }
 0xe37   : > { %8000 = vmatmul.mubr.msk.f32.gmra.mxu0 %vm900_vm0, %v9776_v5  ;;  %8630 = vmatprep.subr.mxu0 %v7992_v6 }
 0xe38   : > { %8634 = vmatprep.mubr.msk.f32.mxu0 %vm900_vm0, %v9769_v2  ;;  %8631 = vmatpush3.msra.mxu0 %v7992_v6 }
 0xe39   : > { %8632 = vmatprep.subr.mxu0 %v7989_v9 }
 0xe3a   : > { %8633 = vmatpush3.msra.mxu0 %v7989_v9 }
 0xe3b   : > { %8635 = vmatmul.mubr.msk.f32.vlgmr.msra.gmra.mxu0 %vm900_vm0, %v9776_v5  ;;  %8642 = vmatprep.subr.mxu0 %v9227_v61 }
 0xe3c   : > { %8644 = vmatprep.mubr.msk.f32.mxu0 %vm9228_vm4, %v9227_v61 }
 0xef3   : > { %v3169_v56 = vpop.f32.mrf.mxu0 }
 0xef4   : > { %v9795_v11 = vmul.f32 0.17677669, %v3169_v56 }
 0xef5   : > { %v9791_v10 = vpop.f32.mrf.mxu0 }
 0xef6   : > { %8638 = vmatpush3.xpose.msk.msra.mxu1 %vm900_vm0, %v9791_v10 }
 0xef7   : > { %v3175_v12 = vpop.f32.mrf.mxu0  ;;  %8647 = vmatprep.subr.mxu1 %v9227_v61 }
 0xef8   : > { %v9806_v38 = vmul.f32 0.17677669, %v3175_v12  ;;  %v8021_v12 = vld [vmem:[%s9431_s1 + $0xb0] sm:$0xff] }
 0xef9   : > { %v9798_v13 = vpop.f32.mrf.mxu0  ;;  %8640 = vmatmul.mubr.msk.f32.vlgmr.msra.gmra.mxu1 %vm900_vm0, %v9795_v11 }
 0xefa   : > { %3663 = vrot.lane.b32.xlu1 %v9798_v13, %s9229_s28  ;;  %8643 = vmatpush3.xpose.msk.msra.mxu0 %vm900_vm0, %v9798_v13 }
 0xefb   : > { %8652 = vmatprep.subr.mxu0 %v9227_v61  ;;  %8649 = vmatprep.mubr.msk.f32.mxu1 %vm9228_vm4, %v9227_v61  ;;  %v9817_v14 = vpop.f32.mrf.mxu0 }
 0xefd   : > { %8645 = vmatmul.mubr.msk.f32.vlgmr.msra.gmra.mxu0 %vm900_vm0, %v9806_v38  ;;  %v9820_v15 = vpop.f32.mrf.mxu0 }
 0xefe   : > { %3583 = vrot.lane.b32.xlu1 %v9795_v11, %s9229_s28  ;;  %8654 = vmatprep.mubr.msk.f32.mxu0 %vm9228_vm4, %v9227_v61 }
 0xeff   : > { %8653 = vmatpush3.msra.mxu0 %v9817_v14  ;;  %8648 = vmatpush3.msra.mxu1 %v9820_v15 }
 0xf00   : > { %8662 = vmatprep.subr.mxu0 %v9227_v61  ;;  %8657 = vmatprep.subr.mxu1 %v9227_v61 }
 0xf6c   : > { %v3664_v29 = vpop.permute.xlu1 %3663 }
 0xf70   : > { %v3584_v30 = vpop.permute.xlu1 %3583 }
 0xfb9   : > { %v3329_v16 = vpop.f32.mrf.mxu1 }
 0xfba   : > { %v3410_v17 = vsel %vm3409_vm5, %v3329_v16, -inf }
 0xfbb   : > { %3411 = vmax.xlane.f32.xlu0 %v3410_v17  ;;  %v8641_v54 = vpop.f32.mrf.mxu1 }
 0xfbc   : > { %v8010_v54 = vld [vmem:[%s9431_s1 + $0x88] sm:$0xff] }
 0xfbd   : > { %v3405_v19 = vpop.f32.mrf.mxu0 }
 0xfbe   : > { %v3413_v20 = vsel %vm3409_vm5, %v3405_v19, -inf }
 0xfbf   : > { %3414 = vmax.xlane.f32.xlu0 %v3413_v20  ;;  %v8646_v21 = vpop.f32.mrf.mxu0 }
 0xfd5   : > { %3585 = vrot.lane.b32.xlu0 %v9791_v10, %s9229_s28 }
0x1044   : > { %v3412_v22 = vpop.xlane.xlu0 %3411 }
0x1045   : > { %v3416_v23 = vsub.f32 %v3329_v16, %v3412_v22  ;;  %v8020_v22 = vld [vmem:[%s9431_s1 + $0xa8] sm:$0xff] }
0x1047   : > { %v3418_v24 = vmul.f32 1.442695, %v3416_v23  ;;  %v8019_v23 = vld [vmem:[%s9431_s1 + $0xa0] sm:$0xff] }
0x1048   : > { %v3415_v25 = vpop.xlane.xlu0 %3414 }
0x1049   : > { %9080 = vpow2.f32 %v3418_v24  ;;  %v3417_v53 = vsub.f32 %v3405_v19, %v3415_v25  ;;  %v8009_v19 = vld [vmem:[%s9431_s1 + $0x80] sm:$0xff] }
0x104b   : > { %v3420_v7 = vmul.f32 1.442695, %v3417_v53 }
0x104c   : > { %v3586_v43 = vpop.permute.xlu0 %3585 }
0x104d   : > { %9082 = vpow2.f32 %v3420_v7 }
0x1056   : > { %v9081_v18 = vpop.eup %9080 }
0x1057   : > { %v3422_v26 = vsel %vm3409_vm5, %v9081_v18, 0.0 }
0x1058   : > { %3423 = vadd.xlane.f32.xlu1 %v3422_v26 }
0x105a   : > { %v9083_v27 = vpop.eup %9082 }
0x105b   : > { %v3425_v28 = vsel %vm3409_vm5, %v9083_v27, 0.0 }
0x105c   : > { %3426 = vadd.xlane.f32.xlu1 %v3425_v28 }
0x106d   : > { %3661 = vrot.lane.b32.xlu1 %v9806_v38, %s9229_s28 }
0x10e1   : > { %v3424_v8 = vpop.xlane.xlu1 %3423 }
0x10e2   : > { %9084 = vrcp.f32 %v3424_v8 }
0x10e5   : > { %v3427_v51 = vpop.xlane.xlu1 %3426 }
0x10e6   : > { %9086 = vrcp.f32 %v3427_v51 }
0x10e9   : > { %v3662_v34 = vpop.permute.xlu1 %3661 }
0x10ef   : > { %v9085_v46 = vpop.eup %9084 }
0x10f0   : > { %v3430_v31 = vmul.f32 %v9085_v46, %v9081_v18 }
0x10f2   : > { %8650 = vmatmul.mubr.msk.f32.vlgmr.msra.gmra.mxu1 %vm3409_vm5, %v3430_v31 }
0x10f3   : > { %v9087_v32 = vpop.eup %9086  ;;  %8658 = vmatpush3.xpose.msk.msra.mxu1 %vm900_vm0, %v3586_v43  ;;  %8659 = vmatprep.mubr.msk.f32.mxu1 %vm9228_vm4, %v9227_v61 }
0x10f4   : > { %v3431_v33 = vmul.f32 %v9087_v32, %v9083_v27  ;;  %8667 = vmatprep.subr.mxu1 %v9227_v61 }
0x10f6   : > { %8655 = vmatmul.mubr.msk.f32.vlgmr.msra.gmra.mxu0 %vm3409_vm5, %v3431_v33  ;;  %8660 = vmatmul.mubr.msk.f32.vlgmr.msra.gmra.mxu1 %vm900_vm0, %v3584_v30 }
0x10f7   : > { %8663 = vmatpush3.xpose.msk.msra.mxu0 %vm900_vm0, %v3664_v29  ;;  %8664 = vmatprep.mubr.msk.f32.mxu0 %vm9228_vm4, %v9227_v61 }
0x10f8   : > { %8672 = vmatprep.subr.mxu0 %v9227_v61  ;;  %8669 = vmatprep.mubr.msk.f32.mxu1 %vm9228_vm4, %v9227_v61 }
0x10fa   : > { %8665 = vmatmul.mubr.msk.f32.vlgmr.msra.gmra.mxu0 %vm900_vm0, %v3662_v34 }
0x10fb   : > { %8674 = vmatprep.mubr.msk.f32.mxu0 %vm9228_vm4, %v9227_v61 }
0x11b2   : > { %v3501_v35 = vpop.f32.mrf.mxu1 }
0x11b4   : > { %v8651_v36 = vpop.f32.mrf.mxu1 }
0x11b6   : > { %v9849_v37 = vpop.f32.mrf.mxu0  ;;  %v3657_v39 = vpop.f32.mrf.mxu1 }
0x11b7   : > { %v3739_v40 = vsel %vm3409_vm5, %v3657_v39, -inf }
0x11b8   : > { %3740 = vmax.xlane.f32.xlu0 %v3739_v40  ;;  %v8656_v41 = vpop.f32.mrf.mxu0  ;;  %v8661_v42 = vpop.f32.mrf.mxu1 }
0x11ba   : > { %v3735_v55 = vpop.f32.mrf.mxu0 }
0x11bb   : > { %v3742_v44 = vsel %vm3409_vm5, %v3735_v55, -inf }
0x11bc   : > { %3743 = vmax.xlane.f32.xlu1 %v3742_v44  ;;  %v8666_v45 = vpop.f32.mrf.mxu0 }
0x11cd   : > { %3839 = vrot.lane.b32.xlu1 %v9817_v14, %s9229_s28 }
0x11d1   : > { %4161 = vrot.lane.b32.xlu1 %v9798_v13, %s9230_s18 }
0x11d5   : > { %4159 = vrot.lane.b32.xlu1 %v9806_v38, %s9230_s18 }
0x11d9   : > { %4081 = vrot.lane.b32.xlu1 %v9795_v11, %s9230_s18 }
0x11dd   : > { %4500 = vrot.lane.b32.xlu1 %v9791_v10, %s9231_s13 }
0x1241   : > { %v3741_v47 = vpop.xlane.xlu0 %3740 }
0x1242   : > { %v3745_v48 = vsub.f32 %v3657_v39, %v3741_v47 }
0x1244   : > { %v3747_v49 = vmul.f32 1.442695, %v3745_v48 }
0x1245   : > { %v3744_v52 = vpop.xlane.xlu1 %3743 }
0x1246   : > { %9088 = vpow2.f32 %v3747_v49  ;;  %v3746_v57 = vsub.f32 %v3735_v55, %v3744_v52 }
0x1248   : > { %v3749_v58 = vmul.f32 1.442695, %v3746_v57 }
0x1249   : > { %v3840_v50 = vpop.permute.xlu1 %3839 }
0x124a   : > { %9090 = vpow2.f32 %v3749_v58  ;;  %8673 = vmatpush3.msra.mxu0 %v3840_v50 }
0x124b   : > { %8688 = vmatprep.subr.mxu0 %v8012_v0 }
0x124d   : > { %v4162_v20 = vpop.permute.xlu1 %4161 }
0x1251   : > { %v4160_v21 = vpop.permute.xlu1 %4159 }
0x1253   : > { %v9089_v59 = vpop.eup %9088 }
0x1254   : > { %v3751_v60 = vsel %vm3409_vm5, %v9089_v59, 0.0 }
0x1255   : > { %3752 = vadd.xlane.f32.xlu0 %v3751_v60  ;;  %v4082_v26 = vpop.permute.xlu1 %4081 }
0x1257   : > { %v9091_v62 = vpop.eup %9090 }
0x1258   : > { %v3754_v63 = vsel %vm3409_vm5, %v9091_v62, 0.0 }
0x1259   : > { %3755 = vadd.xlane.f32.xlu0 %v3754_v63 }
0x126f   : > { %3762 = vrot.lane.b32.xlu0 %v9820_v15, %s9229_s28 }
0x1273   : > { %4083 = vrot.lane.b32.xlu0 %v9791_v10, %s9230_s18  ;;  %v8011_v10 = vld [vmem:[%s9431_s1 + $0x90] sm:$0xff] }
0x12de   : > { %v3753_v1 = vpop.xlane.xlu0 %3752 }
0x12df   : > { %9092 = vrcp.f32 %v3753_v1 }
0x12e2   : > { %v3756_v3 = vpop.xlane.xlu0 %3755 }
0x12e3   : > { %9094 = vrcp.f32 %v3756_v3 }
0x12e6   : > { %v3763_v6 = vpop.permute.xlu0 %3762 }
0x12e7   : > { %8668 = vmatpush3.msra.mxu1 %v3763_v6  ;;  %v8036_v6 = vld [vmem:[%s9431_s1 + $0xd8] sm:$0xff] }
0x12e8   : > { %8677 = vmatprep.subr.mxu1 %v8022_v4 }
0x12ea   : > { %v4084_v7 = vpop.permute.xlu0 %4083 }
0x12ec   : > { %v9093_v9 = vpop.eup %9092 }
0x12ed   : > { %v3759_v56 = vmul.f32 %v9093_v9, %v9089_v59  ;;  %v8035_v9 = vld [vmem:[%s9431_s1 + $0xd0] sm:$0xff] }
0x12ef   : > { %8670 = vmatmul.mubr.msk.f32.vlgmr.msra.gmra.mxu1 %vm3409_vm5, %v3759_v56  ;;  %v8034_v56 = vld [vmem:[%s9431_s1 + $0xc8] sm:$0xff] }
0x12f0   : > { %v9095_v16 = vpop.eup %9094  ;;  %8678 = vmatpush3.msra.mxu1 %v8022_v4 }
0x12f1   : > { %v3760_v17 = vmul.f32 %v9095_v16, %v9091_v62  ;;  %8679 = vmatprep.subr.mxu1 %v8021_v12 }
0x12f2   : > { %8680 = vmatpush3.msra.mxu1 %v8021_v12  ;;  %v8033_v12 = vld [vmem:[%s9431_s1 + $0xc0] sm:$0xff] }
0x12f3   : > { %8675 = vmatmul.mubr.msk.f32.vlgmr.msra.gmra.mxu0 %vm3409_vm5, %v3760_v17  ;;  %8681 = vmatprep.subr.mxu1 %v8020_v22 }
0x12f4   : > { %8689 = vmatpush3.msra.mxu0 %v8012_v0  ;;  %8696 = vmatprep.mubr.msk.f32.mxu0 %vm900_vm0, %v3501_v35 }
0x12f5   : > { %8690 = vmatprep.subr.mxu0 %v8011_v10  ;;  %8682 = vmatpush3.msra.mxu1 %v8020_v22 }
0x12f6   : > { %8691 = vmatpush3.msra.mxu0 %v8011_v10  ;;  %8683 = vmatprep.subr.mxu1 %v8019_v23 }
0x12f7   : > { %8692 = vmatprep.subr.mxu0 %v8010_v54  ;;  %8684 = vmatpush3.msra.mxu1 %v8019_v23 }
0x12f8   : > { %8693 = vmatpush3.msra.mxu0 %v8010_v54  ;;  %8699 = vmatprep.subr.mxu1 %v9227_v61 }
0x12f9   : > { %8694 = vmatprep.subr.mxu0 %v8009_v19 }
0x12fa   : > { %8695 = vmatpush3.msra.mxu0 %v8009_v19 }
0x12fb   : > { %8697 = vmatmul.mubr.msk.f32.vlgmr.msra.gmra.mxu0 %vm900_vm0, %v9849_v37  ;;  %8704 = vmatprep.subr.mxu0 %v9227_v61  ;;  %v4501_v37 = vpop.permute.xlu1 %4500 }
0x12fc   : > { %8705 = vmatpush3.xpose.msk.msra.mxu0 %vm900_vm0, %v4162_v20  ;;  %8706 = vmatprep.mubr.msk.f32.mxu0 %vm9228_vm4, %v9227_v61 }
0x12fd   : > { %8714 = vmatprep.subr.mxu0 %v9227_v61 }
0x12ff   : > { %8707 = vmatmul.mubr.msk.f32.vlgmr.msra.gmra.mxu0 %vm900_vm0, %v4160_v21 }
0x1300   : > { %8716 = vmatprep.mubr.msk.f32.mxu0 %vm9228_vm4, %v9227_v61 }
0x13af   : > { %v3834_v24 = vpop.f32.mrf.mxu1 }
0x13b0   : > { %8685 = vmatprep.mubr.msk.f32.mxu1 %vm900_vm0, %v3834_v24 }
0x13b1   : > { %v8671_v25 = vpop.f32.mrf.mxu1 }
0x13b3   : > { %v3911_v53 = vpop.f32.mrf.mxu0 }
0x13b4   : > { %8686 = vmatmul.mubr.msk.f32.vlgmr.msra.gmra.mxu1 %vm900_vm0, %v3911_v53 }
0x13b5   : > { %8700 = vmatpush3.xpose.msk.msra.mxu1 %vm900_vm0, %v4084_v7  ;;  %v8676_v18 = vpop.f32.mrf.mxu0  ;;  %8701 = vmatprep.mubr.msk.f32.mxu1 %vm9228_vm4, %v9227_v61 }
0x13b6   : > { %8709 = vmatprep.subr.mxu1 %v9227_v61 }
0x13b8   : > { %8702 = vmatmul.mubr.msk.f32.vlgmr.msra.gmra.mxu1 %vm900_vm0, %v4082_v26  ;;  %v8048_v26 = vld [vmem:[%s9431_s1 + $0xf8] sm:$0xff] }
0x13b9   : > { %8711 = vmatprep.mubr.msk.f32.mxu1 %vm9228_vm4, %v9227_v61 }
0x13bb   : > { %v9900_v27 = vpop.f32.mrf.mxu0 }
0x13bd   : > { %v9902_v28 = vpop.f32.mrf.mxu0 }
0x13bf   : > { %v4233_v29 = vpop.f32.mrf.mxu0 }
0x13c0   : > { %v4240_v30 = vsel %vm3409_vm5, %v4233_v29, -inf }
0x13c1   : > { %4241 = vmax.xlane.f32.xlu0 %v4240_v30  ;;  %v8708_v8 = vpop.f32.mrf.mxu0 }
0x13c2   : > { %v8047_v8 = vld [vmem:[%s9431_s1 + $0xf0] sm:$0xff] }
0x13d7   : > { %4335 = vrot.lane.b32.xlu0 %v9817_v14, %s9230_s18 }
0x13db   : > { %4498 = vrot.lane.b32.xlu0 %v9795_v11, %s9231_s13 }
0x13df   : > { %4576 = vrot.lane.b32.xlu0 %v9806_v38, %s9231_s13 }
0x144a   : > { %v4242_v51 = vpop.xlane.xlu0 %4241 }
0x144b   : > { %v4244_v46 = vsub.f32 %v4233_v29, %v4242_v51 }
0x144d   : > { %v4247_v31 = vmul.f32 1.442695, %v4244_v46 }
0x144e   : > { %v4336_v43 = vpop.permute.xlu0 %4335 }
0x144f   : > { %9096 = vpow2.f32 %v4247_v31  ;;  %8715 = vmatpush3.msra.mxu0 %v4336_v43  ;;  %v8045_v31 = vld [vmem:[%s9431_s1 + $0xe0] sm:$0xff] }
0x1450   : > { %8730 = vmatprep.subr.mxu0 %v9227_v61 }
0x1452   : > { %v4499_v42 = vpop.permute.xlu0 %4498 }
0x1456   : > { %v4577_v55 = vpop.permute.xlu0 %4576 }
0x145c   : > { %v9097_v32 = vpop.eup %9096 }
0x145d   : > { %v4252_v33 = vsel %vm3409_vm5, %v9097_v32, 0.0 }
0x145e   : > { %4253 = vadd.xlane.f32.xlu1 %v4252_v33 }
0x146f   : > { %4578 = vrot.lane.b32.xlu1 %v9798_v13, %s9231_s13 }
0x1474   : > { %v9915_v34 = vpop.f32.mrf.mxu1 }
0x1475   : > { %v4078_v43 = vadd.f32 %v9900_v27, %v9915_v34 }
0x1476   : > { %v9917_v11 = vpop.f32.mrf.mxu1 }
0x1478   : > { %v4155_v38 = vpop.f32.mrf.mxu1 }
0x1479   : > { %v4237_v36 = vsel %vm3409_vm5, %v4155_v38, -inf }
0x147a   : > { %v8703_v35 = vpop.f32.mrf.mxu1 }
0x1493   : > { %4238 = vmax.xlane.f32.xlu1 %v4237_v36 }
0x14e7   : > { %v4254_v39 = vpop.xlane.xlu1 %4253 }
0x14e8   : > { %9098 = vrcp.f32 %v4254_v39 }
0x14eb   : > { %v4579_v13 = vpop.permute.xlu1 %4578 }
0x14f5   : > { %v9099_v40 = vpop.eup %9098 }
0x14f6   : > { %v4258_v41 = vmul.f32 %v9099_v40, %v9097_v32  ;;  %v4073_v40 = vadd.f32 %v9902_v28, %v9917_v11 }
0x14f8   : > { %8717 = vmatmul.mubr.msk.f32.vlgmr.msra.gmra.mxu0 %vm3409_vm5, %v4258_v41 }
0x14f9   : > { %8731 = vmatpush3.xpose.msk.msra.mxu0 %vm900_vm0, %v4501_v37  ;;  %8732 = vmatprep.mubr.msk.f32.mxu0 %vm9228_vm4, %v9227_v61 }
0x14fa   : > { %8735 = vmatprep.subr.mxu0 %v9227_v61 }
0x14fc   : > { %8733 = vmatmul.mubr.msk.f32.vlgmr.msra.gmra.mxu0 %vm900_vm0, %v4499_v42 }
0x14fd   : > { %8736 = vmatpush3.xpose.msk.msra.mxu0 %vm900_vm0, %v4579_v13  ;;  %8737 = vmatprep.mubr.msk.f32.mxu0 %vm9228_vm4, %v9227_v61 }
0x14fe   : > { %8745 = vmatprep.subr.mxu0 %v9227_v61 }
0x1500   : > { %8738 = vmatmul.mubr.msk.f32.vlgmr.msra.gmra.mxu0 %vm900_vm0, %v4577_v55 }
0x1501   : > { %8747 = vmatprep.mubr.msk.f32.mxu0 %vm9228_vm4, %v9227_v61 }
0x151c   : > { %v4239_v44 = vpop.xlane.xlu1 %4238 }
0x151d   : > { %v4243_v45 = vsub.f32 %v4155_v38, %v4239_v44 }
0x151f   : > { %v4245_v47 = vmul.f32 1.442695, %v4243_v45 }
0x1521   : > { %9100 = vpow2.f32 %v4245_v47 }
0x152e   : > { %v9101_v48 = vpop.eup %9100 }
0x152f   : > { %v4249_v49 = vsel %vm3409_vm5, %v9101_v48, 0.0 }
0x1530   : > { %4250 = vadd.xlane.f32.xlu0 %v4249_v49  ;;  %v8058_v49 = vld [vmem:[%s9447_s19 + $0x38] sm:$0xff] }
0x1546   : > { %4259 = vrot.lane.b32.xlu0 %v9820_v15, %s9230_s18 }
0x154a   : > { %4752 = vrot.lane.b32.xlu0 %v9817_v14, %s9231_s13 }
0x15b8   : > { %v4407_v52 = vpop.f32.mrf.mxu0 }
0x15b9   : > { %v4251_v57 = vpop.xlane.xlu0 %4250 }
0x15ba   : > { %9102 = vrcp.f32 %v4251_v57  ;;  %v8718_v58 = vpop.f32.mrf.mxu0  ;;  %v8055_v57 = vld [vmem:[%s9447_s19 + $0x20] sm:$0xff] }
0x15bb   : > { %v8070_v58 = vld [vmem:[%s9473_s27 + $0x78] sm:$0xff] }
0x15bc   : > { %v4572_v50 = vpop.f32.mrf.mxu0 }
0x15bd   : > { %v4260_v59 = vpop.permute.xlu0 %4259  ;;  %v4654_v60 = vsel %vm3409_vm5, %v4572_v50, -inf }
0x15be   : > { %8710 = vmatpush3.msra.mxu1 %v4260_v59  ;;  %4655 = vmax.xlane.f32.xlu1 %v4654_v60  ;;  %v8734_v62 = vpop.f32.mrf.mxu0  ;;  %v8068_v59 = vld [vmem:[%s9473_s27 + $0x68] sm:$0xff]  ;;  %v8067_v60 = vld [vmem:[%s9473_s27 + $0x60] sm:$0xff] }
0x15bf   : > { %8719 = vmatprep.subr.mxu1 %v8036_v6 }
0x15c0   : > { %v4650_v63 = vpop.f32.mrf.mxu0 }
0x15c1   : > { %v4753_v0 = vpop.permute.xlu0 %4752  ;;  %v4657_v1 = vsel %vm3409_vm5, %v4650_v63, -inf }
0x15c2   : > { %8746 = vmatpush3.msra.mxu0 %v4753_v0  ;;  %4658 = vmax.xlane.f32.xlu1 %v4657_v1  ;;  %v8739_v14 = vpop.f32.mrf.mxu0 }
0x15c3   : > { %8761 = vmatprep.subr.mxu0 %v8058_v49 }
0x15c7   : > { %v9103_v3 = vpop.eup %9102 }
0x15c8   : > { %v4257_v4 = vmul.f32 %v9103_v3, %v9101_v48 }
0x15ca   : > { %8712 = vmatmul.mubr.msk.f32.vlgmr.msra.gmra.mxu1 %vm3409_vm5, %v4257_v4 }
0x15cb   : > { %8720 = vmatpush3.msra.mxu1 %v8036_v6 }
0x15cc   : > { %8721 = vmatprep.subr.mxu1 %v8035_v9 }
0x15cd   : > { %8722 = vmatpush3.msra.mxu1 %v8035_v9 }
0x15ce   : > { %8723 = vmatprep.subr.mxu1 %v8034_v56 }
0x15cf   : > { %8724 = vmatpush3.msra.mxu1 %v8034_v56 }
0x15d0   : > { %8725 = vmatprep.subr.mxu1 %v8033_v12 }
0x15d1   : > { %8726 = vmatpush3.msra.mxu1 %v8033_v12 }
0x15d2   : > { %8740 = vmatprep.subr.mxu1 %v9227_v61 }
0x1647   : > { %v4656_v16 = vpop.xlane.xlu1 %4655 }
0x1648   : > { %v4660_v17 = vsub.f32 %v4572_v50, %v4656_v16  ;;  %v8069_v50 = vld [vmem:[%s9473_s27 + $0x70] sm:$0xff] }
0x164a   : > { %v4662_v10 = vmul.f32 1.442695, %v4660_v17 }
0x164b   : > { %v4659_v54 = vpop.xlane.xlu1 %4658 }
0x164c   : > { %9104 = vpow2.f32 %v4662_v10  ;;  %v4661_v19 = vsub.f32 %v4650_v63, %v4659_v54 }
0x164e   : > { %v4664_v20 = vmul.f32 1.442695, %v4661_v19 }
0x1650   : > { %9106 = vpow2.f32 %v4664_v20  ;;  %v8053_v20 = vld [vmem:[%s9437_s29 + $0x1] ss:$0 sm:$0xff] }
0x1659   : > { %v9105_v21 = vpop.eup %9104 }
0x165a   : > { %v4666_v22 = vsel %vm3409_vm5, %v9105_v21, 0.0 }
0x165b   : > { %4667 = vadd.xlane.f32.xlu1 %v4666_v22  ;;  %v8054_v22 = vld [vmem:[%s9442_s20 + $0x1] ss:$0 sm:$0xff] }
0x165d   : > { %v9107_v23 = vpop.eup %9106 }
0x165e   : > { %v4669_v24 = vsel %vm3409_vm5, %v9107_v23, 0.0 }
0x165f   : > { %4670 = vadd.xlane.f32.xlu1 %v4669_v24 }
0x1670   : > { %4676 = vrot.lane.b32.xlu1 %v9820_v15, %s9231_s13 }
0x168a   : > { %v4331_v25 = vpop.f32.mrf.mxu1 }
0x168b   : > { %8727 = vmatprep.mubr.msk.f32.mxu1 %vm900_vm0, %v4331_v25 }
0x168c   : > { %v8713_v53 = vpop.f32.mrf.mxu1  ;;  %8728 = vmatmul.mubr.msk.f32.vlgmr.msra.gmra.mxu1 %vm900_vm0, %v4407_v52  ;;  %v8056_v52 = vld [vmem:[%s9447_s19 + $0x28] sm:$0xff] }
0x168d   : > { %8742 = vmatprep.mubr.msk.f32.mxu1 %vm9228_vm4, %v9227_v61  ;;  %v8046_v61 = vld [vmem:[%s9431_s1 + $0xe8] sm:$0xff] }
0x16e4   : > { %v4668_v7 = vpop.xlane.xlu1 %4667 }
0x16e5   : > { %9108 = vrcp.f32 %v4668_v7 }
0x16e8   : > { %v4671_v18 = vpop.xlane.xlu1 %4670 }
0x16e9   : > { %9110 = vrcp.f32 %v4671_v18 }
0x16ec   : > { %v4677_v29 = vpop.permute.xlu1 %4676 }
0x16ed   : > { %8741 = vmatpush3.msra.mxu1 %v4677_v29  ;;  %v8066_v29 = vld [vmem:[%s9473_s27 + $0x58] sm:$0xff] }
0x16ee   : > { %8750 = vmatprep.subr.mxu1 %v8048_v26 }
0x16f2   : > { %v9109_v15 = vpop.eup %9108 }
0x16f3   : > { %v4674_v30 = vmul.f32 %v9109_v15, %v9105_v21  ;;  %v8065_v15 = vld [vmem:[%s9473_s27 + $0x50] sm:$0xff] }
0x16f5   : > { %8743 = vmatmul.mubr.msk.f32.vlgmr.msra.gmra.mxu1 %vm3409_vm5, %v4674_v30  ;;  %v8064_v30 = vld [vmem:[%s9473_s27 + $0x48] sm:$0xff] }
0x16f6   : > { %v9111_v51 = vpop.eup %9110  ;;  %8751 = vmatpush3.msra.mxu1 %v8048_v26 }
0x16f7   : > { %v4675_v46 = vmul.f32 %v9111_v51, %v9107_v23  ;;  %8752 = vmatprep.subr.mxu1 %v8047_v8  ;;  %v8060_v51 = vld [vmem:[%s9452_s22 + $0x1] ss:$0 sm:$0xff] }
0x16f8   : > { %8753 = vmatpush3.msra.mxu1 %v8047_v8  ;;  %v8063_v8 = vld [vmem:[%s9473_s27 + $0x40] sm:$0xff] }
0x16f9   : > { %8748 = vmatmul.mubr.msk.f32.vlgmr.msra.gmra.mxu0 %vm3409_vm5, %v4675_v46  ;;  %8754 = vmatprep.subr.mxu1 %v8046_v61 }
0x16fa   : > { %8755 = vmatpush3.msra.mxu1 %v8046_v61  ;;  %8762 = vmatpush3.msra.mxu0 %v8058_v49 }
0x16fb   : > { %8756 = vmatprep.subr.mxu1 %v8045_v31 }
0x16fc   : > { %8757 = vmatpush3.msra.mxu1 %v8045_v31 }
0x16fd   : > { %8772 = vmatprep.subr.mxu1 %v8070_v58 }
0x174c   : > { %v8729_v32 = vpop.f32.mrf.mxu1 }
0x174d   : > { %v4497_v33 = vadd.f32 %v8729_v32, %v4078_v43 }
0x174e   : > { %v4487_v38 = vpop.f32.mrf.mxu1 }
0x174f   : > { %v4496_v42 = vadd.f32 %v4487_v38, %v4073_v40  ;;  %v8072_v38 = vld [vmem:[%s9458_s5 + $0x1] ss:$0 sm:$0xff] }
0x17b5   : > { %v4748_v35 = vpop.f32.mrf.mxu1 }
0x17b6   : > { %8758 = vmatprep.mubr.msk.f32.mxu1 %vm900_vm0, %v4748_v35 }
0x17b7   : > { %v8744_v36 = vpop.f32.mrf.mxu1 }
0x17b9   : > { %v4824_v37 = vpop.f32.mrf.mxu0 }
0x17ba   : > { %8759 = vmatmul.mubr.msk.f32.vlgmr.msra.gmra.mxu1 %vm900_vm0, %v4824_v37 }
0x17bb   : > { %v8749_v39 = vpop.f32.mrf.mxu0  ;;  %8773 = vmatpush3.msra.mxu1 %v8070_v58 }
0x17bc   : > { %8774 = vmatprep.subr.mxu1 %v8069_v50 }
0x17bd   : > { %8775 = vmatpush3.msra.mxu1 %v8069_v50 }
0x17be   : > { %8776 = vmatprep.subr.mxu1 %v8068_v59 }
0x17bf   : > { %8777 = vmatpush3.msra.mxu1 %v8068_v59 }
0x17c0   : > { %8778 = vmatprep.subr.mxu1 %v8067_v60 }
0x17c1   : > { %8779 = vmatpush3.msra.mxu1 %v8067_v60 }
0x17c2   : > { %8780 = vmatprep.subr.mxu1 %v8066_v29 }
0x17c3   : > { %8781 = vmatpush3.msra.mxu1 %v8066_v29 }
0x17c4   : > { %8782 = vmatprep.subr.mxu1 %v8065_v15 }
0x17c5   : > { %8783 = vmatpush3.msra.mxu1 %v8065_v15 }
0x17c6   : > { %8784 = vmatprep.subr.mxu1 %v8064_v30 }
0x17c7   : > { %8785 = vmatpush3.msra.mxu1 %v8064_v30 }
0x17c8   : > { %8786 = vmatprep.subr.mxu1 %v8063_v8 }
0x17c9   : > { %8787 = vmatpush3.msra.mxu1 %v8063_v8 }
0x187a   : > { %v8760_v41 = vpop.f32.mrf.mxu1 }
0x187b   : > { %v4914_v13 = vadd.f32 %v8760_v41, %v4497_v33 }
0x187c   : > { %v4904_v27 = vpop.f32.mrf.mxu1 }
0x187d   : > { %v4916_v34 = vadd.f32 %v4914_v13, %v9776_v5  ;;  %v4913_v55 = vadd.f32 %v4904_v27, %v4496_v42 }
0x187f   : > { %v4915_v44 = vadd.f32 %v4913_v55, %v9769_v2  ;;  %v4924_v45 = vsel %vm900_vm0, %v4916_v34, 0.0  ;;  %v4930_v11 = vmul.f32 %v4916_v34, %v4916_v34  ;;  %v8057_v2 = vld [vmem:[%s9447_s19 + $0x30] sm:$0xff] }
0x1880   : > { %4925 = vadd.xlane.f32.xlu1 %v4924_v45  ;;  %8763 = vmatprep.subr.mxu0 %v8057_v2 }
0x1881   : > { %v4921_v47 = vsel %vm900_vm0, %v4915_v44, 0.0  ;;  %v4929_v48 = vmul.f32 %v4915_v44, %v4915_v44  ;;  %v4934_v5 = vsel %vm900_vm0, %v4930_v11, 0.0  ;;  %8764 = vmatpush3.msra.mxu0 %v8057_v2 }
0x1882   : > { %4922 = vadd.xlane.f32.xlu0 %v4921_v47  ;;  %8765 = vmatprep.subr.mxu0 %v8056_v52 }
0x1883   : > { %v4931_v28 = vsel %vm900_vm0, %v4929_v48, 0.0  ;;  %8766 = vmatpush3.msra.mxu0 %v8056_v52 }
0x1884   : > { %8767 = vmatprep.subr.mxu0 %v8055_v57 }
0x1885   : > { %8768 = vmatpush3.msra.mxu0 %v8055_v57 }
0x1886   : > { %4932 = vadd.xlane.f32.xlu0 %v4931_v28 }
0x188a   : > { %4935 = vadd.xlane.f32.xlu0 %v4934_v5 }
0x1909   : > { %v4926_v0 = vpop.xlane.xlu1 %4925 }
0x190a   : > { %v4928_v14 = vmul.f32 0.03125, %v4926_v0  ;;  %v8077_v0 = vld [vmem:[%s10441_s23 + $0x1] ss:$0 sm:$0xff] }
0x190b   : > { %v4923_v62 = vpop.xlane.xlu0 %4922 }
0x190c   : > { %v4927_v63 = vmul.f32 0.03125, %v4923_v62  ;;  %v4940_v56 = vmul.f32 %v4928_v14, %v4928_v14  ;;  %v4944_v23 = vsub.f32 %v4916_v34, %v4928_v14  ;;  %v8078_v14 = vld [vmem:[%s10442_s2 + $0x1] ss:$0 sm:$0xff] }
0x190e   : > { %v4939_v3 = vmul.f32 %v4927_v63, %v4927_v63  ;;  %v4943_v54 = vsub.f32 %v4915_v44, %v4927_v63 }
0x190f   : > { %v4933_v1 = vpop.xlane.xlu0 %4932 }
0x1910   : > { %v4937_v4 = vmul.f32 0.03125, %v4933_v1 }
0x1912   : > { %v4941_v6 = vsub.f32 %v4937_v4, %v4939_v3 }
0x1913   : > { %v4936_v9 = vpop.xlane.xlu0 %4935 }
0x1914   : > { %v4945_v12 = vadd.f32 1e-06, %v4941_v6  ;;  %v4938_v16 = vmul.f32 0.03125, %v4936_v9 }
0x1916   : > { %9112 = vrsqrt.f32 %v4945_v12  ;;  %v4942_v17 = vsub.f32 %v4938_v16, %v4940_v56 }
0x1918   : > { %v4946_v10 = vadd.f32 1e-06, %v4942_v17 }
0x191a   : > { %9114 = vrsqrt.f32 %v4946_v10 }
0x1923   : > { %v9113_v19 = vpop.eup %9112 }
0x1924   : > { %v4949_v21 = vmul.f32 %v9113_v19, %v4943_v54 }
0x1926   : > { %v4957_v24 = vmul.f32 %v8053_v20, %v4949_v21 }
0x1927   : > { %v9115_v25 = vpop.eup %9114 }
0x1928   : > { %v4950_v53 = vmul.f32 %v9115_v25, %v4944_v23  ;;  %v4965_v7 = vadd.f32 %v8054_v22, %v4957_v24 }
0x192a   : > { %v4958_v18 = vmul.f32 %v8053_v20, %v4950_v53  ;;  %8769 = vmatprep.mubr.msk.f32.mxu0 %vm900_vm0, %v4965_v7 }
0x192c   : > { %v4966_v26 = vadd.f32 %v8054_v22, %v4958_v18 }
0x192e   : > { %8770 = vmatmul.mubr.msk.f32.vlgmr.msra.gmra.mxu0 %vm900_vm0, %v4966_v26 }
0x19ee   : > { %v8771_v46 = vpop.f32.mrf.mxu0 }
0x19ef   : > { %v5058_v61 = vadd.f32 %v8771_v46, %v8060_v51 }
0x19f0   : > { %v5052_v31 = vpop.f32.mrf.mxu0 }
0x19f1   : > { %v5053_v43 = vadd.f32 %v8060_v51, %v5052_v31  ;;  %v5062_v33 = vmax.f32 %v5058_v61, 0.0 }
0x19f3   : > { %v5061_v32 = vmax.f32 %v5053_v43, 0.0 }
0x19f5   : > { %8788 = vmatprep.mubr.msk.f32.mxu1 %vm5080_vm6, %v5061_v32 }
0x19f6   : > { %8789 = vmatmul.mubr.msk.f32.vlgmr.msra.gmra.mxu1 %vm5080_vm6, %v5062_v33 }
0x1ab6   : > { %v8790_v35 = vpop.f32.mrf.mxu1 }
0x1ab7   : > { %v5159_v36 = vadd.f32 %v8790_v35, %v8072_v38 }
0x1ab8   : > { %v5153_v37 = vpop.f32.mrf.mxu1 }
0x1ab9   : > { %v5163_v39 = vadd.f32 %v5159_v36, %v4966_v26  ;;  %v5154_v40 = vadd.f32 %v8072_v38, %v5153_v37 }
0x1abb   : > { %v5162_v41 = vadd.f32 %v5154_v40, %v4965_v7  ;;  %v5171_v42 = vsel %vm900_vm0, %v5163_v39, 0.0  ;;  %v5177_v13 = vmul.f32 %v5163_v39, %v5163_v39 }
0x1abc   : > { %5172 = vadd.xlane.f32.xlu0 %v5171_v42 }
0x1abd   : > { %v5181_v27 = vsel %vm900_vm0, %v5177_v13, 0.0  ;;  %v5168_v34 = vsel %vm900_vm0, %v5162_v41, 0.0  ;;  %v5176_v55 = vmul.f32 %v5162_v41, %v5162_v41 }
0x1abe   : > { %5182 = vadd.xlane.f32.xlu1 %v5181_v27 }
0x1abf   : > { %v5178_v44 = vsel %vm900_vm0, %v5176_v55, 0.0 }
0x1ac0   : > { %5169 = vadd.xlane.f32.xlu0 %v5168_v34 }
0x1ac4   : > { %5179 = vadd.xlane.f32.xlu0 %v5178_v44 }
0x1b45   : > { %v5173_v45 = vpop.xlane.xlu0 %5172 }
0x1b46   : > { %v5175_v47 = vmul.f32 0.03125, %v5173_v45 }
0x1b47   : > { %v5183_v48 = vpop.xlane.xlu1 %5182 }
0x1b48   : > { %v5187_v28 = vmul.f32 %v5175_v47, %v5175_v47  ;;  %v5185_v11 = vmul.f32 0.03125, %v5183_v48  ;;  %v5191_v62 = vsub.f32 %v5163_v39, %v5175_v47 }
0x1b49   : > { %v5170_v5 = vpop.xlane.xlu0 %5169 }
0x1b4a   : > { %v5189_v49 = vsub.f32 %v5185_v11, %v5187_v28  ;;  %v5174_v2 = vmul.f32 0.03125, %v5170_v5 }
0x1b4c   : > { %v5193_v52 = vadd.f32 1e-06, %v5189_v49  ;;  %v5186_v58 = vmul.f32 %v5174_v2, %v5174_v2  ;;  %v5190_v6 = vsub.f32 %v5162_v41, %v5174_v2 }
0x1b4d   : > { %v5180_v57 = vpop.xlane.xlu0 %5179 }
0x1b4e   : > { %9116 = vrsqrt.f32 %v5193_v52  ;;  %v5184_v50 = vmul.f32 0.03125, %v5180_v57 }
0x1b50   : > { %v5188_v59 = vsub.f32 %v5184_v50, %v5186_v58 }
0x1b52   : > { %v5192_v60 = vadd.f32 1e-06, %v5188_v59 }
0x1b54   : > { %9118 = vrsqrt.f32 %v5192_v60 }
0x1b5b   : > { %v9117_v63 = vpop.eup %9116 }
0x1b5c   : > { %v5197_v1 = vmul.f32 %v9117_v63, %v5191_v62 }
0x1b5e   : > { %v5205_v3 = vmul.f32 %v8077_v0, %v5197_v1 }
0x1b60   : > { %v5213_v4 = vadd.f32 %v8078_v14, %v5205_v3 }
0x1b61   : > { %v9119_v9 = vpop.eup %9118 }
0x1b62   : > { %5215 = vst.msk [vmem:[#allocation2 + $0x8] sm:$0xff] %vm900_vm0, %v5213_v4  ;;  %v5196_v56 = vmul.f32 %v9119_v9, %v5190_v6 }
0x1b64   : > { %v5204_v12 = vmul.f32 %v8077_v0, %v5196_v56 }
0x1b66   : > { %v5212_v16 = vadd.f32 %v8078_v14, %v5204_v12 }
0x1b68   : > { %5214 = vst.msk [vmem:[#allocation2] sm:$0xff] %vm900_vm0, %v5212_v16 }
0x1b69 PF: > { %5219 = sbr.rel (%p821_p10) target bundleno = 10413 (0x28ad), region = 108  ;;  %s9235_s7 = smov (!%p821_p10), 64  }
0x1b6a   : > { %s9236_s16 = smov (!%p821_p10), 32  }
0x1b6e   : > { %v8090_v17 = vld [vmem:[%s9425_s0 + $0x110] sm:$0xff]  ;;  %v8089_v10 = vld [vmem:[%s9425_s0 + $0x108] sm:$0xff]  ;;  %v8087_v54 = vld [vmem:[%s9425_s0 + $0xf8] sm:$0xff]  ;;  %v9232_v20 = vmov 0.0   ;;  %vm9233_vm7 = vmmov 0   ;;  %vm5547_vm8 = vcmask 64512  }
0x1b6f   : > { %5265 = vmatprep.subr.mxu0 %v8090_v17  ;;  %v8086_v19 = vld [vmem:[%s9425_s0 + $0xf0] sm:$0xff]  ;;  %5305 = vmatprep.mubr.f32.mxu0 %v9232_v20  ;;  %v8084_v21 = vld [vmem:[%s9425_s0 + $0xe0] sm:$0xff]  ;;  %v8083_v22 = vld [vmem:[%s9425_s0 + $0xd8] sm:$0xff]  ;;  %vm7218_vm9 = vcmask 523264  }
0x1b70   : > { %5266 = vmatpush1.msra.mxu0 %v8089_v10  ;;  %8802 = vmatprep.subr.mxu1 %v9232_v20  ;;  %v8081_v23 = vld [vmem:[%s9425_s0 + $0xc8] sm:$0xff]  ;;  %v8080_v24 = vld [vmem:[%s9425_s0 + $0xc0] sm:$0xff]  ;;  %v8091_v53 = vld [vmem:[%s9425_s0 + $0x118] sm:$0xff] }
0x1b71   : > { %5267 = vmatprep.subr.mxu0 %v8087_v54  ;;  %v10010_v25 = vld [vmem:[#allocation2] sm:$0xff]  ;;  %v10017_v18 = vld [vmem:[#allocation2 + $0x8] sm:$0xff]  ;;  %v8082_v29 = vld [vmem:[%s9425_s0 + $0xd0] sm:$0xff]  ;;  %8804 = vmatprep.mubr.msk.f32.mxu1 %vm9233_vm7, %v9232_v20 }
0x1b72   : > { %5268 = vmatpush1.msra.mxu0 %v8086_v19  ;;  %v8088_v7 = vld [vmem:[%s9425_s0 + $0x100] sm:$0xff]  ;;  %v8085_v26 = vld [vmem:[%s9425_s0 + $0xe8] sm:$0xff]  ;;  %s9234_s0 = smov 96  }
0x1b73   : > { %5269 = vmatprep.subr.mxu0 %v8084_v21 }
0x1b74   : > { %5270 = vmatpush1.msra.mxu0 %v8083_v22 }
0x1b75   : > { %5271 = vmatprep.subr.mxu0 %v8081_v23  ;;  %v8105_v23 = vld [vmem:[%s9431_s1 + $0x118] sm:$0xff] }
0x1b76   : > { %5272 = vmatpush1.msra.mxu0 %v8080_v24 }
0x1b77   : > { %8092 = vmatmul.mubr.msk.f32.vlgmr.msra.gmra.mxu0 %vm900_vm0, %v10010_v25  ;;  %8791 = vmatprep.subr.mxu0 %v8091_v53 }
0x1b78   : > { %5311 = vmatprep.mubr.f32.mxu0 %v9232_v20  ;;  %8792 = vmatpush3.msra.mxu0 %v8091_v53 }
0x1b79   : > { %8793 = vmatprep.subr.mxu0 %v8088_v7 }
0x1b7a   : > { %8794 = vmatpush3.msra.mxu0 %v8088_v7  ;;  %v8115_v7 = vld [vmem:[%s9431_s1 + $0x138] sm:$0xff] }
0x1b7b   : > { %8093 = vmatmul.mubr.msk.f32.gmra.mxu0 %vm900_vm0, %v10017_v18  ;;  %8795 = vmatprep.subr.mxu0 %v8085_v26 }
0x1b7c   : > { %8799 = vmatprep.mubr.msk.f32.mxu0 %vm900_vm0, %v10010_v25  ;;  %8796 = vmatpush3.msra.mxu0 %v8085_v26 }
0x1b7d   : > { %8797 = vmatprep.subr.mxu0 %v8082_v29 }
0x1b7e   : > { %8798 = vmatpush3.msra.mxu0 %v8082_v29 }
0x1b7f   : > { %8800 = vmatmul.mubr.msk.f32.vlgmr.msra.gmra.mxu0 %vm900_vm0, %v10017_v18  ;;  %8807 = vmatprep.subr.mxu0 %v9232_v20 }
0x1b80   : > { %8809 = vmatprep.mubr.msk.f32.mxu0 %vm9233_vm7, %v9232_v20 }
0x1c37   : > { %v5307_v15 = vpop.f32.mrf.mxu0 }
0x1c38   : > { %v10036_v8 = vmul.f32 0.17677669, %v5307_v15 }
0x1c39   : > { %v10032_v30 = vpop.f32.mrf.mxu0 }
0x1c3a   : > { %8803 = vmatpush3.xpose.msk.msra.mxu1 %vm900_vm0, %v10032_v30 }
0x1c3b   : > { %v5313_v51 = vpop.f32.mrf.mxu0  ;;  %8812 = vmatprep.subr.mxu1 %v9232_v20 }
0x1c3c   : > { %v10047_v61 = vmul.f32 0.17677669, %v5313_v51  ;;  %v8114_v51 = vld [vmem:[%s9431_s1 + $0x130] sm:$0xff] }
0x1c3d   : > { %v10039_v46 = vpop.f32.mrf.mxu0  ;;  %8805 = vmatmul.mubr.msk.f32.vlgmr.msra.gmra.mxu1 %vm900_vm0, %v10036_v8 }
0x1c3e   : > { %5801 = vrot.lane.b32.xlu1 %v10039_v46, %s9234_s0  ;;  %8808 = vmatpush3.xpose.msk.msra.mxu0 %vm900_vm0, %v10039_v46 }
0x1c3f   : > { %8817 = vmatprep.subr.mxu0 %v9232_v20  ;;  %8814 = vmatprep.mubr.msk.f32.mxu1 %vm9233_vm7, %v9232_v20  ;;  %v10058_v31 = vpop.f32.mrf.mxu0 }
0x1c41   : > { %8810 = vmatmul.mubr.msk.f32.vlgmr.msra.gmra.mxu0 %vm900_vm0, %v10047_v61  ;;  %v10061_v43 = vpop.f32.mrf.mxu0 }
0x1c42   : > { %5721 = vrot.lane.b32.xlu1 %v10036_v8, %s9234_s0  ;;  %8819 = vmatprep.mubr.msk.f32.mxu0 %vm9233_vm7, %v9232_v20 }
0x1c43   : > { %8818 = vmatpush3.msra.mxu0 %v10058_v31  ;;  %8813 = vmatpush3.msra.mxu1 %v10061_v43 }
0x1c44   : > { %8827 = vmatprep.subr.mxu0 %v9232_v20  ;;  %8822 = vmatprep.subr.mxu1 %v9232_v20 }
0x1cb0   : > { %v5802_v47 = vpop.permute.xlu1 %5801 }
0x1cb4   : > { %v5722_v48 = vpop.permute.xlu1 %5721 }
0x1cfd   : > { %v5467_v32 = vpop.f32.mrf.mxu1 }
0x1cfe   : > { %v5548_v33 = vsel %vm5547_vm8, %v5467_v32, -inf }
0x1cff   : > { %5549 = vmax.xlane.f32.xlu0 %v5548_v33  ;;  %v8806_v38 = vpop.f32.mrf.mxu1 }
0x1d00   : > { %v8103_v38 = vld [vmem:[%s9431_s1 + $0x108] sm:$0xff] }
0x1d01   : > { %v5543_v35 = vpop.f32.mrf.mxu0 }
0x1d02   : > { %v5551_v36 = vsel %vm5547_vm8, %v5543_v35, -inf }
0x1d03   : > { %5552 = vmax.xlane.f32.xlu0 %v5551_v36  ;;  %v8811_v37 = vpop.f32.mrf.mxu0 }
0x1d19   : > { %5723 = vrot.lane.b32.xlu0 %v10032_v30, %s9234_s0 }
0x1d88   : > { %v5550_v39 = vpop.xlane.xlu0 %5549 }
0x1d89   : > { %v5554_v40 = vsub.f32 %v5467_v32, %v5550_v39  ;;  %v8113_v39 = vld [vmem:[%s9431_s1 + $0x128] sm:$0xff] }
0x1d8b   : > { %v5556_v41 = vmul.f32 1.442695, %v5554_v40  ;;  %v8112_v40 = vld [vmem:[%s9431_s1 + $0x120] sm:$0xff] }
0x1d8c   : > { %v5553_v42 = vpop.xlane.xlu0 %5552 }
0x1d8d   : > { %9120 = vpow2.f32 %v5556_v41  ;;  %v5555_v13 = vsub.f32 %v5543_v35, %v5553_v42  ;;  %v8102_v35 = vld [vmem:[%s9431_s1 + $0x100] sm:$0xff] }
0x1d8f   : > { %v5558_v27 = vmul.f32 1.442695, %v5555_v13 }
0x1d90   : > { %v5724_v2 = vpop.permute.xlu0 %5723 }
0x1d91   : > { %9122 = vpow2.f32 %v5558_v27 }
0x1d9a   : > { %v9121_v34 = vpop.eup %9120 }
0x1d9b   : > { %v5560_v55 = vsel %vm5547_vm8, %v9121_v34, 0.0 }
0x1d9c   : > { %5561 = vadd.xlane.f32.xlu1 %v5560_v55 }
0x1d9e   : > { %v9123_v44 = vpop.eup %9122 }
0x1d9f   : > { %v5563_v45 = vsel %vm5547_vm8, %v9123_v44, 0.0 }
0x1da0   : > { %5564 = vadd.xlane.f32.xlu1 %v5563_v45 }
0x1db1   : > { %5799 = vrot.lane.b32.xlu1 %v10047_v61, %s9234_s0 }
0x1e25   : > { %v5562_v28 = vpop.xlane.xlu1 %5561 }
0x1e26   : > { %9124 = vrcp.f32 %v5562_v28 }
0x1e29   : > { %v5565_v11 = vpop.xlane.xlu1 %5564 }
0x1e2a   : > { %9126 = vrcp.f32 %v5565_v11 }
0x1e2d   : > { %v5800_v58 = vpop.permute.xlu1 %5799 }
0x1e33   : > { %v9125_v5 = vpop.eup %9124 }
0x1e34   : > { %v5568_v49 = vmul.f32 %v9125_v5, %v9121_v34 }
0x1e36   : > { %8815 = vmatmul.mubr.msk.f32.vlgmr.msra.gmra.mxu1 %vm5547_vm8, %v5568_v49 }
0x1e37   : > { %v9127_v52 = vpop.eup %9126  ;;  %8823 = vmatpush3.xpose.msk.msra.mxu1 %vm900_vm0, %v5724_v2  ;;  %8824 = vmatprep.mubr.msk.f32.mxu1 %vm9233_vm7, %v9232_v20 }
0x1e38   : > { %v5569_v57 = vmul.f32 %v9127_v52, %v9123_v44  ;;  %8832 = vmatprep.subr.mxu1 %v9232_v20 }
0x1e3a   : > { %8820 = vmatmul.mubr.msk.f32.vlgmr.msra.gmra.mxu0 %vm5547_vm8, %v5569_v57  ;;  %8825 = vmatmul.mubr.msk.f32.vlgmr.msra.gmra.mxu1 %vm900_vm0, %v5722_v48 }
0x1e3b   : > { %8828 = vmatpush3.xpose.msk.msra.mxu0 %vm900_vm0, %v5802_v47  ;;  %8829 = vmatprep.mubr.msk.f32.mxu0 %vm9233_vm7, %v9232_v20 }
0x1e3c   : > { %8837 = vmatprep.subr.mxu0 %v9232_v20  ;;  %8834 = vmatprep.mubr.msk.f32.mxu1 %vm9233_vm7, %v9232_v20 }
0x1e3e   : > { %8830 = vmatmul.mubr.msk.f32.vlgmr.msra.gmra.mxu0 %vm900_vm0, %v5800_v58 }
0x1e3f   : > { %8839 = vmatprep.mubr.msk.f32.mxu0 %vm9233_vm7, %v9232_v20 }
0x1ef6   : > { %v5639_v50 = vpop.f32.mrf.mxu1 }
0x1ef8   : > { %v8816_v59 = vpop.f32.mrf.mxu1 }
0x1efa   : > { %v10090_v60 = vpop.f32.mrf.mxu0  ;;  %v5795_v62 = vpop.f32.mrf.mxu1 }
0x1efb   : > { %v5877_v63 = vsel %vm5547_vm8, %v5795_v62, -inf }
0x1efc   : > { %5878 = vmax.xlane.f32.xlu0 %v5877_v63  ;;  %v8821_v0 = vpop.f32.mrf.mxu0  ;;  %v8826_v1 = vpop.f32.mrf.mxu1 }
0x1efe   : > { %v5873_v14 = vpop.f32.mrf.mxu0 }
0x1eff   : > { %v5880_v3 = vsel %vm5547_vm8, %v5873_v14, -inf }
0x1f00   : > { %5881 = vmax.xlane.f32.xlu1 %v5880_v3  ;;  %v8831_v4 = vpop.f32.mrf.mxu0 }
0x1f11   : > { %5977 = vrot.lane.b32.xlu1 %v10058_v31, %s9234_s0 }
0x1f15   : > { %6299 = vrot.lane.b32.xlu1 %v10039_v46, %s9235_s7 }
0x1f19   : > { %6297 = vrot.lane.b32.xlu1 %v10047_v61, %s9235_s7 }
0x1f1d   : > { %6219 = vrot.lane.b32.xlu1 %v10036_v8, %s9235_s7 }
0x1f21   : > { %6638 = vrot.lane.b32.xlu1 %v10032_v30, %s9236_s16 }
0x1f85   : > { %v5879_v6 = vpop.xlane.xlu0 %5878 }
0x1f86   : > { %v5883_v9 = vsub.f32 %v5795_v62, %v5879_v6 }
0x1f88   : > { %v5885_v56 = vmul.f32 1.442695, %v5883_v9 }
0x1f89   : > { %v5882_v12 = vpop.xlane.xlu1 %5881 }
0x1f8a   : > { %9128 = vpow2.f32 %v5885_v56  ;;  %v5884_v16 = vsub.f32 %v5873_v14, %v5882_v12 }
0x1f8c   : > { %v5887_v17 = vmul.f32 1.442695, %v5884_v16 }
0x1f8d   : > { %v5978_v10 = vpop.permute.xlu1 %5977 }
0x1f8e   : > { %9130 = vpow2.f32 %v5887_v17  ;;  %8838 = vmatpush3.msra.mxu0 %v5978_v10 }
0x1f8f   : > { %8853 = vmatprep.subr.mxu0 %v8105_v23 }
0x1f91   : > { %v6300_v36 = vpop.permute.xlu1 %6299 }
0x1f95   : > { %v6298_v37 = vpop.permute.xlu1 %6297 }
0x1f97   : > { %v9129_v54 = vpop.eup %9128 }
0x1f98   : > { %v5889_v19 = vsel %vm5547_vm8, %v9129_v54, 0.0 }
0x1f99   : > { %5890 = vadd.xlane.f32.xlu0 %v5889_v19  ;;  %v6220_v55 = vpop.permute.xlu1 %6219 }
0x1f9b   : > { %v9131_v21 = vpop.eup %9130 }
0x1f9c   : > { %v5892_v22 = vsel %vm5547_vm8, %v9131_v21, 0.0 }
0x1f9d   : > { %5893 = vadd.xlane.f32.xlu0 %v5892_v22 }
0x1fb3   : > { %5900 = vrot.lane.b32.xlu0 %v10061_v43, %s9234_s0 }
0x1fb7   : > { %6221 = vrot.lane.b32.xlu0 %v10032_v30, %s9235_s7  ;;  %v8104_v30 = vld [vmem:[%s9431_s1 + $0x110] sm:$0xff] }
0x2022   : > { %v5891_v24 = vpop.xlane.xlu0 %5890 }
0x2023   : > { %9132 = vrcp.f32 %v5891_v24 }
0x2026   : > { %v5894_v53 = vpop.xlane.xlu0 %5893 }
0x2027   : > { %9134 = vrcp.f32 %v5894_v53 }
0x202a   : > { %v5901_v26 = vpop.permute.xlu0 %5900 }
0x202b   : > { %8833 = vmatpush3.msra.mxu1 %v5901_v26  ;;  %v8129_v26 = vld [vmem:[%s9431_s1 + $0x158] sm:$0xff] }
0x202c   : > { %8842 = vmatprep.subr.mxu1 %v8115_v7 }
0x202e   : > { %v6222_v27 = vpop.permute.xlu0 %6221 }
0x2030   : > { %v9133_v29 = vpop.eup %9132 }
0x2031   : > { %v5897_v15 = vmul.f32 %v9133_v29, %v9129_v54  ;;  %v8128_v29 = vld [vmem:[%s9431_s1 + $0x150] sm:$0xff] }
0x2033   : > { %8835 = vmatmul.mubr.msk.f32.vlgmr.msra.gmra.mxu1 %vm5547_vm8, %v5897_v15  ;;  %v8127_v15 = vld [vmem:[%s9431_s1 + $0x148] sm:$0xff] }
0x2034   : > { %v9135_v32 = vpop.eup %9134  ;;  %8843 = vmatpush3.msra.mxu1 %v8115_v7 }
0x2035   : > { %v5898_v33 = vmul.f32 %v9135_v32, %v9131_v21  ;;  %8844 = vmatprep.subr.mxu1 %v8114_v51 }
0x2036   : > { %8845 = vmatpush3.msra.mxu1 %v8114_v51  ;;  %v8126_v51 = vld [vmem:[%s9431_s1 + $0x140] sm:$0xff] }
0x2037   : > { %8840 = vmatmul.mubr.msk.f32.vlgmr.msra.gmra.mxu0 %vm5547_vm8, %v5898_v33  ;;  %8846 = vmatprep.subr.mxu1 %v8113_v39 }
0x2038   : > { %8854 = vmatpush3.msra.mxu0 %v8105_v23  ;;  %8861 = vmatprep.mubr.msk.f32.mxu0 %vm900_vm0, %v5639_v50 }
0x2039   : > { %8855 = vmatprep.subr.mxu0 %v8104_v30  ;;  %8847 = vmatpush3.msra.mxu1 %v8113_v39 }
0x203a   : > { %8856 = vmatpush3.msra.mxu0 %v8104_v30  ;;  %8848 = vmatprep.subr.mxu1 %v8112_v40 }
0x203b   : > { %8857 = vmatprep.subr.mxu0 %v8103_v38  ;;  %8849 = vmatpush3.msra.mxu1 %v8112_v40 }
0x203c   : > { %8858 = vmatpush3.msra.mxu0 %v8103_v38  ;;  %8864 = vmatprep.subr.mxu1 %v9232_v20 }
0x203d   : > { %8859 = vmatprep.subr.mxu0 %v8102_v35 }
0x203e   : > { %8860 = vmatpush3.msra.mxu0 %v8102_v35 }
0x203f   : > { %8862 = vmatmul.mubr.msk.f32.vlgmr.msra.gmra.mxu0 %vm900_vm0, %v10090_v60  ;;  %8869 = vmatprep.subr.mxu0 %v9232_v20  ;;  %v6639_v60 = vpop.permute.xlu1 %6638 }
0x2040   : > { %8870 = vmatpush3.xpose.msk.msra.mxu0 %vm900_vm0, %v6300_v36  ;;  %8871 = vmatprep.mubr.msk.f32.mxu0 %vm9233_vm7, %v9232_v20 }
0x2041   : > { %8879 = vmatprep.subr.mxu0 %v9232_v20 }
0x2043   : > { %8872 = vmatmul.mubr.msk.f32.vlgmr.msra.gmra.mxu0 %vm900_vm0, %v6298_v37 }
0x2044   : > { %8881 = vmatprep.mubr.msk.f32.mxu0 %vm9233_vm7, %v9232_v20 }
0x20f3   : > { %v5972_v41 = vpop.f32.mrf.mxu1 }
0x20f4   : > { %8850 = vmatprep.mubr.msk.f32.mxu1 %vm900_vm0, %v5972_v41 }
0x20f5   : > { %v8836_v42 = vpop.f32.mrf.mxu1 }
0x20f7   : > { %v6049_v13 = vpop.f32.mrf.mxu0 }
0x20f8   : > { %8851 = vmatmul.mubr.msk.f32.vlgmr.msra.gmra.mxu1 %vm900_vm0, %v6049_v13 }
0x20f9   : > { %8865 = vmatpush3.xpose.msk.msra.mxu1 %vm900_vm0, %v6222_v27  ;;  %v8841_v34 = vpop.f32.mrf.mxu0  ;;  %8866 = vmatprep.mubr.msk.f32.mxu1 %vm9233_vm7, %v9232_v20 }
0x20fa   : > { %8874 = vmatprep.subr.mxu1 %v9232_v20 }
0x20fc   : > { %8867 = vmatmul.mubr.msk.f32.vlgmr.msra.gmra.mxu1 %vm900_vm0, %v6220_v55  ;;  %v8141_v55 = vld [vmem:[%s9431_s1 + $0x178] sm:$0xff] }
0x20fd   : > { %8876 = vmatprep.mubr.msk.f32.mxu1 %vm9233_vm7, %v9232_v20 }
0x20ff   : > { %v10141_v44 = vpop.f32.mrf.mxu0 }
0x2101   : > { %v10143_v45 = vpop.f32.mrf.mxu0 }
0x2103   : > { %v6371_v47 = vpop.f32.mrf.mxu0 }
0x2104   : > { %v6378_v48 = vsel %vm5547_vm8, %v6371_v47, -inf }
0x2105   : > { %6379 = vmax.xlane.f32.xlu0 %v6378_v48  ;;  %v8873_v28 = vpop.f32.mrf.mxu0 }
0x2106   : > { %v8140_v28 = vld [vmem:[%s9431_s1 + $0x170] sm:$0xff] }
0x211b   : > { %6473 = vrot.lane.b32.xlu0 %v10058_v31, %s9235_s7 }
0x211f   : > { %6636 = vrot.lane.b32.xlu0 %v10036_v8, %s9236_s16 }
0x2123   : > { %6714 = vrot.lane.b32.xlu0 %v10047_v61, %s9236_s16 }
0x218e   : > { %v6380_v11 = vpop.xlane.xlu0 %6379 }
0x218f   : > { %v6382_v5 = vsub.f32 %v6371_v47, %v6380_v11 }
0x2191   : > { %v6385_v49 = vmul.f32 1.442695, %v6382_v5 }
0x2192   : > { %v6474_v2 = vpop.permute.xlu0 %6473 }
0x2193   : > { %9136 = vpow2.f32 %v6385_v49  ;;  %8880 = vmatpush3.msra.mxu0 %v6474_v2  ;;  %v8138_v49 = vld [vmem:[%s9431_s1 + $0x160] sm:$0xff] }
0x2194   : > { %8895 = vmatprep.subr.mxu0 %v9232_v20 }
0x2196   : > { %v6637_v1 = vpop.permute.xlu0 %6636 }
0x219a   : > { %v6715_v14 = vpop.permute.xlu0 %6714 }
0x21a0   : > { %v9137_v52 = vpop.eup %9136 }
0x21a1   : > { %v6390_v57 = vsel %vm5547_vm8, %v9137_v52, 0.0 }
0x21a2   : > { %6391 = vadd.xlane.f32.xlu1 %v6390_v57 }
0x21b3   : > { %6716 = vrot.lane.b32.xlu1 %v10039_v46, %s9236_s16 }
0x21b8   : > { %v10156_v58 = vpop.f32.mrf.mxu1 }
0x21b9   : > { %v6216_v2 = vadd.f32 %v10141_v44, %v10156_v58 }
0x21ba   : > { %v10158_v8 = vpop.f32.mrf.mxu1 }
0x21bc   : > { %v6293_v61 = vpop.f32.mrf.mxu1 }
0x21bd   : > { %v6375_v59 = vsel %vm5547_vm8, %v6293_v61, -inf }
0x21be   : > { %v8868_v50 = vpop.f32.mrf.mxu1 }
0x21d7   : > { %6376 = vmax.xlane.f32.xlu1 %v6375_v59 }
0x222b   : > { %v6392_v62 = vpop.xlane.xlu1 %6391 }
0x222c   : > { %9138 = vrcp.f32 %v6392_v62 }
0x222f   : > { %v6717_v46 = vpop.permute.xlu1 %6716 }
0x2239   : > { %v9139_v63 = vpop.eup %9138 }
0x223a   : > { %v6396_v0 = vmul.f32 %v9139_v63, %v9137_v52  ;;  %v6211_v63 = vadd.f32 %v10143_v45, %v10158_v8 }
0x223c   : > { %8882 = vmatmul.mubr.msk.f32.vlgmr.msra.gmra.mxu0 %vm5547_vm8, %v6396_v0 }
0x223d   : > { %8896 = vmatpush3.xpose.msk.msra.mxu0 %vm900_vm0, %v6639_v60  ;;  %8897 = vmatprep.mubr.msk.f32.mxu0 %vm9233_vm7, %v9232_v20 }
0x223e   : > { %8900 = vmatprep.subr.mxu0 %v9232_v20 }
0x2240   : > { %8898 = vmatmul.mubr.msk.f32.vlgmr.msra.gmra.mxu0 %vm900_vm0, %v6637_v1 }
0x2241   : > { %8901 = vmatpush3.xpose.msk.msra.mxu0 %vm900_vm0, %v6717_v46  ;;  %8902 = vmatprep.mubr.msk.f32.mxu0 %vm9233_vm7, %v9232_v20 }
0x2242   : > { %8910 = vmatprep.subr.mxu0 %v9232_v20 }
0x2244   : > { %8903 = vmatmul.mubr.msk.f32.vlgmr.msra.gmra.mxu0 %vm900_vm0, %v6715_v14 }
0x2245   : > { %8912 = vmatprep.mubr.msk.f32.mxu0 %vm9233_vm7, %v9232_v20 }
0x2260   : > { %v6377_v3 = vpop.xlane.xlu1 %6376 }
0x2261   : > { %v6381_v4 = vsub.f32 %v6293_v61, %v6377_v3 }
0x2263   : > { %v6383_v6 = vmul.f32 1.442695, %v6381_v4 }
0x2265   : > { %9140 = vpow2.f32 %v6383_v6 }
0x2272   : > { %v9141_v9 = vpop.eup %9140 }
0x2273   : > { %v6387_v56 = vsel %vm5547_vm8, %v9141_v9, 0.0 }
0x2274   : > { %6388 = vadd.xlane.f32.xlu0 %v6387_v56  ;;  %v8151_v56 = vld [vmem:[%s9447_s19 + $0x58] sm:$0xff] }
0x228a   : > { %6397 = vrot.lane.b32.xlu0 %v10061_v43, %s9235_s7 }
0x228e   : > { %6890 = vrot.lane.b32.xlu0 %v10058_v31, %s9236_s16 }
0x22fc   : > { %v6545_v12 = vpop.f32.mrf.mxu0 }
0x22fd   : > { %v6389_v16 = vpop.xlane.xlu0 %6388 }
0x22fe   : > { %9142 = vrcp.f32 %v6389_v16  ;;  %v8883_v17 = vpop.f32.mrf.mxu0  ;;  %v8148_v16 = vld [vmem:[%s9447_s19 + $0x40] sm:$0xff] }
0x22ff   : > { %v8163_v17 = vld [vmem:[%s9473_s27 + $0xb8] sm:$0xff] }
0x2300   : > { %v6710_v10 = vpop.f32.mrf.mxu0 }
0x2301   : > { %v6398_v54 = vpop.permute.xlu0 %6397  ;;  %v6792_v19 = vsel %vm5547_vm8, %v6710_v10, -inf }
0x2302   : > { %8875 = vmatpush3.msra.mxu1 %v6398_v54  ;;  %6793 = vmax.xlane.f32.xlu1 %v6792_v19  ;;  %v8899_v21 = vpop.f32.mrf.mxu0  ;;  %v8161_v54 = vld [vmem:[%s9473_s27 + $0xa8] sm:$0xff]  ;;  %v8160_v19 = vld [vmem:[%s9473_s27 + $0xa0] sm:$0xff] }
0x2303   : > { %8884 = vmatprep.subr.mxu1 %v8129_v26 }
0x2304   : > { %v6788_v22 = vpop.f32.mrf.mxu0 }
0x2305   : > { %v6891_v23 = vpop.permute.xlu0 %6890  ;;  %v6795_v24 = vsel %vm5547_vm8, %v6788_v22, -inf }
0x2306   : > { %8911 = vmatpush3.msra.mxu0 %v6891_v23  ;;  %6796 = vmax.xlane.f32.xlu1 %v6795_v24  ;;  %v8904_v31 = vpop.f32.mrf.mxu0 }
0x2307   : > { %8926 = vmatprep.subr.mxu0 %v8151_v56 }
0x230b   : > { %v9143_v53 = vpop.eup %9142 }
0x230c   : > { %v6395_v7 = vmul.f32 %v9143_v53, %v9141_v9 }
0x230e   : > { %8877 = vmatmul.mubr.msk.f32.vlgmr.msra.gmra.mxu1 %vm5547_vm8, %v6395_v7 }
0x230f   : > { %8885 = vmatpush3.msra.mxu1 %v8129_v26 }
0x2310   : > { %8886 = vmatprep.subr.mxu1 %v8128_v29 }
0x2311   : > { %8887 = vmatpush3.msra.mxu1 %v8128_v29 }
0x2312   : > { %8888 = vmatprep.subr.mxu1 %v8127_v15 }
0x2313   : > { %8889 = vmatpush3.msra.mxu1 %v8127_v15 }
0x2314   : > { %8890 = vmatprep.subr.mxu1 %v8126_v51 }
0x2315   : > { %8891 = vmatpush3.msra.mxu1 %v8126_v51 }
0x2316   : > { %8905 = vmatprep.subr.mxu1 %v9232_v20 }
0x238b   : > { %v6794_v32 = vpop.xlane.xlu1 %6793 }
0x238c   : > { %v6798_v33 = vsub.f32 %v6710_v10, %v6794_v32  ;;  %v8162_v10 = vld [vmem:[%s9473_s27 + $0xb0] sm:$0xff] }
0x238e   : > { %v6800_v30 = vmul.f32 1.442695, %v6798_v33 }
0x238f   : > { %v6797_v38 = vpop.xlane.xlu1 %6796 }
0x2390   : > { %9144 = vpow2.f32 %v6800_v30  ;;  %v6799_v35 = vsub.f32 %v6788_v22, %v6797_v38 }
0x2392   : > { %v6802_v36 = vmul.f32 1.442695, %v6799_v35 }
0x2394   : > { %9146 = vpow2.f32 %v6802_v36  ;;  %v8146_v36 = vld [vmem:[%s9437_s29 + $0x2] ss:$0 sm:$0xff] }
0x239d   : > { %v9145_v37 = vpop.eup %9144 }
0x239e   : > { %v6804_v39 = vsel %vm5547_vm8, %v9145_v37, 0.0 }
0x239f   : > { %6805 = vadd.xlane.f32.xlu1 %v6804_v39  ;;  %v8147_v39 = vld [vmem:[%s9442_s20 + $0x2] ss:$0 sm:$0xff] }
0x23a1   : > { %v9147_v40 = vpop.eup %9146 }
0x23a2   : > { %v6807_v41 = vsel %vm5547_vm8, %v9147_v40, 0.0 }
0x23a3   : > { %6808 = vadd.xlane.f32.xlu1 %v6807_v41 }
0x23b4   : > { %6814 = vrot.lane.b32.xlu1 %v10061_v43, %s9236_s16 }
0x23ce   : > { %v6469_v42 = vpop.f32.mrf.mxu1 }
0x23cf   : > { %8892 = vmatprep.mubr.msk.f32.mxu1 %vm900_vm0, %v6469_v42 }
0x23d0   : > { %v8878_v13 = vpop.f32.mrf.mxu1  ;;  %8893 = vmatmul.mubr.msk.f32.vlgmr.msra.gmra.mxu1 %vm900_vm0, %v6545_v12  ;;  %v8149_v12 = vld [vmem:[%s9447_s19 + $0x48] sm:$0xff] }
0x23d1   : > { %8907 = vmatprep.mubr.msk.f32.mxu1 %vm9233_vm7, %v9232_v20  ;;  %v8139_v20 = vld [vmem:[%s9431_s1 + $0x168] sm:$0xff]  ;;  %s10445_s1 = sld [smem:[#allocation16_spill]] }
0x2428   : > { %v6806_v27 = vpop.xlane.xlu1 %6805 }
0x2429   : > { %9148 = vrcp.f32 %v6806_v27 }
0x242c   : > { %v6809_v34 = vpop.xlane.xlu1 %6808 }
0x242d   : > { %9150 = vrcp.f32 %v6809_v34 }
0x2430   : > { %v6815_v47 = vpop.permute.xlu1 %6814 }
0x2431   : > { %8906 = vmatpush3.msra.mxu1 %v6815_v47  ;;  %v8159_v47 = vld [vmem:[%s9473_s27 + $0x98] sm:$0xff] }
0x2432   : > { %8915 = vmatprep.subr.mxu1 %v8141_v55 }
0x2436   : > { %v9149_v43 = vpop.eup %9148 }
0x2437   : > { %v6812_v48 = vmul.f32 %v9149_v43, %v9145_v37  ;;  %v8158_v43 = vld [vmem:[%s9473_s27 + $0x90] sm:$0xff] }
0x2439   : > { %8908 = vmatmul.mubr.msk.f32.vlgmr.msra.gmra.mxu1 %vm5547_vm8, %v6812_v48  ;;  %v8157_v48 = vld [vmem:[%s9473_s27 + $0x88] sm:$0xff] }
0x243a   : > { %v9151_v11 = vpop.eup %9150  ;;  %8916 = vmatpush3.msra.mxu1 %v8141_v55 }
0x243b   : > { %v6813_v5 = vmul.f32 %v9151_v11, %v9147_v40  ;;  %8917 = vmatprep.subr.mxu1 %v8140_v28  ;;  %v8153_v11 = vld [vmem:[%s9452_s22 + $0x2] ss:$0 sm:$0xff] }
0x243c   : > { %8918 = vmatpush3.msra.mxu1 %v8140_v28  ;;  %v8156_v28 = vld [vmem:[%s9473_s27 + $0x80] sm:$0xff] }
0x243d   : > { %8913 = vmatmul.mubr.msk.f32.vlgmr.msra.gmra.mxu0 %vm5547_vm8, %v6813_v5  ;;  %8919 = vmatprep.subr.mxu1 %v8139_v20 }
0x243e   : > { %8920 = vmatpush3.msra.mxu1 %v8139_v20  ;;  %8927 = vmatpush3.msra.mxu0 %v8151_v56 }
0x243f   : > { %8921 = vmatprep.subr.mxu1 %v8138_v49 }
0x2440   : > { %8922 = vmatpush3.msra.mxu1 %v8138_v49 }
0x2441   : > { %8937 = vmatprep.subr.mxu1 %v8163_v17 }
0x2490   : > { %v8894_v52 = vpop.f32.mrf.mxu1 }
0x2491   : > { %v6635_v57 = vadd.f32 %v8894_v52, %v6216_v2 }
0x2492   : > { %v6625_v61 = vpop.f32.mrf.mxu1 }
0x2493   : > { %v6634_v1 = vadd.f32 %v6625_v61, %v6211_v63  ;;  %v8165_v61 = vld [vmem:[%s9458_s5 + $0x2] ss:$0 sm:$0xff]  ;;  %s10444_s5 = sld [smem:[#allocation15_spill]] }
0x24f9   : > { %v6886_v50 = vpop.f32.mrf.mxu1 }
0x24fa   : > { %8923 = vmatprep.mubr.msk.f32.mxu1 %vm900_vm0, %v6886_v50 }
0x24fb   : > { %v8909_v59 = vpop.f32.mrf.mxu1 }
0x24fd   : > { %v6962_v60 = vpop.f32.mrf.mxu0 }
0x24fe   : > { %8924 = vmatmul.mubr.msk.f32.vlgmr.msra.gmra.mxu1 %vm900_vm0, %v6962_v60 }
0x24ff   : > { %v8914_v62 = vpop.f32.mrf.mxu0  ;;  %8938 = vmatpush3.msra.mxu1 %v8163_v17 }
0x2500   : > { %8939 = vmatprep.subr.mxu1 %v8162_v10 }
0x2501   : > { %8940 = vmatpush3.msra.mxu1 %v8162_v10 }
0x2502   : > { %8941 = vmatprep.subr.mxu1 %v8161_v54 }
0x2503   : > { %8942 = vmatpush3.msra.mxu1 %v8161_v54 }
0x2504   : > { %8943 = vmatprep.subr.mxu1 %v8160_v19 }
0x2505   : > { %8944 = vmatpush3.msra.mxu1 %v8160_v19 }
0x2506   : > { %8945 = vmatprep.subr.mxu1 %v8159_v47 }
0x2507   : > { %8946 = vmatpush3.msra.mxu1 %v8159_v47 }
0x2508   : > { %8947 = vmatprep.subr.mxu1 %v8158_v43 }
0x2509   : > { %8948 = vmatpush3.msra.mxu1 %v8158_v43 }
0x250a   : > { %8949 = vmatprep.subr.mxu1 %v8157_v48 }
0x250b   : > { %8950 = vmatpush3.msra.mxu1 %v8157_v48 }
0x250c   : > { %8951 = vmatprep.subr.mxu1 %v8156_v28 }
0x250d   : > { %8952 = vmatpush3.msra.mxu1 %v8156_v28 }
0x25be   : > { %v8925_v0 = vpop.f32.mrf.mxu1 }
0x25bf   : > { %v7052_v46 = vadd.f32 %v8925_v0, %v6635_v57 }
0x25c0   : > { %v7042_v44 = vpop.f32.mrf.mxu1 }
0x25c1   : > { %v7054_v58 = vadd.f32 %v7052_v46, %v10017_v18  ;;  %v7051_v14 = vadd.f32 %v7042_v44, %v6634_v1 }
0x25c3   : > { %v7053_v3 = vadd.f32 %v7051_v14, %v10010_v25  ;;  %v7062_v4 = vsel %vm900_vm0, %v7054_v58, 0.0  ;;  %v7068_v8 = vmul.f32 %v7054_v58, %v7054_v58  ;;  %v8150_v25 = vld [vmem:[%s9447_s19 + $0x50] sm:$0xff] }
0x25c4   : > { %7063 = vadd.xlane.f32.xlu1 %v7062_v4  ;;  %8928 = vmatprep.subr.mxu0 %v8150_v25 }
0x25c5   : > { %v7059_v6 = vsel %vm900_vm0, %v7053_v3, 0.0  ;;  %v7067_v9 = vmul.f32 %v7053_v3, %v7053_v3  ;;  %v7072_v18 = vsel %vm900_vm0, %v7068_v8, 0.0  ;;  %8929 = vmatpush3.msra.mxu0 %v8150_v25 }
0x25c6   : > { %7060 = vadd.xlane.f32.xlu0 %v7059_v6  ;;  %8930 = vmatprep.subr.mxu0 %v8149_v12 }
0x25c7   : > { %v7069_v45 = vsel %vm900_vm0, %v7067_v9, 0.0  ;;  %8931 = vmatpush3.msra.mxu0 %v8149_v12 }
0x25c8   : > { %8932 = vmatprep.subr.mxu0 %v8148_v16 }
0x25c9   : > { %8933 = vmatpush3.msra.mxu0 %v8148_v16 }
0x25ca   : > { %7070 = vadd.xlane.f32.xlu0 %v7069_v45 }
0x25ce   : > { %7073 = vadd.xlane.f32.xlu0 %v7072_v18 }
0x264d   : > { %v7064_v23 = vpop.xlane.xlu1 %7063 }
0x264e   : > { %v7066_v31 = vmul.f32 0.03125, %v7064_v23  ;;  %v8170_v23 = vld [vmem:[%s10444_s5 + $0x2] ss:$0 sm:$0xff] }
0x264f   : > { %v7061_v21 = vpop.xlane.xlu0 %7060 }
0x2650   : > { %v7065_v22 = vmul.f32 0.03125, %v7061_v21  ;;  %v7078_v15 = vmul.f32 %v7066_v31, %v7066_v31  ;;  %v7082_v40 = vsub.f32 %v7054_v58, %v7066_v31  ;;  %v8171_v31 = vld [vmem:[%s10445_s1 + $0x2] ss:$0 sm:$0xff] }
0x2652   : > { %v7077_v53 = vmul.f32 %v7065_v22, %v7065_v22  ;;  %v7081_v38 = vsub.f32 %v7053_v3, %v7065_v22 }
0x2653   : > { %v7071_v24 = vpop.xlane.xlu0 %7070 }
0x2654   : > { %v7075_v7 = vmul.f32 0.03125, %v7071_v24 }
0x2656   : > { %v7079_v26 = vsub.f32 %v7075_v7, %v7077_v53 }
0x2657   : > { %v7074_v29 = vpop.xlane.xlu0 %7073 }
0x2658   : > { %v7083_v51 = vadd.f32 1e-06, %v7079_v26  ;;  %v7076_v32 = vmul.f32 0.03125, %v7074_v29 }
0x265a   : > { %9152 = vrsqrt.f32 %v7083_v51  ;;  %v7080_v33 = vsub.f32 %v7076_v32, %v7078_v15 }
0x265c   : > { %v7084_v30 = vadd.f32 1e-06, %v7080_v33 }
0x265e   : > { %9154 = vrsqrt.f32 %v7084_v30 }
0x2667   : > { %v9153_v35 = vpop.eup %9152 }
0x2668   : > { %v7087_v37 = vmul.f32 %v9153_v35, %v7081_v38 }
0x266a   : > { %v7095_v41 = vmul.f32 %v8146_v36, %v7087_v37 }
0x266b   : > { %v9155_v42 = vpop.eup %9154 }
0x266c   : > { %v7088_v13 = vmul.f32 %v9155_v42, %v7082_v40  ;;  %v7103_v27 = vadd.f32 %v8147_v39, %v7095_v41 }
0x266e   : > { %v7096_v34 = vmul.f32 %v8146_v36, %v7088_v13  ;;  %8934 = vmatprep.mubr.msk.f32.mxu0 %vm900_vm0, %v7103_v27 }
0x2670   : > { %v7104_v55 = vadd.f32 %v8147_v39, %v7096_v34 }
0x2672   : > { %8935 = vmatmul.mubr.msk.f32.vlgmr.msra.gmra.mxu0 %vm900_vm0, %v7104_v55 }
0x2732   : > { %v8936_v5 = vpop.f32.mrf.mxu0 }
0x2733   : > { %v7196_v20 = vadd.f32 %v8936_v5, %v8153_v11 }
0x2734   : > { %v7190_v49 = vpop.f32.mrf.mxu0 }
0x2735   : > { %v7191_v2 = vadd.f32 %v8153_v11, %v7190_v49  ;;  %v7200_v57 = vmax.f32 %v7196_v20, 0.0 }
0x2737   : > { %v7199_v52 = vmax.f32 %v7191_v2, 0.0 }
0x2739   : > { %8953 = vmatprep.mubr.msk.f32.mxu1 %vm7218_vm9, %v7199_v52 }
0x273a   : > { %8954 = vmatmul.mubr.msk.f32.vlgmr.msra.gmra.mxu1 %vm7218_vm9, %v7200_v57 }
0x27fa   : > { %v8955_v50 = vpop.f32.mrf.mxu1 }
0x27fb   : > { %v7297_v59 = vadd.f32 %v8955_v50, %v8165_v61 }
0x27fc   : > { %v7291_v60 = vpop.f32.mrf.mxu1 }
0x27fd   : > { %v7301_v62 = vadd.f32 %v7297_v59, %v7104_v55  ;;  %v7292_v63 = vadd.f32 %v8165_v61, %v7291_v60 }
0x27ff   : > { %v7300_v0 = vadd.f32 %v7292_v63, %v7103_v27  ;;  %v7309_v1 = vsel %vm900_vm0, %v7301_v62, 0.0  ;;  %v7315_v46 = vmul.f32 %v7301_v62, %v7301_v62 }
0x2800   : > { %7310 = vadd.xlane.f32.xlu0 %v7309_v1 }
0x2801   : > { %v7319_v44 = vsel %vm900_vm0, %v7315_v46, 0.0  ;;  %v7306_v58 = vsel %vm900_vm0, %v7300_v0, 0.0  ;;  %v7314_v14 = vmul.f32 %v7300_v0, %v7300_v0 }
0x2802   : > { %7320 = vadd.xlane.f32.xlu1 %v7319_v44 }
0x2803   : > { %v7316_v3 = vsel %vm900_vm0, %v7314_v14, 0.0 }
0x2804   : > { %7307 = vadd.xlane.f32.xlu0 %v7306_v58 }
0x2808   : > { %7317 = vadd.xlane.f32.xlu0 %v7316_v3 }
0x2889   : > { %v7311_v4 = vpop.xlane.xlu0 %7310 }
0x288a   : > { %v7313_v6 = vmul.f32 0.03125, %v7311_v4 }
0x288b   : > { %v7321_v9 = vpop.xlane.xlu1 %7320 }
0x288c   : > { %v7325_v45 = vmul.f32 %v7313_v6, %v7313_v6  ;;  %v7323_v8 = vmul.f32 0.03125, %v7321_v9  ;;  %v7329_v21 = vsub.f32 %v7301_v62, %v7313_v6 }
0x288d   : > { %v7308_v18 = vpop.xlane.xlu0 %7307 }
0x288e   : > { %v7327_v56 = vsub.f32 %v7323_v8, %v7325_v45  ;;  %v7312_v25 = vmul.f32 0.03125, %v7308_v18 }
0x2890   : > { %v7331_v12 = vadd.f32 1e-06, %v7327_v56  ;;  %v7324_v17 = vmul.f32 %v7312_v25, %v7312_v25  ;;  %v7328_v26 = vsub.f32 %v7300_v0, %v7312_v25 }
0x2891   : > { %v7318_v16 = vpop.xlane.xlu0 %7317 }
0x2892   : > { %9156 = vrsqrt.f32 %v7331_v12  ;;  %v7322_v10 = vmul.f32 0.03125, %v7318_v16 }
0x2894   : > { %v7326_v54 = vsub.f32 %v7322_v10, %v7324_v17 }
0x2896   : > { %v7330_v19 = vadd.f32 1e-06, %v7326_v54 }
0x2898   : > { %9158 = vrsqrt.f32 %v7330_v19 }
0x289f   : > { %v9157_v22 = vpop.eup %9156 }
0x28a0   : > { %v7335_v24 = vmul.f32 %v9157_v22, %v7329_v21 }
0x28a2   : > { %v7343_v53 = vmul.f32 %v8170_v23, %v7335_v24 }
0x28a4   : > { %v7351_v7 = vadd.f32 %v8171_v31, %v7343_v53 }
0x28a5   : > { %v9159_v29 = vpop.eup %9158 }
0x28a6   : > { %7353 = vst.msk [vmem:[#allocation2 + $0x8] sm:$0xff] %vm900_vm0, %v7351_v7  ;;  %v7334_v15 = vmul.f32 %v9159_v29, %v7328_v26 }
0x28a8   : > { %v7342_v51 = vmul.f32 %v8170_v23, %v7334_v15 }
0x28aa   : > { %v7350_v32 = vadd.f32 %v8171_v31, %v7342_v51 }
0x28ac   : > { %7352 = vst.msk [vmem:[#allocation2] sm:$0xff] %vm900_vm0, %v7350_v32 }
0x28ad PF: > { %s10446_s29 = sld [smem:[#allocation14_spill]]  ;;  %v9237_v36 = vmov 0.0   ;;  %v7355_v41 = vld [vmem:[#allocation2 + $0x8] sm:$0xff]  ;;  %vm7379_vm10 = vcmask 1041409   ;;  %v7487_v42 = vld [vmem:[%s9485_s11 + $0xf8] sm:$0xff]  ;;  %v7486_v55 = vld [vmem:[%s9485_s11 + $0xf0] sm:$0xff]  ;;  %v7366_v17 = vlaneseq }
0x28ae   : > { %7447 = vmatprep.mubr.f32.mxu0 %v9237_v36  ;;  %v7471_v13 = vld [vmem:[%s9485_s11 + $0x78] sm:$0xff]  ;;  %v7378_v34 = vrot.slane %v7355_v41, 7  ;;  %8417 = vmatprep.subr.mxu1 %v7487_v42  ;;  %v7470_v47 = vld [vmem:[%s9485_s11 + $0x70] sm:$0xff]  ;;  %v7485_v48 = vld [vmem:[%s9485_s11 + $0xe8] sm:$0xff]  ;;  %vm9238_vm11 = vmmov 0   ;;  %vm7581_vm12 = vcmask 523264  }
0x28af   : > { %8418 = vmatpush3.msra.mxu1 %v7471_v13  ;;  %v7469_v11 = vld [vmem:[%s9485_s11 + $0x68] sm:$0xff]  ;;  %v7484_v5 = vld [vmem:[%s9485_s11 + $0xe0] sm:$0xff]  ;;  %v7483_v49 = vld [vmem:[%s9485_s11 + $0xd8] sm:$0xff]  ;;  %v7367_v10 = vshrl.u32 %v7366_v17, 7  ;;  %s7670_s9 = sshll.u32 %s820_s21, 4  ;;  %s10451_s28 = sld [smem:[#allocation35_spill]]  ;;  %s7671_s9 = int_to_ptr.vmem [resolvable:$true] %s7670_s9 }
0x28b0   : > { %8419 = vmatprep.subr.mxu1 %v7486_v55  ;;  %v7468_v20 = vld [vmem:[%s9485_s11 + $0x60] sm:$0xff]  ;;  %v7467_v2 = vld [vmem:[%s9485_s11 + $0x58] sm:$0xff]  ;;  %v7482_v52 = vld [vmem:[%s9485_s11 + $0xd0] sm:$0xff]  ;;  %s7657_s13 = scalar_lea.sflag [#allocation4], %s818_s4  ;;  %s9160_s23 = scalar_lea.vmem %s7671_s9, 32 }
0x28b1   : > { %8420 = vmatpush3.msra.mxu1 %v7470_v47  ;;  %v7466_v57 = vld [vmem:[%s9485_s11 + $0x50] sm:$0xff]  ;;  %v7481_v61 = vld [vmem:[%s9485_s11 + $0xc8] sm:$0xff]  ;;  %v7480_v59 = vld [vmem:[%s9485_s11 + $0xc0] sm:$0xff]  ;;  %v7368_v54 = vsub.s32 0, %v7367_v10  ;;  %v7372_v21 = vsub.s32 1, %v7367_v10  ;;  %p9161_p13 = scmp.ne.s32.totalorder %s7671_s9, %s9160_s23  ;;  %s9239_s24 = smov [#allocation3]  }
0x28b2   : > { %8421 = vmatprep.subr.mxu1 %v7485_v48  ;;  %v7465_v50 = vld [vmem:[%s9485_s11 + $0x48] sm:$0xff]  ;;  %v7464_v60 = vld [vmem:[%s9485_s11 + $0x40] sm:$0xff]  ;;  %v7479_v62 = vld [vmem:[%s9485_s11 + $0xb8] sm:$0xff] }
0x28b3   : > { %v7363_v33 = vld [vmem:[%s10446_s29 + $0x38] sm:$0xff]  ;;  %v7362_v30 = vld [vmem:[%s10446_s29 + $0x30] sm:$0xff]  ;;  %v7361_v38 = vld [vmem:[%s10446_s29 + $0x28] sm:$0xff]  ;;  %8422 = vmatpush3.msra.mxu1 %v7469_v11  ;;  %p9162_p0 = pnand %p9161_p13, %p9378_p5 }
0x28b4   : > { %7407 = vmatprep.subr.mxu0 %v7363_v33  ;;  %v7360_v35 = vld [vmem:[%s10446_s29 + $0x20] sm:$0xff]  ;;  %v7359_v37 = vld [vmem:[%s10446_s29 + $0x18] sm:$0xff]  ;;  %v7358_v39 = vld [vmem:[%s10446_s29 + $0x10] sm:$0xff]  ;;  %8423 = vmatprep.subr.mxu1 %v7484_v5 }
0x28b5   : > { %7408 = vmatpush1.msra.mxu0 %v7362_v30  ;;  %v7354_v40 = vld [vmem:[#allocation2] sm:$0xff]  ;;  %v7357_v27 = vld [vmem:[%s10446_s29 + $0x8] sm:$0xff]  ;;  %8424 = vmatpush3.msra.mxu1 %v7468_v20  ;;  %v7463_v63 = vld [vmem:[%s9485_s11 + $0x38] sm:$0xff]  ;;  %p9163_p1 = pneg %p9162_p0 }
0x28b6   : > { %7409 = vmatprep.subr.mxu0 %v7361_v38  ;;  %v7356_v43 = vld [vmem:[%s10446_s29] sm:$0xff]  ;;  %v7380_v28 = vsel %vm7379_vm10, %v7378_v34, %v7354_v40  ;;  %8425 = vmatprep.subr.mxu1 %v7483_v49  ;;  %v7478_v0 = vld [vmem:[%s9485_s11 + $0xb0] sm:$0xff]  ;;  %v7477_v46 = vld [vmem:[%s9485_s11 + $0xa8] sm:$0xff] }
0x28b7   : > { %7410 = vmatpush1.msra.mxu0 %v7360_v35  ;;  %8426 = vmatpush3.msra.mxu1 %v7467_v2  ;;  %v7462_v1 = vld [vmem:[%s9485_s11 + $0x30] sm:$0xff]  ;;  %v7461_v44 = vld [vmem:[%s9485_s11 + $0x28] sm:$0xff]  ;;  %v7476_v58 = vld [vmem:[%s9485_s11 + $0xa0] sm:$0xff] }
0x28b8   : > { %7411 = vmatprep.subr.mxu0 %v7359_v37  ;;  %8427 = vmatprep.subr.mxu1 %v7482_v52  ;;  %v7460_v14 = vld [vmem:[%s9485_s11 + $0x20] sm:$0xff]  ;;  %v7475_v3 = vld [vmem:[%s9485_s11 + $0x98] sm:$0xff]  ;;  %v7474_v6 = vld [vmem:[%s9485_s11 + $0x90] sm:$0xff] }
0x28b9   : > { %7412 = vmatpush1.msra.mxu0 %v7358_v39  ;;  %8428 = vmatpush3.msra.mxu1 %v7466_v57  ;;  %v7459_v4 = vld [vmem:[%s9485_s11 + $0x18] sm:$0xff]  ;;  %v7458_v9 = vld [vmem:[%s9485_s11 + $0x10] sm:$0xff]  ;;  %v7473_v45 = vld [vmem:[%s9485_s11 + $0x88] sm:$0xff] }
0x28ba   : > { %7413 = vmatprep.subr.mxu0 %v7357_v27  ;;  %8429 = vmatprep.subr.mxu1 %v7481_v61  ;;  %v7457_v8 = vld [vmem:[%s9485_s11 + $0x8] sm:$0xff]  ;;  %v7472_v18 = vld [vmem:[%s9485_s11 + $0x80] sm:$0xff]  ;;  %v7573_v25 = vld [vmem:[%s9494_s3 + $0x38] sm:$0xff] }
0x28bb   : > { %7414 = vmatpush1.msra.mxu0 %v7356_v43  ;;  %8430 = vmatpush3.msra.mxu1 %v7465_v50  ;;  %v7456_v56 = vld [vmem:[%s9485_s11] sm:$0xff]  ;;  %v7572_v12 = vld [vmem:[%s9494_s3 + $0x30] sm:$0xff]  ;;  %v7571_v16 = vld [vmem:[%s9494_s3 + $0x28] sm:$0xff]  ;;  %s10447_s11 = sld [smem:[#allocation9_spill]] }
0x28bc   : > { %8172 = vmatmul.mubr.msk.f32.vlgmr.msra.gmra.mxu0 %vm900_vm0, %v7380_v28  ;;  %8956 = vmatprep.subr.mxu0 %v9237_v36  ;;  %v7364_v19 = vld [vmem:[%s9479_s17] sm:$0x3]  ;;  %v7569_v51 = vld [vmem:[%s9494_s3 + $0x18] sm:$0xff]  ;;  %v7568_v32 = vld [vmem:[%s9494_s3 + $0x10] sm:$0xff] }
0x28bd   : > { %8431 = vmatprep.subr.mxu1 %v7480_v59  ;;  %8957 = vmatpush3.msra.mxu0 %v7573_v25  ;;  %v7369_v22 = vrot.slane %v7364_v19, %v7368_v54  ;;  %v7373_v23 = vrot.slane %v7364_v19, %v7372_v21  ;;  %v7570_v15 = vld [vmem:[%s9494_s3 + $0x20] sm:$0xff]  ;;  %v7567_v33 = vld [vmem:[%s9494_s3 + $0x8] sm:$0xff] }
0x28be   : > { %8432 = vmatpush3.msra.mxu1 %v7464_v60  ;;  %8958 = vmatprep.subr.mxu0 %v9237_v36  ;;  %v7566_v30 = vld [vmem:[%s9494_s3] sm:$0xff] }
0x28bf   : > { %8433 = vmatprep.subr.mxu1 %v7479_v62  ;;  %8959 = vmatpush3.msra.mxu0 %v7572_v12  ;;  %v8173_v35 = vld [vmem:[%s887_s12] ss:$0 sm:$0xff] }
0x28c0   : > { %8434 = vmatpush3.msra.mxu1 %v7463_v63  ;;  %8960 = vmatprep.subr.mxu0 %v9237_v36 }
0x28c1   : > { %8435 = vmatprep.subr.mxu1 %v7478_v0  ;;  %8961 = vmatpush3.msra.mxu0 %v7571_v16  ;;  %s8177_s6 = sshll.u32 %s10447_s11, 5 }
0x28c2   : > { %8436 = vmatpush3.msra.mxu1 %v7462_v1  ;;  %8962 = vmatprep.subr.mxu0 %v9237_v36  ;;  %s10315_s18 = scalar_lea.hbm %s10451_s28, %s8177_s6 }
0x28c3   : > { %8437 = vmatprep.subr.mxu1 %v7477_v46  ;;  %8963 = vmatpush3.msra.mxu0 %v7570_v15 }
0x28c4   : > { %8438 = vmatpush3.msra.mxu1 %v7461_v44  ;;  %8964 = vmatprep.subr.mxu0 %v9237_v36 }
0x28c5   : > { %8439 = vmatprep.subr.mxu1 %v7476_v58  ;;  %8965 = vmatpush3.msra.mxu0 %v7569_v51 }
0x28c6   : > { %8440 = vmatpush3.msra.mxu1 %v7460_v14  ;;  %8966 = vmatprep.subr.mxu0 %v9237_v36 }
0x28c7   : > { %8441 = vmatprep.subr.mxu1 %v7475_v3  ;;  %8967 = vmatpush3.msra.mxu0 %v7568_v32 }
0x28c8   : > { %8442 = vmatpush3.msra.mxu1 %v7459_v4  ;;  %8968 = vmatprep.subr.mxu0 %v9237_v36 }
0x28c9   : > { %8443 = vmatprep.subr.mxu1 %v7474_v6  ;;  %8969 = vmatpush3.msra.mxu0 %v7567_v33 }
0x28ca   : > { %8444 = vmatpush3.msra.mxu1 %v7458_v9  ;;  %8970 = vmatprep.subr.mxu0 %v9237_v36 }
0x28cb   : > { %8445 = vmatprep.subr.mxu1 %v7473_v45  ;;  %8971 = vmatpush3.msra.mxu0 %v7566_v30 }
0x28cc   : > { %8446 = vmatpush3.msra.mxu1 %v7457_v8  ;;  %8972 = vmatprep.mubr.msk.f32.mxu0 %vm9238_vm11, %v9237_v36  ;;  %v8174_v36 = vld [vmem:[%s895_s8] ss:$0 sm:$0xff]  ;;  %s9164_s8 = sshll.u32 %s9239_s24, 4  ;;  %s9165_s8 = int_to_ptr.vmem [resolvable:$false] %s9164_s8 }
0x28cd   : > { %8447 = vmatprep.subr.mxu1 %v7472_v18  ;;  %s9166_s2 = scalar_lea.vmem %s9165_s8, 64  ;;  %p9167_p2 = scmp.lt.s32.totalorder %s7671_s9, %s9165_s8 }
0x28ce   : > { %8448 = vmatpush3.msra.mxu1 %v7456_v56  ;;  %p9168_p3 = scmp.lt.s32.totalorder %s9166_s2, %s9160_s23 }
0x28d0   : > { %p9169_p4 = por %p9168_p3, %p9167_p2 }
0x28d2   : > { %p9170_p7 = pnand %p9169_p4, %p9163_p1 }
0x297c   : > { %v7449_v24 = vpop.f32.mrf.mxu0 }
0x297d   : > { %v7450_v31 = vadd.f32 %v7449_v24, %v7369_v22 }
0x297e   : > { %v7451_v53 = vpop.f32.mrf.mxu0 }
0x297f   : > { %v7452_v7 = vadd.f32 %v7451_v53, %v7373_v23  ;;  %v7454_v29 = vmax.f32 %v7450_v31, 0.0 }
0x2981   : > { %v7455_v26 = vmax.f32 %v7452_v7, 0.0 }
0x2983   : > { %7559 = vmatprep.mubr.f32.mxu1 %v7455_v26 }
0x2984   : > { %7560 = vmatmul.mubr.f32.vlgmr.msra.gmra.mxu1 %v7454_v29 }
0x2a44   : > { %v8449_v38 = vpop.f32.mrf.mxu1 }
0x2a46   : > { %v8450_v37 = vpop.f32.mrf.mxu1 }
0x2a47   : > { %v8451_v39 = vadd.f32 %v8450_v37, %v8449_v38 }
0x2a49   : > { %v7562_v40 = vadd.f32 %v8451_v39, %v8173_v35 }
0x2a4b   : > { %v7565_v41 = vmax.f32 %v7562_v40, 0.0 }
0x2a4d   : > { %8973 = vmatmul.mubr.msk.f32.vlgmr.msra.gmra.mxu0 %vm7581_vm12, %v7565_v41 }
0x2b0d   : > { %v7651_v42 = vpop.f32.mrf.mxu0 }
0x2b0e   : > { %v7652_v13 = vadd.f32 %v8174_v36, %v7651_v42 }
0x2b0f   : > { %v8974_v27 = vpop.f32.mrf.mxu0 }
0x2b10   : > { %7655 = vst [vmem:[%s820_s21] sm:$0x3] %v7652_v13 }
0x2b11   : > { %9173 = shalt.err (!%p9170_p7)
}
0x2b12   : > { %s9174_s14 = scalar_lea.hbm %s10315_s18, 32  ;;  %s9178_s26 = scalar_lea.hbm %s10451_s28, 96 }
0x2b13   : > { %p9175_p8 = scmp.ne.s32.totalorder %s10315_s18, %s9174_s14  ;;  %p9179_p11 = scmp.lt.s32.totalorder %s10315_s18, %s10451_s28 }
0x2b14   : > { %p9180_p12 = scmp.lt.s32.totalorder %s9178_s26, %s9174_s14 }
0x2b15   : > { %p9176_p9 = pnand %p9175_p8, %p9378_p5 }
0x2b16   : > { %p9181_p13 = por %p9180_p12, %p9179_p11 }
0x2b17   : > { %p9177_p10 = pneg %p9176_p9 }
0x2b19   : > { %p9182_p0 = pnand %p9181_p13, %p9177_p10 }
0x2b1b   : > { %9185 = shalt.err (!%p9182_p0)
}
0x2b1c   : > { %8980 = dma.vmem_to_hbm [thread:$0]  (%p9378_p5), %s7671_s9, 32, %s10315_s18, %s7657_s13  }
0x2b1d PF: > { %s10452_s16 = sld [smem:[#allocation8_spill]] }
0x2b1e   : > { %s10453_s5 = sld [smem:[#allocation6_spill]] }
0x2b23   : > { %p8986_p1 = scmp.ge.s32.totalorder %s10452_s16, 2 }
0x2b24   : > { %s7682_s29 = sand.u32 1, %s10453_s5  }
0x2b25   : > { %p8983_p2 = pnand %p8986_p1, %p9382_p6  ;;  %s7683_s11 = scalar_lea.sflag [#allocation4], %s7682_s29 }
0x2b27   : > { %p8984_p3 = pneg %p8983_p2 }
0x2b29   : > { %9203 = dma.done.wait (%p8984_p3), %s7683_s11, 32  }
0x2b2a   : > { %9205 = vsyncadd (%p8984_p3), %s7683_s11, 4294967264  ;;  %s10455_s21 = sld [smem:[#allocation10_spill]]  ;;  %s10458_s0 = smov %s9212_s30 }
0x2b2b   : > { %s10456_s20 = sld [smem:[#allocation7_spill]] }
0x2b2c   : > { %s10457_s19 = sld [smem:[#allocation11_spill]] }
0x2b30   : > { %p29_p4 = scmp.ge.s32.totalorder %s10455_s21, 5  }
0x2b31   : > { %s10459_s30 = smov %s10456_s20 }
0x2b32   : > { %s10460_s20 = smov %s10457_s19  ;;  %31 = sbr.rel (!%p29_p4) target bundleno = 23 (0x17), region = 214 }
0x2b37   :  { %7688 = vsyncpa [#allocation4], 1 }
0x2b38   :  { %7690 = vsyncpa [#allocation4 + $0x1], 1 }

</bundles_post_ra>
